<compile_context>
chip_gen: v5e
topology: v5e:2x2
jax: 0.10.0
libtpu: 0.0.40
codegen_flags: <defaults>
</compile_context>

<pallas_src>
import functools

import numpy as np
import jax
import jax.numpy as jnp
from jax import lax
from jax.experimental import pallas as pl
from jax.experimental.pallas import tpu as pltpu

_F32 = jnp.float32
_BF16 = jnp.bfloat16


# ---------------------------------------------------------------------------
# BlockSpec / compiler-param helpers
# ---------------------------------------------------------------------------
def _vspec():
    """Whole-array VMEM block (grid-less calls)."""
    return pl.BlockSpec(memory_space=pltpu.MemorySpace.VMEM)


def _resident_spec(arr):
    """Whole-array block whose block index is constant over the grid -> VMEM-resident."""
    nd = arr.ndim
    return pl.BlockSpec(tuple(arr.shape), lambda t, _nd=nd: (0,) * _nd)


def _vmem_limit_bytes():
    """Explicit scoped-VMEM limit: ~7/8 of physical VMEM, capped at 100 MiB.

    v5e/v6e (128 MiB) -> 100 MiB; v7x (64 MiB) -> 56 MiB; falls back to 56 MiB if the
    hardware query is unavailable.  This replaces the 16/32 MiB default scoped limit
    that otherwise caps E far below what physical VMEM allows.
    """
    cap = 64 << 20
    try:
        info = pltpu.get_tpu_info()
        cap = int(getattr(info, "vmem_capacity_bytes", cap))
    except Exception:
        pass
    return int(min(100 << 20, (cap * 7) // 8))


# ---------------------------------------------------------------------------
# Pallas kernels
# ---------------------------------------------------------------------------
def _edge_feat_kernel(gsrc_ref, gdst_ref, x_ref, er_ref, u_ref, v_ref, we_ref, o_ref):
    """edge_attr = lin_u(x)[src] + lin_v(x)[dst] + lin_edge(edge_attr_raw).

    The 1/3 scale of the reference is folded into u/v/we on the host.
    """
    xu = jnp.dot(x_ref[...], u_ref[...], preferred_element_type=_F32)     # [N,F]
    xv = jnp.dot(x_ref[...], v_ref[...], preferred_element_type=_F32)     # [N,F]
    ew = jnp.dot(er_ref[...], we_ref[...], preferred_element_type=_F32)   # [E,F]
    gsrc = gsrc_ref[...].astype(_F32)                                     # bf16 0/1 -> f32
    gdst = gdst_ref[...].astype(_F32)
    o_ref[...] = (jnp.dot(gsrc, xu, preferred_element_type=_F32)
                  + jnp.dot(gdst, xv, preferred_element_type=_F32)
                  + ew)


def _iter_kernel(M_ref, ea_ref, ahat_ref, bT_ref, bmat_ref,
                 wcat_ref, asrc_ref, sbias_ref, gat_b_ref,
                 gout_w_ref, gout_b_ref,
                 out_ref, gout_ref,
                 out_acc):
    """One DMPNN iteration: message passing + GlobalAttentionPool + lin_gout/tanh."""
    t = pl.program_id(0)
    F = wcat_ref.shape[0]
    E = M_ref.shape[0]

    @pl.when(t == 0)
    def _():
        out_acc[...] = ea_ref[...]

    # out = edge_attr + scatter_add(out[lg0], lg1)  ==  M @ out + edge_attr
    M = M_ref[...].astype(_F32)                        # bf16 resident (exact 0/1) -> f32
    o = jnp.dot(M, out_acc[...], preferred_element_type=_F32) + ea_ref[...]
    out_acc[...] = o

    # ---- one wide projection of `o` replacing four narrow MXU pushes:
    #   [:, :F]   = o @ gat_w              (GAT features xw)
    #   [:, F]    = o @ (0.6 * gcn_w)      (GCN score, pre-propagation)
    #   [:, F+1]  = o @ (0.4 * fbtl_w)     (Linear score, bias folded into sbias)
    #   [:, F+2]  = o @ (gat_w @ att_dst)  (GAT dst attention)
    proj = jnp.dot(o, wcat_ref[...], preferred_element_type=_F32)          # [E,F+3]
    xw = proj[:, :F]
    xwg = proj[:, F:F + 1]
    s_f = proj[:, F + 1:F + 2]
    a_dst = proj[:, F + 2:F + 3]

    # score = 0.6 * GCNConv(out) + 0.4 * Linear(out)   (0.6/0.4 folded into weights)
    score = (jnp.dot(ahat_ref[...].astype(_F32), xwg, preferred_element_type=_F32)
             + s_f + sbias_ref[...])                                        # [E,1]

    # a_src row via folded (att_src @ gat_w^T) weight, contracted along F (proven NT form).
    a_src = lax.dot_general(asrc_ref[...], o, (((1,), (1,)), ((), ())),
                            preferred_element_type=_F32)                    # [1,E]

    # ---- dense GATConv (heads=1) on line graph; mask derived from M (+self loops),
    #      so no stored [E,E] mask and no exp*mask multiply.
    e = a_dst + a_src                                                       # [E,E]
    e = jnp.where(e > 0, e, 0.2 * e)                                        # LeakyReLU(0.2)
    row = lax.broadcasted_iota(jnp.int32, (E, E), 0)
    col = lax.broadcasted_iota(jnp.int32, (E, E), 1)
    adj = (M > 0.0) | (row == col)
    e = jnp.where(adj, e, _F32(-1e30))
    e = e - jnp.max(e, axis=1, keepdims=True)
    p = jnp.exp(e)            # masked entries underflow to 0 (self-loop guarantees valid max)
    att = p * pl.reciprocal(jnp.sum(p, axis=1, keepdims=True) + 1e-16, approx=True)
    xf = jnp.dot(att, xw, preferred_element_type=_F32) + gat_b_ref[...]     # [E,F]
    # TODO(synk): for E >~ 1-1.5k, row-tile this E^2 attention (flash-style fori_loop)
    # to bound the live E^2 temporaries; unnecessary at demo sizes.

    # ---- per-graph segment softmax of scores + global_add_pool(xf * scores)
    in_g = bT_ref[...] > 0                                # [E,G] one-hot membership
    masked = jnp.where(in_g, score, _F32(-1e30))          # [E,G]
    m = jnp.max(masked, axis=0, keepdims=True)            # [1,G]
    pe = jnp.where(in_g, jnp.exp(masked - m), 0.0)        # [E,G]
    w_eg = pe * pl.reciprocal(jnp.sum(pe, axis=0, keepdims=True) + 1e-16, approx=True)
    w_e = jnp.sum(w_eg, axis=1, keepdims=True)            # [E,1] per-edge weight
    gx = jnp.dot(bmat_ref[...].astype(_F32), xf * w_e, preferred_element_type=_F32)  # [G,F]

    gout = jnp.tanh(
        jnp.dot(gx, gout_w_ref[...], preferred_element_type=_F32) + gout_b_ref[...]
    )                                                                        # [G,F]

    out_ref[0] = o
    gout_ref[0] = gout


def _final_kernel(s_node_ref, out_stack_ref, w_ref, x_ref,
                  g1, b1, w1, c1,
                  g2, b2, p2, w2, c2,
                  g3, b3, p3, w3, c3,
                  g4, b4, p4, w4, c4,
                  g5, b5, p5, w5, c5,
                  o_ref):
    """Iteration mixing + scatter-to-nodes + x residual + fused LinearBlock."""
    def bn(v, g, b):
        mu = jnp.mean(v, axis=0, keepdims=True)
        var = jnp.mean(jnp.square(v - mu), axis=0, keepdims=True)
        return (v - mu) * lax.rsqrt(var + 1e-5) * g[...] + b[...]

    def prelu(v, p):
        return jnp.where(v > 0, v, p[...] * v)

    def lin(v, w, c):
        return jnp.dot(v, w[...], preferred_element_type=_F32) + c[...]

    # out_mix[e,f] = sum_t out_all[t,e,f] * w[t,e,0]   (w pre-arranged in XLA as [T,E,1])
    out_mix = out_stack_ref[0] * w_ref[0]
    for t in range(1, out_stack_ref.shape[0]):
        out_mix = out_mix + out_stack_ref[t] * w_ref[t]

    # x = data.x + scatter_add(out_mix, edge_index[1])
    xn = jnp.dot(s_node_ref[...].astype(_F32), out_mix,
                 preferred_element_type=_F32) + x_ref[...]

    # LinearBlock (BatchNorm uses batch statistics == training-mode forward)
    h1 = lin(bn(xn, g1, b1), w1, c1)
    h2 = lin(prelu(bn(h1, g2, b2), p2), w2, c2)
    h3 = lin(prelu(bn(h2, g3, b3), p3), w3, c3)
    x2 = (h3 + h1) * 0.5
    h4 = lin(prelu(bn(x2, g4, b4), p4), w4, c4)
    x3 = (h4 + x2) * 0.5
    o_ref[...] = lin(prelu(bn(x3, g5, b5), p5), w5, c5)
    # TODO(synk): for large N/E, tile the S_node @ out_mix scatter over N-row blocks and
    # hoist the (global-N) BatchNorm statistics to a small preceding pass.


# ---------------------------------------------------------------------------
# Forward pass
# ---------------------------------------------------------------------------
def gsp_dmpnn_forward(params, x, edge_attr_raw, struct, *, num_graphs, n_iter):
    N, F = x.shape
    E = struct["M"].shape[0]
    G = num_graphs
    T = n_iter
    vmem_limit = _vmem_limit_bytes()

    # ---- 1) edge feature construction (one fused kernel; 1/3 folded into weights) ----
    third = _F32(1.0 / 3.0)
    edge_attr = pl.pallas_call(
        _edge_feat_kernel,
        out_shape=jax.ShapeDtypeStruct((E, F), _F32),
        in_specs=[_vspec() for _ in range(7)],
        out_specs=_vspec(),
    )(struct["G_src"], struct["G_dst"], x, edge_attr_raw,
      params["lin_u_w"] * third, params["lin_v_w"] * third, params["lin_edge_w"] * third)

    # ---- host-side weight folding for the iteration kernel --------------------------
    adst_fold = jnp.dot(params["gat_w"], params["gat_att_dst"])             # [F,1]
    wcat = jnp.concatenate(
        [params["gat_w"], 0.6 * params["gcn_w"], 0.4 * params["fbtl_w"], adst_fold],
        axis=1)                                                             # [F, F+3]
    asrc_fold = jnp.dot(params["gat_att_src"], params["gat_w"].T)           # [1,F]
    score_bias = 0.6 * params["gcn_b"] + 0.4 * params["fbtl_b"]             # [1,1]

    # ---- 2) fused message-passing / attention-pool loop, grid=(n_iter,) -------------
    consts = (struct["M"], edge_attr, struct["A_hat"], struct["BT"], struct["B"],
              wcat, asrc_fold, score_bias, params["gat_b"],
              params["lin_gout_w"], params["lin_gout_b"])

    flops = T * (2 * E * E * F          # M @ out
                 + 2 * E * F * (F + 3)  # wide projection
                 + 2 * E * E            # A_hat @ xwg
                 + 2 * E * E * F        # att @ xw
                 + 2 * G * E * F        # pooling
                 + 2 * G * F * F)       # lin_gout
    cost = pl.CostEstimate(
        flops=int(flops),
        transcendentals=int(T * (E * E + E * G + G * F)),
        bytes_accessed=int(sum(int(np.prod(c.shape)) * c.dtype.itemsize for c in consts)
                           + 4 * T * (E * F + G * F)),
    )

    out_stack, gout_stack = pl.pallas_call(
        _iter_kernel,
        out_shape=(jax.ShapeDtypeStruct((T, E, F), _F32),
                   jax.ShapeDtypeStruct((T, G, F), _F32)),
        grid_spec=pltpu.PrefetchScalarGridSpec(
            num_scalar_prefetch=0,
            grid=(T,),
            in_specs=[_resident_spec(c) for c in consts],
            out_specs=[pl.BlockSpec((1, E, F), lambda t: (t, 0, 0)),
                       pl.BlockSpec((1, G, F), lambda t: (t, 0, 0))],
            scratch_shapes=[pltpu.VMEM((E, F), _F32)],
        ),
        compiler_params=pltpu.CompilerParams(
            dimension_semantics=("arbitrary",),
            vmem_limit_bytes=vmem_limit,
        ),
        cost_estimate=cost,
    )(*consts)

    # ---- 3) per-iteration mixture weights (tiny [G,T]/[T,E,1] glue in XLA) ----------
    logits = jnp.einsum("tgf,ft->gt", gout_stack, params["a"][0]) + params["a_bias"][0]
    scores = jax.nn.softmax(logits, axis=-1)                       # [G,T]
    scores_e = jnp.dot(struct["BT"].astype(_F32), scores)          # [E,T] == scores[e_batch]
    w_te = jnp.transpose(scores_e)[:, :, None]                     # [T,E,1] lane-friendly

    # ---- 4) mixing + scatter-to-nodes + LinearBlock (one fused kernel) --------------
    lb = [params["lb_bn1_g"], params["lb_bn1_b"], params["lb_w1"], params["lb_b1"]]
    for i in (2, 3, 4, 5):
        lb += [params[f"lb_bn{i}_g"], params[f"lb_bn{i}_b"], params[f"lb_p{i}"],
               params[f"lb_w{i}"], params[f"lb_b{i}"]]

    y = pl.pallas_call(
        _final_kernel,
        out_shape=jax.ShapeDtypeStruct((N, F), _F32),
        in_specs=[_vspec() for _ in range(4 + len(lb))],
        out_specs=_vspec(),
        compiler_params=pltpu.CompilerParams(vmem_limit_bytes=vmem_limit),
    )(struct["S_node"], out_stack, w_te, x, *lb)
    return y


# ---------------------------------------------------------------------------
# Host-side dense structure matrices (static topology -> built once, outside jit).
# Stored in bf16: all operators are exact 0/1 (A_hat near-1), halving E^2 VMEM residency.
# ---------------------------------------------------------------------------
def build_structure(edge_index, lg_edge_index, e_batch, num_nodes, num_graphs):
    E = edge_index.shape[1]
    M = np.zeros((E, E), np.float32)
    np.add.at(M, (lg_edge_index[1], lg_edge_index[0]), 1.0)        # scatter_add operator
    eye = np.eye(E, dtype=np.float32)
    A_sl = M + eye                                                 # add self loops
    deg = A_sl.sum(axis=1)
    dis = 1.0 / np.sqrt(deg)
    A_hat = A_sl * dis[:, None] * dis[None, :]                     # GCN normalization
    BT = np.zeros((E, num_graphs), np.float32)
    BT[np.arange(E), e_batch] = 1.0                                # [E,G]
    B = np.ascontiguousarray(BT.T)                                 # [G,E]
    S_node = np.zeros((num_nodes, E), np.float32)
    np.add.at(S_node, (edge_index[1], np.arange(E)), 1.0)          # edge -> target node
    G_src = np.zeros((E, num_nodes), np.float32)
    G_src[np.arange(E), edge_index[0]] = 1.0
    G_dst = np.zeros((E, num_nodes), np.float32)
    G_dst[np.arange(E), edge_index[1]] = 1.0
    arrays = dict(M=M, A_hat=A_hat, BT=BT, B=B, S_node=S_node, G_src=G_src, G_dst=G_dst)
    return {k: jnp.asarray(v, dtype=_BF16) for k, v in arrays.items()}


# ---------------------------------------------------------------------------
# Deterministic parameter init (shapes from the module's __init__)
# ---------------------------------------------------------------------------
def init_params(key, edge_dim, n_feats, n_iter):
    F, S = n_feats, 6 * n_feats
    keys = iter(jax.random.split(key, 40))

    def uni(shape, lim):
        return jax.random.uniform(next(keys), shape, _F32, -lim, lim)

    def lin_w(i, o):
        return uni((i, o), 1.0 / np.sqrt(i))

    def lin_b(i, o):
        return uni((1, o), 1.0 / np.sqrt(i))

    p = {}
    p["lin_u_w"] = lin_w(F, F)
    p["lin_v_w"] = lin_w(F, F)
    p["lin_edge_w"] = lin_w(edge_dim, F)
    # GlobalAttentionPool: GCNConv(F,1), Linear(F,1), GATConv(F,F,heads=1)
    p["gcn_w"] = uni((F, 1), np.sqrt(6.0 / (F + 1)))
    p["gcn_b"] = jnp.zeros((1, 1), _F32)
    p["fbtl_w"] = lin_w(F, 1)
    p["fbtl_b"] = lin_b(F, 1)
    p["gat_w"] = uni((F, F), np.sqrt(6.0 / (2 * F)))
    p["gat_att_src"] = uni((1, F), np.sqrt(6.0 / (1 + F)))
    p["gat_att_dst"] = uni((F, 1), np.sqrt(6.0 / (1 + F)))
    p["gat_b"] = jnp.zeros((1, F), _F32)
    p["lin_gout_w"] = lin_w(F, F)
    p["lin_gout_b"] = lin_b(F, F)
    p["a"] = uni((1, F, n_iter), np.sqrt(6.0 / (F + n_iter)))      # glorot
    p["a_bias"] = jnp.zeros((1, 1, n_iter), _F32)
    # LinearBlock
    p["lb_bn1_g"] = jnp.ones((1, F), _F32); p["lb_bn1_b"] = jnp.zeros((1, F), _F32)
    p["lb_w1"] = lin_w(F, S); p["lb_b1"] = lin_b(F, S)
    for i in (2, 3, 4):
        p[f"lb_bn{i}_g"] = jnp.ones((1, S), _F32)
        p[f"lb_bn{i}_b"] = jnp.zeros((1, S), _F32)
        p[f"lb_p{i}"] = jnp.full((1, 1), 0.25, _F32)
        p[f"lb_w{i}"] = lin_w(S, S)
        p[f"lb_b{i}"] = lin_b(S, S)
    p["lb_bn5_g"] = jnp.ones((1, S), _F32); p["lb_bn5_b"] = jnp.zeros((1, S), _F32)
    p["lb_p5"] = jnp.full((1, 1), 0.25, _F32)
    p["lb_w5"] = lin_w(S, F); p["lb_b5"] = lin_b(S, F)
    return p


# ---------------------------------------------------------------------------
# Synthetic data + run
# ---------------------------------------------------------------------------
if __name__ == "__main__":
    EDGE_DIM, N_FEATS, N_ITER = 8, 32, 3

    # two small path graphs, bidirectional edges (edges sorted by graph id)
    nodes_per_graph = [5, 5]
    edges, e_batch = [], []
    off = 0
    for g, n in enumerate(nodes_per_graph):
        for i in range(n - 1):
            edges.append((off + i, off + i + 1)); e_batch.append(g)
            edges.append((off + i + 1, off + i)); e_batch.append(g)
        off += n
    edge_index_np = np.array(edges, dtype=np.int32).T              # [2, E]
    N, E = off, edge_index_np.shape[1]

    # line graph: edge a=(u,v) -> edge b=(v,w), a != b
    lg = [(a, b) for a in range(E) for b in range(E)
          if a != b and edge_index_np[1, a] == edge_index_np[0, b]]
    lg_np = np.array(lg, dtype=np.int32).T                         # [2, LE]
    e_batch_np = np.array(e_batch, dtype=np.int32)

    struct = build_structure(edge_index_np, lg_np, e_batch_np, N, len(nodes_per_graph))

    key = jax.random.PRNGKey(0)
    kx, ke, kp = jax.random.split(key, 3)
    x = jax.random.normal(kx, (N, N_FEATS), jnp.float32)
    edge_attr = jax.random.normal(ke, (E, EDGE_DIM), jnp.float32)
    params = init_params(kp, EDGE_DIM, N_FEATS, N_ITER)

    fwd = jax.jit(functools.partial(gsp_dmpnn_forward,
                                    num_graphs=len(nodes_per_graph),
                                    n_iter=N_ITER))
    y = fwd(params, x, edge_attr, struct)
    y = jax.block_until_ready(y)

    assert y.shape == (N, N_FEATS)
    assert bool(jnp.all(jnp.isfinite(y)))
    print("KERNEL_OK")
</pallas_src>

<mosaic_0001>
module attributes {stable_mosaic.version = 11 : i64} {
  func.func @_edge_feat_kernel(%arg0: memref<16x10xbf16, #tpu.memory_space<vmem>>, %arg1: memref<16x10xbf16, #tpu.memory_space<vmem>>, %arg2: memref<10x32xf32, #tpu.memory_space<vmem>>, %arg3: memref<16x8xf32, #tpu.memory_space<vmem>>, %arg4: memref<32x32xf32, #tpu.memory_space<vmem>>, %arg5: memref<32x32xf32, #tpu.memory_space<vmem>>, %arg6: memref<8x32xf32, #tpu.memory_space<vmem>>, %arg7: memref<16x32xf32, #tpu.memory_space<vmem>>) attributes {dimension_semantics = [], scalar_prefetch = 0 : i64, scratch_operands = 0 : i64, tpu.core_type = #tpu.core_type<tc>} {
    %c0 = arith.constant 0 : index
    %c0_0 = arith.constant 0 : index
    %0 = vector.load %arg2[%c0, %c0_0] : memref<10x32xf32, #tpu.memory_space<vmem>>, vector<10x32xf32>
    %c0_1 = arith.constant 0 : index
    %c0_2 = arith.constant 0 : index
    %1 = vector.load %arg4[%c0_1, %c0_2] : memref<32x32xf32, #tpu.memory_space<vmem>>, vector<32x32xf32>
    %cst = arith.constant dense<0.000000e+00> : vector<10x32xf32>
    %2 = tpu.matmul %0, %1, %cst {dimension_numbers = #tpu.dot_dimension_numbers<[1], [0], [0], [1], [0, 0, 1, 1], [], []>} : vector<10x32xf32>, vector<32x32xf32>, vector<10x32xf32> -> vector<10x32xf32>
    %c0_3 = arith.constant 0 : index
    %c0_4 = arith.constant 0 : index
    %3 = vector.load %arg2[%c0_3, %c0_4] : memref<10x32xf32, #tpu.memory_space<vmem>>, vector<10x32xf32>
    %c0_5 = arith.constant 0 : index
    %c0_6 = arith.constant 0 : index
    %4 = vector.load %arg5[%c0_5, %c0_6] : memref<32x32xf32, #tpu.memory_space<vmem>>, vector<32x32xf32>
    %cst_7 = arith.constant dense<0.000000e+00> : vector<10x32xf32>
    %5 = tpu.matmul %3, %4, %cst_7 {dimension_numbers = #tpu.dot_dimension_numbers<[1], [0], [0], [1], [0, 0, 1, 1], [], []>} : vector<10x32xf32>, vector<32x32xf32>, vector<10x32xf32> -> vector<10x32xf32>
    %c0_8 = arith.constant 0 : index
    %c0_9 = arith.constant 0 : index
    %6 = vector.load %arg3[%c0_8, %c0_9] : memref<16x8xf32, #tpu.memory_space<vmem>>, vector<16x8xf32>
    %c0_10 = arith.constant 0 : index
    %c0_11 = arith.constant 0 : index
    %7 = vector.load %arg6[%c0_10, %c0_11] : memref<8x32xf32, #tpu.memory_space<vmem>>, vector<8x32xf32>
    %cst_12 = arith.constant dense<0.000000e+00> : vector<16x32xf32>
    %8 = tpu.matmul %6, %7, %cst_12 {dimension_numbers = #tpu.dot_dimension_numbers<[1], [0], [0], [1], [0, 0, 1, 1], [], []>} : vector<16x8xf32>, vector<8x32xf32>, vector<16x32xf32> -> vector<16x32xf32>
    %c0_13 = arith.constant 0 : index
    %c0_14 = arith.constant 0 : index
    %9 = vector.load %arg0[%c0_13, %c0_14] : memref<16x10xbf16, #tpu.memory_space<vmem>>, vector<16x10xbf16>
    %10 = arith.extf %9 : vector<16x10xbf16> to vector<16x10xf32>
    %c0_15 = arith.constant 0 : index
    %c0_16 = arith.constant 0 : index
    %11 = vector.load %arg1[%c0_15, %c0_16] : memref<16x10xbf16, #tpu.memory_space<vmem>>, vector<16x10xbf16>
    %12 = arith.extf %11 : vector<16x10xbf16> to vector<16x10xf32>
    %cst_17 = arith.constant dense<0.000000e+00> : vector<16x32xf32>
    %13 = tpu.matmul %10, %2, %cst_17 {dimension_numbers = #tpu.dot_dimension_numbers<[1], [0], [0], [1], [0, 0, 1, 1], [], []>} : vector<16x10xf32>, vector<10x32xf32>, vector<16x32xf32> -> vector<16x32xf32>
    %cst_18 = arith.constant dense<0.000000e+00> : vector<16x32xf32>
    %14 = tpu.matmul %12, %5, %cst_18 {dimension_numbers = #tpu.dot_dimension_numbers<[1], [0], [0], [1], [0, 0, 1, 1], [], []>} : vector<16x10xf32>, vector<10x32xf32>, vector<16x32xf32> -> vector<16x32xf32>
    %15 = arith.addf %13, %14 : vector<16x32xf32>
    %16 = arith.addf %15, %8 : vector<16x32xf32>
    %c0_19 = arith.constant 0 : index
    %c0_20 = arith.constant 0 : index
    %17 = vector.load %arg7[%c0_19, %c0_20] : memref<16x32xf32, #tpu.memory_space<vmem>>, vector<16x32xf32>
    tpu.vector_store %arg7[%c0_19, %c0_20], %16 {strides = array<i32>} : memref<16x32xf32, #tpu.memory_space<vmem>>, vector<16x32xf32>,
    return
  }
}

module attributes {stable_mosaic.version = 11 : i64} {
  func.func @_iter_kernel(%arg0: i32, %arg1: memref<16x16xbf16, #tpu.memory_space<vmem>>, %arg2: memref<16x32xf32, #tpu.memory_space<vmem>>, %arg3: memref<16x16xbf16, #tpu.memory_space<vmem>>, %arg4: memref<16x2xbf16, #tpu.memory_space<vmem>>, %arg5: memref<2x16xbf16, #tpu.memory_space<vmem>>, %arg6: memref<32x35xf32, #tpu.memory_space<vmem>>, %arg7: memref<1x32xf32, #tpu.memory_space<vmem>>, %arg8: memref<1x1xf32, #tpu.memory_space<vmem>>, %arg9: memref<1x32xf32, #tpu.memory_space<vmem>>, %arg10: memref<32x32xf32, #tpu.memory_space<vmem>>, %arg11: memref<1x32xf32, #tpu.memory_space<vmem>>, %arg12: memref<1x16x32xf32, #tpu.memory_space<vmem>>, %arg13: memref<1x2x32xf32, #tpu.memory_space<vmem>>, %arg14: memref<16x32xf32, #tpu.memory_space<vmem>>) attributes {dimension_semantics = [#tpu.dimension_semantics<arbitrary>], iteration_bounds = array<i64: 3>, scalar_prefetch = 0 : i64, scratch_operands = 1 : i64, tpu.core_type = #tpu.core_type<tc>, window_params = [{pipeline_mode = #tpu.pipeline_mode<synchronous>, transform_indices = @transform_0, window_bounds = array<i64: 16, 16>}, {pipeline_mode = #tpu.pipeline_mode<synchronous>, transform_indices = @transform_1, window_bounds = array<i64: 16, 32>}, {pipeline_mode = #tpu.pipeline_mode<synchronous>, transform_indices = @transform_2, window_bounds = array<i64: 16, 16>}, {pipeline_mode = #tpu.pipeline_mode<synchronous>, transform_indices = @transform_3, window_bounds = array<i64: 16, 2>}, {pipeline_mode = #tpu.pipeline_mode<synchronous>, transform_indices = @transform_4, window_bounds = array<i64: 2, 16>}, {pipeline_mode = #tpu.pipeline_mode<synchronous>, transform_indices = @transform_5, window_bounds = array<i64: 32, 35>}, {pipeline_mode = #tpu.pipeline_mode<synchronous>, transform_indices = @transform_6, window_bounds = array<i64: 1, 32>}, {pipeline_mode = #tpu.pipeline_mode<synchronous>, transform_indices = @transform_7, window_bounds = array<i64: 1, 1>}, {pipeline_mode = #tpu.pipeline_mode<synchronous>, transform_indices = @transform_8, window_bounds = array<i64: 1, 32>}, {pipeline_mode = #tpu.pipeline_mode<synchronous>, transform_indices = @transform_9, window_bounds = array<i64: 32, 32>}, {pipeline_mode = #tpu.pipeline_mode<synchronous>, transform_indices = @transform_10, window_bounds = array<i64: 1, 32>}, {transform_indices = @transform_11, window_bounds = array<i64: 1, 16, 32>}, {transform_indices = @transform_12, window_bounds = array<i64: 1, 2, 32>}]} {
    %c0_i32 = arith.constant 0 : i32
    %0 = arith.cmpi eq, %arg0, %c0_i32 : i32
    %1 = arith.extui %0 : i1 to i32
    %c0_i32_0 = arith.constant 0 : i32
    %2 = arith.cmpi ne, %1, %c0_i32_0 : i32
    scf.if %2 {
      %c0_52 = arith.constant 0 : index
      %c0_53 = arith.constant 0 : index
      %97 = vector.load %arg2[%c0_52, %c0_53] : memref<16x32xf32, #tpu.memory_space<vmem>>, vector<16x32xf32>
      %c0_54 = arith.constant 0 : index
      %c0_55 = arith.constant 0 : index
      %98 = vector.load %arg14[%c0_54, %c0_55] : memref<16x32xf32, #tpu.memory_space<vmem>>, vector<16x32xf32>
      tpu.vector_store %arg14[%c0_54, %c0_55], %97 {strides = array<i32>} : memref<16x32xf32, #tpu.memory_space<vmem>>, vector<16x32xf32>,
    } else {
    }
    %c0 = arith.constant 0 : index
    %c0_1 = arith.constant 0 : index
    %3 = vector.load %arg1[%c0, %c0_1] : memref<16x16xbf16, #tpu.memory_space<vmem>>, vector<16x16xbf16>
    %4 = arith.extf %3 : vector<16x16xbf16> to vector<16x16xf32>
    %c0_2 = arith.constant 0 : index
    %c0_3 = arith.constant 0 : index
    %5 = vector.load %arg14[%c0_2, %c0_3] : memref<16x32xf32, #tpu.memory_space<vmem>>, vector<16x32xf32>
    %cst = arith.constant dense<0.000000e+00> : vector<16x32xf32>
    %6 = tpu.matmul %4, %5, %cst {dimension_numbers = #tpu.dot_dimension_numbers<[1], [0], [0], [1], [0, 0, 1, 1], [], []>} : vector<16x16xf32>, vector<16x32xf32>, vector<16x32xf32> -> vector<16x32xf32>
    %c0_4 = arith.constant 0 : index
    %c0_5 = arith.constant 0 : index
    %7 = vector.load %arg2[%c0_4, %c0_5] : memref<16x32xf32, #tpu.memory_space<vmem>>, vector<16x32xf32>
    %8 = arith.addf %6, %7 : vector<16x32xf32>
    %c0_6 = arith.constant 0 : index
    %c0_7 = arith.constant 0 : index
    %9 = vector.load %arg14[%c0_6, %c0_7] : memref<16x32xf32, #tpu.memory_space<vmem>>, vector<16x32xf32>
    tpu.vector_store %arg14[%c0_6, %c0_7], %8 {strides = array<i32>} : memref<16x32xf32, #tpu.memory_space<vmem>>, vector<16x32xf32>,
    %c0_8 = arith.constant 0 : index
    %c0_9 = arith.constant 0 : index
    %10 = vector.load %arg6[%c0_8, %c0_9] : memref<32x35xf32, #tpu.memory_space<vmem>>, vector<32x35xf32>
    %cst_10 = arith.constant dense<0.000000e+00> : vector<16x35xf32>
    %11 = tpu.matmul %8, %10, %cst_10 {dimension_numbers = #tpu.dot_dimension_numbers<[1], [0], [0], [1], [0, 0, 1, 1], [], []>} : vector<16x32xf32>, vector<32x35xf32>, vector<16x35xf32> -> vector<16x35xf32>
    %12 = vector.extract_strided_slice %11 {offsets = [0, 0], sizes = [16, 32], strides = [1, 1]} : vector<16x35xf32> to vector<16x32xf32>
    %13 = vector.extract_strided_slice %11 {offsets = [0, 32], sizes = [16, 1], strides = [1, 1]} : vector<16x35xf32> to vector<16x1xf32>
    %14 = vector.extract_strided_slice %11 {offsets = [0, 33], sizes = [16, 1], strides = [1, 1]} : vector<16x35xf32> to vector<16x1xf32>
    %15 = vector.extract_strided_slice %11 {offsets = [0, 34], sizes = [16, 1], strides = [1, 1]} : vector<16x35xf32> to vector<16x1xf32>
    %c0_11 = arith.constant 0 : index
    %c0_12 = arith.constant 0 : index
    %16 = vector.load %arg3[%c0_11, %c0_12] : memref<16x16xbf16, #tpu.memory_space<vmem>>, vector<16x16xbf16>
    %17 = arith.extf %16 : vector<16x16xbf16> to vector<16x16xf32>
    %cst_13 = arith.constant dense<0.000000e+00> : vector<16x1xf32>
    %18 = tpu.matmul %17, %13, %cst_13 {dimension_numbers = #tpu.dot_dimension_numbers<[1], [0], [0], [1], [0, 0, 1, 1], [], []>} : vector<16x16xf32>, vector<16x1xf32>, vector<16x1xf32> -> vector<16x1xf32>
    %19 = arith.addf %18, %14 : vector<16x1xf32>
    %c0_14 = arith.constant 0 : index
    %c0_15 = arith.constant 0 : index
    %20 = vector.load %arg8[%c0_14, %c0_15] : memref<1x1xf32, #tpu.memory_space<vmem>>, vector<1x1xf32>
    %21 = vector.broadcast %20 : vector<1x1xf32> to vector<16x1xf32>
    %22 = arith.addf %19, %21 : vector<16x1xf32>
    %c0_16 = arith.constant 0 : index
    %c0_17 = arith.constant 0 : index
    %23 = vector.load %arg7[%c0_16, %c0_17] : memref<1x32xf32, #tpu.memory_space<vmem>>, vector<1x32xf32>
    %cst_18 = arith.constant dense<0.000000e+00> : vector<1x16xf32>
    %24 = tpu.matmul %23, %8, %cst_18 {dimension_numbers = #tpu.dot_dimension_numbers<[1], [1], [0], [0], [0, 0, 1, 0], [], []>} : vector<1x32xf32>, vector<16x32xf32>, vector<1x16xf32> -> vector<1x16xf32>
    %25 = vector.broadcast %15 : vector<16x1xf32> to vector<16x16xf32>
    %26 = vector.broadcast %24 : vector<1x16xf32> to vector<16x16xf32>
    %27 = arith.addf %25, %26 : vector<16x16xf32>
    %cst_19 = arith.constant 0.000000e+00 : f32
    %28 = vector.broadcast %cst_19 : f32 to vector<16x16xf32>
    %29 = arith.cmpf ogt, %27, %28 : vector<16x16xf32>
    %cst_20 = arith.constant 2.000000e-01 : f32
    %30 = vector.broadcast %cst_20 : f32 to vector<16x16xf32>
    %31 = arith.mulf %30, %27 : vector<16x16xf32>
    %32 = arith.select %29, %27, %31 : vector<16x16xi1>, vector<16x16xf32>
    %33 = tpu.iota {dimensions = array<i32: 0>} : vector<16x16xi32>
    %34 = tpu.iota {dimensions = array<i32: 1>} : vector<16x16xi32>
    %cst_21 = arith.constant 0.000000e+00 : f32
    %35 = vector.broadcast %cst_21 : f32 to vector<16x16xf32>
    %36 = arith.cmpf ogt, %4, %35 : vector<16x16xf32>
    %37 = arith.cmpi eq, %33, %34 : vector<16x16xi32>
    %38 = arith.ori %36, %37 : vector<16x16xi1>
    %cst_22 = arith.constant -1.000000e+30 : f32
    %39 = vector.broadcast %cst_22 : f32 to vector<16x16xf32>
    %40 = arith.select %38, %32, %39 : vector<16x16xi1>, vector<16x16xf32>
    %cst_23 = arith.constant dense<0xFF800000> : vector<16xf32>
    %41 = vector.multi_reduction <maximumf>, %40, %cst_23 [1] : vector<16x16xf32> to vector<16xf32>
    %42 = vector.shape_cast %41 : vector<16xf32> to vector<16x1xf32>
    %43 = vector.broadcast %42 : vector<16x1xf32> to vector<16x16xf32>
    %44 = arith.subf %40, %43 : vector<16x16xf32>
    %45 = math.exp %44 : vector<16x16xf32>
    %cst_24 = arith.constant dense<0.000000e+00> : vector<16xf32>
    %46 = vector.multi_reduction <add>, %45, %cst_24 [1] : vector<16x16xf32> to vector<16xf32>
    %47 = vector.shape_cast %46 : vector<16xf32> to vector<16x1xf32>
    %cst_25 = arith.constant 1.000000e-16 : f32
    %48 = vector.broadcast %cst_25 : f32 to vector<16x1xf32>
    %49 = arith.addf %47, %48 : vector<16x1xf32>
    %50 = tpu.reciprocal %49 {approx = true} : vector<16x1xf32> -> vector<16x1xf32>
    %51 = vector.broadcast %50 : vector<16x1xf32> to vector<16x16xf32>
    %52 = arith.mulf %45, %51 : vector<16x16xf32>
    %cst_26 = arith.constant dense<0.000000e+00> : vector<16x32xf32>
    %53 = tpu.matmul %52, %12, %cst_26 {dimension_numbers = #tpu.dot_dimension_numbers<[1], [0], [0], [1], [0, 0, 1, 1], [], []>} : vector<16x16xf32>, vector<16x32xf32>, vector<16x32xf32> -> vector<16x32xf32>
    %c0_27 = arith.constant 0 : index
    %c0_28 = arith.constant 0 : index
    %54 = vector.load %arg9[%c0_27, %c0_28] : memref<1x32xf32, #tpu.memory_space<vmem>>, vector<1x32xf32>
    %55 = vector.broadcast %54 : vector<1x32xf32> to vector<16x32xf32>
    %56 = arith.addf %53, %55 : vector<16x32xf32>
    %c0_29 = arith.constant 0 : index
    %c0_30 = arith.constant 0 : index
    %57 = vector.load %arg4[%c0_29, %c0_30] : memref<16x2xbf16, #tpu.memory_space<vmem>>, vector<16x2xbf16>
    %cst_31 = arith.constant 0.000000e+00 : bf16
    %58 = vector.broadcast %cst_31 : bf16 to vector<16x2xbf16>
    %59 = arith.cmpf ogt, %57, %58 : vector<16x2xbf16>
    %cst_32 = arith.constant -1.000000e+30 : f32
    %60 = vector.shape_cast %22 : vector<16x1xf32> to vector<16x1xf32>
    %61 = vector.broadcast %60 : vector<16x1xf32> to vector<16x2xf32>
    %62 = vector.broadcast %cst_32 : f32 to vector<16x2xf32>
    %63 = arith.select %59, %61, %62 : vector<16x2xi1>, vector<16x2xf32>
    %cst_33 = arith.constant dense<0xFF800000> : vector<2xf32>
    %64 = vector.multi_reduction <maximumf>, %63, %cst_33 [0] : vector<16x2xf32> to vector<2xf32>
    %65 = vector.shape_cast %64 : vector<2xf32> to vector<1x2xf32>
    %66 = vector.broadcast %65 : vector<1x2xf32> to vector<16x2xf32>
    %67 = arith.subf %63, %66 : vector<16x2xf32>
    %68 = math.exp %67 : vector<16x2xf32>
    %cst_34 = arith.constant 0.000000e+00 : f32
    %69 = vector.broadcast %cst_34 : f32 to vector<16x2xf32>
    %70 = arith.select %59, %68, %69 : vector<16x2xi1>, vector<16x2xf32>
    %cst_35 = arith.constant dense<0.000000e+00> : vector<2xf32>
    %71 = vector.multi_reduction <add>, %70, %cst_35 [0] : vector<16x2xf32> to vector<2xf32>
    %72 = vector.shape_cast %71 : vector<2xf32> to vector<1x2xf32>
    %cst_36 = arith.constant 1.000000e-16 : f32
    %73 = vector.broadcast %cst_36 : f32 to vector<1x2xf32>
    %74 = arith.addf %72, %73 : vector<1x2xf32>
    %75 = tpu.reciprocal %74 {approx = true} : vector<1x2xf32> -> vector<1x2xf32>
    %76 = vector.broadcast %75 : vector<1x2xf32> to vector<16x2xf32>
    %77 = arith.mulf %70, %76 : vector<16x2xf32>
    %cst_37 = arith.constant dense<0.000000e+00> : vector<16xf32>
    %78 = vector.multi_reduction <add>, %77, %cst_37 [1] : vector<16x2xf32> to vector<16xf32>
    %79 = vector.shape_cast %78 : vector<16xf32> to vector<16x1xf32>
    %c0_38 = arith.constant 0 : index
    %c0_39 = arith.constant 0 : index
    %80 = vector.load %arg5[%c0_38, %c0_39] : memref<2x16xbf16, #tpu.memory_space<vmem>>, vector<2x16xbf16>
    %81 = arith.extf %80 : vector<2x16xbf16> to vector<2x16xf32>
    %82 = vector.broadcast %79 : vector<16x1xf32> to vector<16x32xf32>
    %83 = arith.mulf %56, %82 : vector<16x32xf32>
    %cst_40 = arith.constant dense<0.000000e+00> : vector<2x32xf32>
    %84 = tpu.matmul %81, %83, %cst_40 {dimension_numbers = #tpu.dot_dimension_numbers<[1], [0], [0], [1], [0, 0, 1, 1], [], []>} : vector<2x16xf32>, vector<16x32xf32>, vector<2x32xf32> -> vector<2x32xf32>
    %c0_41 = arith.constant 0 : index
    %c0_42 = arith.constant 0 : index
    %85 = vector.load %arg10[%c0_41, %c0_42] : memref<32x32xf32, #tpu.memory_space<vmem>>, vector<32x32xf32>
    %cst_43 = arith.constant dense<0.000000e+00> : vector<2x32xf32>
    %86 = tpu.matmul %84, %85, %cst_43 {dimension_numbers = #tpu.dot_dimension_numbers<[1], [0], [0], [1], [0, 0, 1, 1], [], []>} : vector<2x32xf32>, vector<32x32xf32>, vector<2x32xf32> -> vector<2x32xf32>
    %c0_44 = arith.constant 0 : index
    %c0_45 = arith.constant 0 : index
    %87 = vector.load %arg11[%c0_44, %c0_45] : memref<1x32xf32, #tpu.memory_space<vmem>>, vector<1x32xf32>
    %88 = vector.broadcast %87 : vector<1x32xf32> to vector<2x32xf32>
    %89 = arith.addf %86, %88 : vector<2x32xf32>
    %90 = math.tanh %89 : vector<2x32xf32>
    %c0_46 = arith.constant 0 : index
    %c0_47 = arith.constant 0 : index
    %c0_48 = arith.constant 0 : index
    %91 = vector.load %arg12[%c0_46, %c0_47, %c0_48] : memref<1x16x32xf32, #tpu.memory_space<vmem>>, vector<1x16x32xf32>
    %92 = vector.shape_cast %91 : vector<1x16x32xf32> to vector<16x32xf32>
    %93 = vector.shape_cast %8 : vector<16x32xf32> to vector<1x16x32xf32>
    tpu.vector_store %arg12[%c0_46, %c0_47, %c0_48], %93 {strides = array<i32>} : memref<1x16x32xf32, #tpu.memory_space<vmem>>, vector<1x16x32xf32>,
    %c0_49 = arith.constant 0 : index
    %c0_50 = arith.constant 0 : index
    %c0_51 = arith.constant 0 : index
    %94 = vector.load %arg13[%c0_49, %c0_50, %c0_51] : memref<1x2x32xf32, #tpu.memory_space<vmem>>, vector<1x2x32xf32>
    %95 = vector.shape_cast %94 : vector<1x2x32xf32> to vector<2x32xf32>
    %96 = vector.shape_cast %90 : vector<2x32xf32> to vector<1x2x32xf32>
    tpu.vector_store %arg13[%c0_49, %c0_50, %c0_51], %96 {strides = array<i32>} : memref<1x2x32xf32, #tpu.memory_space<vmem>>, vector<1x2x32xf32>,
    return
  }
  func.func @transform_0(%arg0: i32) -> (i32, i32) {
    %c0_i32 = arith.constant 0 : i32
    %c0_i32_0 = arith.constant 0 : i32
    %c0_i32_1 = arith.constant 0 : i32
    return %c0_i32, %c0_i32_0 : i32, i32
  }
  func.func @transform_1(%arg0: i32) -> (i32, i32) {
    %c0_i32 = arith.constant 0 : i32
    %c0_i32_0 = arith.constant 0 : i32
    %c0_i32_1 = arith.constant 0 : i32
    return %c0_i32, %c0_i32_0 : i32, i32
  }
  func.func @transform_2(%arg0: i32) -> (i32, i32) {
    %c0_i32 = arith.constant 0 : i32
    %c0_i32_0 = arith.constant 0 : i32
    %c0_i32_1 = arith.constant 0 : i32
    return %c0_i32, %c0_i32_0 : i32, i32
  }
  func.func @transform_3(%arg0: i32) -> (i32, i32) {
    %c0_i32 = arith.constant 0 : i32
    %c0_i32_0 = arith.constant 0 : i32
    %c0_i32_1 = arith.constant 0 : i32
    return %c0_i32, %c0_i32_0 : i32, i32
  }
  func.func @transform_4(%arg0: i32) -> (i32, i32) {
    %c0_i32 = arith.constant 0 : i32
    %c0_i32_0 = arith.constant 0 : i32
    %c0_i32_1 = arith.constant 0 : i32
    return %c0_i32, %c0_i32_0 : i32, i32
  }
  func.func @transform_5(%arg0: i32) -> (i32, i32) {
    %c0_i32 = arith.constant 0 : i32
    %c0_i32_0 = arith.constant 0 : i32
    %c0_i32_1 = arith.constant 0 : i32
    return %c0_i32, %c0_i32_0 : i32, i32
  }
  func.func @transform_6(%arg0: i32) -> (i32, i32) {
    %c0_i32 = arith.constant 0 : i32
    %c0_i32_0 = arith.constant 0 : i32
    %c0_i32_1 = arith.constant 0 : i32
    return %c0_i32, %c0_i32_0 : i32, i32
  }
  func.func @transform_7(%arg0: i32) -> (i32, i32) {
    %c0_i32 = arith.constant 0 : i32
    %c0_i32_0 = arith.constant 0 : i32
    %c0_i32_1 = arith.constant 0 : i32
    return %c0_i32, %c0_i32_0 : i32, i32
  }
  func.func @transform_8(%arg0: i32) -> (i32, i32) {
    %c0_i32 = arith.constant 0 : i32
    %c0_i32_0 = arith.constant 0 : i32
    %c0_i32_1 = arith.constant 0 : i32
    return %c0_i32, %c0_i32_0 : i32, i32
  }
  func.func @transform_9(%arg0: i32) -> (i32, i32) {
    %c0_i32 = arith.constant 0 : i32
    %c0_i32_0 = arith.constant 0 : i32
    %c0_i32_1 = arith.constant 0 : i32
    return %c0_i32, %c0_i32_0 : i32, i32
  }
  func.func @transform_10(%arg0: i32) -> (i32, i32) {
    %c0_i32 = arith.constant 0 : i32
    %c0_i32_0 = arith.constant 0 : i32
    %c0_i32_1 = arith.constant 0 : i32
    return %c0_i32, %c0_i32_0 : i32, i32
  }
  func.func @transform_11(%arg0: i32) -> (i32, i32, i32) {
    %c0_i32 = arith.constant 0 : i32
    %c0_i32_0 = arith.constant 0 : i32
    %c0_i32_1 = arith.constant 0 : i32
    return %arg0, %c0_i32, %c0_i32_0 : i32, i32, i32
  }
  func.func @transform_12(%arg0: i32) -> (i32, i32, i32) {
    %c0_i32 = arith.constant 0 : i32
    %c0_i32_0 = arith.constant 0 : i32
    %c0_i32_1 = arith.constant 0 : i32
    return %arg0, %c0_i32, %c0_i32_0 : i32, i32, i32
  }
}

module attributes {stable_mosaic.version = 11 : i64} {
  func.func @_final_kernel(%arg0: memref<10x16xbf16, #tpu.memory_space<vmem>>, %arg1: memref<3x16x32xf32, #tpu.memory_space<vmem>>, %arg2: memref<3x16x1xf32, #tpu.memory_space<vmem>>, %arg3: memref<10x32xf32, #tpu.memory_space<vmem>>, %arg4: memref<1x32xf32, #tpu.memory_space<vmem>>, %arg5: memref<1x32xf32, #tpu.memory_space<vmem>>, %arg6: memref<32x192xf32, #tpu.memory_space<vmem>>, %arg7: memref<1x192xf32, #tpu.memory_space<vmem>>, %arg8: memref<1x192xf32, #tpu.memory_space<vmem>>, %arg9: memref<1x192xf32, #tpu.memory_space<vmem>>, %arg10: memref<1x1xf32, #tpu.memory_space<vmem>>, %arg11: memref<192x192xf32, #tpu.memory_space<vmem>>, %arg12: memref<1x192xf32, #tpu.memory_space<vmem>>, %arg13: memref<1x192xf32, #tpu.memory_space<vmem>>, %arg14: memref<1x192xf32, #tpu.memory_space<vmem>>, %arg15: memref<1x1xf32, #tpu.memory_space<vmem>>, %arg16: memref<192x192xf32, #tpu.memory_space<vmem>>, %arg17: memref<1x192xf32, #tpu.memory_space<vmem>>, %arg18: memref<1x192xf32, #tpu.memory_space<vmem>>, %arg19: memref<1x192xf32, #tpu.memory_space<vmem>>, %arg20: memref<1x1xf32, #tpu.memory_space<vmem>>, %arg21: memref<192x192xf32, #tpu.memory_space<vmem>>, %arg22: memref<1x192xf32, #tpu.memory_space<vmem>>, %arg23: memref<1x192xf32, #tpu.memory_space<vmem>>, %arg24: memref<1x192xf32, #tpu.memory_space<vmem>>, %arg25: memref<1x1xf32, #tpu.memory_space<vmem>>, %arg26: memref<192x32xf32, #tpu.memory_space<vmem>>, %arg27: memref<1x32xf32, #tpu.memory_space<vmem>>, %arg28: memref<10x32xf32, #tpu.memory_space<vmem>>) attributes {dimension_semantics = [], scalar_prefetch = 0 : i64, scratch_operands = 0 : i64, tpu.core_type = #tpu.core_type<tc>} {
    %c0 = arith.constant 0 : index
    %c0_0 = arith.constant 0 : index
    %c0_1 = arith.constant 0 : index
    %0 = vector.load %arg1[%c0, %c0_0, %c0_1] : memref<3x16x32xf32, #tpu.memory_space<vmem>>, vector<1x16x32xf32>
    %1 = vector.shape_cast %0 : vector<1x16x32xf32> to vector<16x32xf32>
    %c0_2 = arith.constant 0 : index
    %c0_3 = arith.constant 0 : index
    %c0_4 = arith.constant 0 : index
    %2 = vector.load %arg2[%c0_2, %c0_3, %c0_4] : memref<3x16x1xf32, #tpu.memory_space<vmem>>, vector<1x16x1xf32>
    %3 = vector.shape_cast %2 : vector<1x16x1xf32> to vector<16x1xf32>
    %4 = vector.broadcast %3 : vector<16x1xf32> to vector<16x32xf32>
    %5 = arith.mulf %1, %4 : vector<16x32xf32>
    %c1 = arith.constant 1 : index
    %c0_5 = arith.constant 0 : index
    %c0_6 = arith.constant 0 : index
    %6 = vector.load %arg1[%c1, %c0_5, %c0_6] : memref<3x16x32xf32, #tpu.memory_space<vmem>>, vector<1x16x32xf32>
    %7 = vector.shape_cast %6 : vector<1x16x32xf32> to vector<16x32xf32>
    %c1_7 = arith.constant 1 : index
    %c0_8 = arith.constant 0 : index
    %c0_9 = arith.constant 0 : index
    %8 = vector.load %arg2[%c1_7, %c0_8, %c0_9] : memref<3x16x1xf32, #tpu.memory_space<vmem>>, vector<1x16x1xf32>
    %9 = vector.shape_cast %8 : vector<1x16x1xf32> to vector<16x1xf32>
    %10 = vector.broadcast %9 : vector<16x1xf32> to vector<16x32xf32>
    %11 = arith.mulf %7, %10 : vector<16x32xf32>
    %12 = arith.addf %5, %11 : vector<16x32xf32>
    %c2 = arith.constant 2 : index
    %c0_10 = arith.constant 0 : index
    %c0_11 = arith.constant 0 : index
    %13 = vector.load %arg1[%c2, %c0_10, %c0_11] : memref<3x16x32xf32, #tpu.memory_space<vmem>>, vector<1x16x32xf32>
    %14 = vector.shape_cast %13 : vector<1x16x32xf32> to vector<16x32xf32>
    %c2_12 = arith.constant 2 : index
    %c0_13 = arith.constant 0 : index
    %c0_14 = arith.constant 0 : index
    %15 = vector.load %arg2[%c2_12, %c0_13, %c0_14] : memref<3x16x1xf32, #tpu.memory_space<vmem>>, vector<1x16x1xf32>
    %16 = vector.shape_cast %15 : vector<1x16x1xf32> to vector<16x1xf32>
    %17 = vector.broadcast %16 : vector<16x1xf32> to vector<16x32xf32>
    %18 = arith.mulf %14, %17 : vector<16x32xf32>
    %19 = arith.addf %12, %18 : vector<16x32xf32>
    %c0_15 = arith.constant 0 : index
    %c0_16 = arith.constant 0 : index
    %20 = vector.load %arg0[%c0_15, %c0_16] : memref<10x16xbf16, #tpu.memory_space<vmem>>, vector<10x16xbf16>
    %21 = arith.extf %20 : vector<10x16xbf16> to vector<10x16xf32>
    %cst = arith.constant dense<0.000000e+00> : vector<10x32xf32>
    %22 = tpu.matmul %21, %19, %cst {dimension_numbers = #tpu.dot_dimension_numbers<[1], [0], [0], [1], [0, 0, 1, 1], [], []>} : vector<10x16xf32>, vector<16x32xf32>, vector<10x32xf32> -> vector<10x32xf32>
    %c0_17 = arith.constant 0 : index
    %c0_18 = arith.constant 0 : index
    %23 = vector.load %arg3[%c0_17, %c0_18] : memref<10x32xf32, #tpu.memory_space<vmem>>, vector<10x32xf32>
    %24 = arith.addf %22, %23 : vector<10x32xf32>
    %cst_19 = arith.constant dense<0.000000e+00> : vector<32xf32>
    %25 = vector.multi_reduction <add>, %24, %cst_19 [0] : vector<10x32xf32> to vector<32xf32>
    %26 = vector.shape_cast %25 : vector<32xf32> to vector<1x32xf32>
    %cst_20 = arith.constant 1.000000e+01 : f32
    %27 = vector.broadcast %cst_20 : f32 to vector<1x32xf32>
    %28 = arith.divf %26, %27 : vector<1x32xf32>
    %29 = vector.broadcast %28 : vector<1x32xf32> to vector<10x32xf32>
    %30 = arith.subf %24, %29 : vector<10x32xf32>
    %31 = arith.mulf %30, %30 : vector<10x32xf32>
    %cst_21 = arith.constant dense<0.000000e+00> : vector<32xf32>
    %32 = vector.multi_reduction <add>, %31, %cst_21 [0] : vector<10x32xf32> to vector<32xf32>
    %33 = vector.shape_cast %32 : vector<32xf32> to vector<1x32xf32>
    %cst_22 = arith.constant 1.000000e+01 : f32
    %34 = vector.broadcast %cst_22 : f32 to vector<1x32xf32>
    %35 = arith.divf %33, %34 : vector<1x32xf32>
    %36 = vector.broadcast %28 : vector<1x32xf32> to vector<10x32xf32>
    %37 = arith.subf %24, %36 : vector<10x32xf32>
    %cst_23 = arith.constant 9.99999974E-6 : f32
    %38 = vector.broadcast %cst_23 : f32 to vector<1x32xf32>
    %39 = arith.addf %35, %38 : vector<1x32xf32>
    %40 = math.rsqrt %39 : vector<1x32xf32>
    %41 = vector.broadcast %40 : vector<1x32xf32> to vector<10x32xf32>
    %42 = arith.mulf %37, %41 : vector<10x32xf32>
    %c0_24 = arith.constant 0 : index
    %c0_25 = arith.constant 0 : index
    %43 = vector.load %arg4[%c0_24, %c0_25] : memref<1x32xf32, #tpu.memory_space<vmem>>, vector<1x32xf32>
    %44 = vector.broadcast %43 : vector<1x32xf32> to vector<10x32xf32>
    %45 = arith.mulf %42, %44 : vector<10x32xf32>
    %c0_26 = arith.constant 0 : index
    %c0_27 = arith.constant 0 : index
    %46 = vector.load %arg5[%c0_26, %c0_27] : memref<1x32xf32, #tpu.memory_space<vmem>>, vector<1x32xf32>
    %47 = vector.broadcast %46 : vector<1x32xf32> to vector<10x32xf32>
    %48 = arith.addf %45, %47 : vector<10x32xf32>
    %c0_28 = arith.constant 0 : index
    %c0_29 = arith.constant 0 : index
    %49 = vector.load %arg6[%c0_28, %c0_29] : memref<32x192xf32, #tpu.memory_space<vmem>>, vector<32x192xf32>
    %cst_30 = arith.constant dense<0.000000e+00> : vector<10x192xf32>
    %50 = tpu.matmul %48, %49, %cst_30 {dimension_numbers = #tpu.dot_dimension_numbers<[1], [0], [0], [1], [0, 0, 1, 1], [], []>} : vector<10x32xf32>, vector<32x192xf32>, vector<10x192xf32> -> vector<10x192xf32>
    %c0_31 = arith.constant 0 : index
    %c0_32 = arith.constant 0 : index
    %51 = vector.load %arg7[%c0_31, %c0_32] : memref<1x192xf32, #tpu.memory_space<vmem>>, vector<1x192xf32>
    %52 = vector.broadcast %51 : vector<1x192xf32> to vector<10x192xf32>
    %53 = arith.addf %50, %52 : vector<10x192xf32>
    %cst_33 = arith.constant dense<0.000000e+00> : vector<192xf32>
    %54 = vector.multi_reduction <add>, %53, %cst_33 [0] : vector<10x192xf32> to vector<192xf32>
    %55 = vector.shape_cast %54 : vector<192xf32> to vector<1x192xf32>
    %cst_34 = arith.constant 1.000000e+01 : f32
    %56 = vector.broadcast %cst_34 : f32 to vector<1x192xf32>
    %57 = arith.divf %55, %56 : vector<1x192xf32>
    %58 = vector.broadcast %57 : vector<1x192xf32> to vector<10x192xf32>
    %59 = arith.subf %53, %58 : vector<10x192xf32>
    %60 = arith.mulf %59, %59 : vector<10x192xf32>
    %cst_35 = arith.constant dense<0.000000e+00> : vector<192xf32>
    %61 = vector.multi_reduction <add>, %60, %cst_35 [0] : vector<10x192xf32> to vector<192xf32>
    %62 = vector.shape_cast %61 : vector<192xf32> to vector<1x192xf32>
    %cst_36 = arith.constant 1.000000e+01 : f32
    %63 = vector.broadcast %cst_36 : f32 to vector<1x192xf32>
    %64 = arith.divf %62, %63 : vector<1x192xf32>
    %65 = vector.broadcast %57 : vector<1x192xf32> to vector<10x192xf32>
    %66 = arith.subf %53, %65 : vector<10x192xf32>
    %cst_37 = arith.constant 9.99999974E-6 : f32
    %67 = vector.broadcast %cst_37 : f32 to vector<1x192xf32>
    %68 = arith.addf %64, %67 : vector<1x192xf32>
    %69 = math.rsqrt %68 : vector<1x192xf32>
    %70 = vector.broadcast %69 : vector<1x192xf32> to vector<10x192xf32>
    %71 = arith.mulf %66, %70 : vector<10x192xf32>
    %c0_38 = arith.constant 0 : index
    %c0_39 = arith.constant 0 : index
    %72 = vector.load %arg8[%c0_38, %c0_39] : memref<1x192xf32, #tpu.memory_space<vmem>>, vector<1x192xf32>
    %73 = vector.broadcast %72 : vector<1x192xf32> to vector<10x192xf32>
    %74 = arith.mulf %71, %73 : vector<10x192xf32>
    %c0_40 = arith.constant 0 : index
    %c0_41 = arith.constant 0 : index
    %75 = vector.load %arg9[%c0_40, %c0_41] : memref<1x192xf32, #tpu.memory_space<vmem>>, vector<1x192xf32>
    %76 = vector.broadcast %75 : vector<1x192xf32> to vector<10x192xf32>
    %77 = arith.addf %74, %76 : vector<10x192xf32>
    %cst_42 = arith.constant 0.000000e+00 : f32
    %78 = vector.broadcast %cst_42 : f32 to vector<10x192xf32>
    %79 = arith.cmpf ogt, %77, %78 : vector<10x192xf32>
    %c0_43 = arith.constant 0 : index
    %c0_44 = arith.constant 0 : index
    %80 = vector.load %arg10[%c0_43, %c0_44] : memref<1x1xf32, #tpu.memory_space<vmem>>, vector<1x1xf32>
    %81 = vector.broadcast %80 : vector<1x1xf32> to vector<10x192xf32>
    %82 = arith.mulf %81, %77 : vector<10x192xf32>
    %83 = arith.select %79, %77, %82 : vector<10x192xi1>, vector<10x192xf32>
    %c0_45 = arith.constant 0 : index
    %c0_46 = arith.constant 0 : index
    %84 = vector.load %arg11[%c0_45, %c0_46] : memref<192x192xf32, #tpu.memory_space<vmem>>, vector<192x192xf32>
    %cst_47 = arith.constant dense<0.000000e+00> : vector<10x192xf32>
    %85 = tpu.matmul %83, %84, %cst_47 {dimension_numbers = #tpu.dot_dimension_numbers<[1], [0], [0], [1], [0, 0, 1, 1], [], []>} : vector<10x192xf32>, vector<192x192xf32>, vector<10x192xf32> -> vector<10x192xf32>
    %c0_48 = arith.constant 0 : index
    %c0_49 = arith.constant 0 : index
    %86 = vector.load %arg12[%c0_48, %c0_49] : memref<1x192xf32, #tpu.memory_space<vmem>>, vector<1x192xf32>
    %87 = vector.broadcast %86 : vector<1x192xf32> to vector<10x192xf32>
    %88 = arith.addf %85, %87 : vector<10x192xf32>
    %cst_50 = arith.constant dense<0.000000e+00> : vector<192xf32>
    %89 = vector.multi_reduction <add>, %88, %cst_50 [0] : vector<10x192xf32> to vector<192xf32>
    %90 = vector.shape_cast %89 : vector<192xf32> to vector<1x192xf32>
    %cst_51 = arith.constant 1.000000e+01 : f32
    %91 = vector.broadcast %cst_51 : f32 to vector<1x192xf32>
    %92 = arith.divf %90, %91 : vector<1x192xf32>
    %93 = vector.broadcast %92 : vector<1x192xf32> to vector<10x192xf32>
    %94 = arith.subf %88, %93 : vector<10x192xf32>
    %95 = arith.mulf %94, %94 : vector<10x192xf32>
    %cst_52 = arith.constant dense<0.000000e+00> : vector<192xf32>
    %96 = vector.multi_reduction <add>, %95, %cst_52 [0] : vector<10x192xf32> to vector<192xf32>
    %97 = vector.shape_cast %96 : vector<192xf32> to vector<1x192xf32>
    %cst_53 = arith.constant 1.000000e+01 : f32
    %98 = vector.broadcast %cst_53 : f32 to vector<1x192xf32>
    %99 = arith.divf %97, %98 : vector<1x192xf32>
    %100 = vector.broadcast %92 : vector<1x192xf32> to vector<10x192xf32>
    %101 = arith.subf %88, %100 : vector<10x192xf32>
    %cst_54 = arith.constant 9.99999974E-6 : f32
    %102 = vector.broadcast %cst_54 : f32 to vector<1x192xf32>
    %103 = arith.addf %99, %102 : vector<1x192xf32>
    %104 = math.rsqrt %103 : vector<1x192xf32>
    %105 = vector.broadcast %104 : vector<1x192xf32> to vector<10x192xf32>
    %106 = arith.mulf %101, %105 : vector<10x192xf32>
    %c0_55 = arith.constant 0 : index
    %c0_56 = arith.constant 0 : index
    %107 = vector.load %arg13[%c0_55, %c0_56] : memref<1x192xf32, #tpu.memory_space<vmem>>, vector<1x192xf32>
    %108 = vector.broadcast %107 : vector<1x192xf32> to vector<10x192xf32>
    %109 = arith.mulf %106, %108 : vector<10x192xf32>
    %c0_57 = arith.constant 0 : index
    %c0_58 = arith.constant 0 : index
    %110 = vector.load %arg14[%c0_57, %c0_58] : memref<1x192xf32, #tpu.memory_space<vmem>>, vector<1x192xf32>
    %111 = vector.broadcast %110 : vector<1x192xf32> to vector<10x192xf32>
    %112 = arith.addf %109, %111 : vector<10x192xf32>
    %cst_59 = arith.constant 0.000000e+00 : f32
    %113 = vector.broadcast %cst_59 : f32 to vector<10x192xf32>
    %114 = arith.cmpf ogt, %112, %113 : vector<10x192xf32>
    %c0_60 = arith.constant 0 : index
    %c0_61 = arith.constant 0 : index
    %115 = vector.load %arg15[%c0_60, %c0_61] : memref<1x1xf32, #tpu.memory_space<vmem>>, vector<1x1xf32>
    %116 = vector.broadcast %115 : vector<1x1xf32> to vector<10x192xf32>
    %117 = arith.mulf %116, %112 : vector<10x192xf32>
    %118 = arith.select %114, %112, %117 : vector<10x192xi1>, vector<10x192xf32>
    %c0_62 = arith.constant 0 : index
    %c0_63 = arith.constant 0 : index
    %119 = vector.load %arg16[%c0_62, %c0_63] : memref<192x192xf32, #tpu.memory_space<vmem>>, vector<192x192xf32>
    %cst_64 = arith.constant dense<0.000000e+00> : vector<10x192xf32>
    %120 = tpu.matmul %118, %119, %cst_64 {dimension_numbers = #tpu.dot_dimension_numbers<[1], [0], [0], [1], [0, 0, 1, 1], [], []>} : vector<10x192xf32>, vector<192x192xf32>, vector<10x192xf32> -> vector<10x192xf32>
    %c0_65 = arith.constant 0 : index
    %c0_66 = arith.constant 0 : index
    %121 = vector.load %arg17[%c0_65, %c0_66] : memref<1x192xf32, #tpu.memory_space<vmem>>, vector<1x192xf32>
    %122 = vector.broadcast %121 : vector<1x192xf32> to vector<10x192xf32>
    %123 = arith.addf %120, %122 : vector<10x192xf32>
    %124 = arith.addf %123, %53 : vector<10x192xf32>
    %cst_67 = arith.constant 5.000000e-01 : f32
    %125 = vector.broadcast %cst_67 : f32 to vector<10x192xf32>
    %126 = arith.mulf %124, %125 : vector<10x192xf32>
    %cst_68 = arith.constant dense<0.000000e+00> : vector<192xf32>
    %127 = vector.multi_reduction <add>, %126, %cst_68 [0] : vector<10x192xf32> to vector<192xf32>
    %128 = vector.shape_cast %127 : vector<192xf32> to vector<1x192xf32>
    %cst_69 = arith.constant 1.000000e+01 : f32
    %129 = vector.broadcast %cst_69 : f32 to vector<1x192xf32>
    %130 = arith.divf %128, %129 : vector<1x192xf32>
    %131 = vector.broadcast %130 : vector<1x192xf32> to vector<10x192xf32>
    %132 = arith.subf %126, %131 : vector<10x192xf32>
    %133 = arith.mulf %132, %132 : vector<10x192xf32>
    %cst_70 = arith.constant dense<0.000000e+00> : vector<192xf32>
    %134 = vector.multi_reduction <add>, %133, %cst_70 [0] : vector<10x192xf32> to vector<192xf32>
    %135 = vector.shape_cast %134 : vector<192xf32> to vector<1x192xf32>
    %cst_71 = arith.constant 1.000000e+01 : f32
    %136 = vector.broadcast %cst_71 : f32 to vector<1x192xf32>
    %137 = arith.divf %135, %136 : vector<1x192xf32>
    %138 = vector.broadcast %130 : vector<1x192xf32> to vector<10x192xf32>
    %139 = arith.subf %126, %138 : vector<10x192xf32>
    %cst_72 = arith.constant 9.99999974E-6 : f32
    %140 = vector.broadcast %cst_72 : f32 to vector<1x192xf32>
    %141 = arith.addf %137, %140 : vector<1x192xf32>
    %142 = math.rsqrt %141 : vector<1x192xf32>
    %143 = vector.broadcast %142 : vector<1x192xf32> to vector<10x192xf32>
    %144 = arith.mulf %139, %143 : vector<10x192xf32>
    %c0_73 = arith.constant 0 : index
    %c0_74 = arith.constant 0 : index
    %145 = vector.load %arg18[%c0_73, %c0_74] : memref<1x192xf32, #tpu.memory_space<vmem>>, vector<1x192xf32>
    %146 = vector.broadcast %145 : vector<1x192xf32> to vector<10x192xf32>
    %147 = arith.mulf %144, %146 : vector<10x192xf32>
    %c0_75 = arith.constant 0 : index
    %c0_76 = arith.constant 0 : index
    %148 = vector.load %arg19[%c0_75, %c0_76] : memref<1x192xf32, #tpu.memory_space<vmem>>, vector<1x192xf32>
    %149 = vector.broadcast %148 : vector<1x192xf32> to vector<10x192xf32>
    %150 = arith.addf %147, %149 : vector<10x192xf32>
    %cst_77 = arith.constant 0.000000e+00 : f32
    %151 = vector.broadcast %cst_77 : f32 to vector<10x192xf32>
    %152 = arith.cmpf ogt, %150, %151 : vector<10x192xf32>
    %c0_78 = arith.constant 0 : index
    %c0_79 = arith.constant 0 : index
    %153 = vector.load %arg20[%c0_78, %c0_79] : memref<1x1xf32, #tpu.memory_space<vmem>>, vector<1x1xf32>
    %154 = vector.broadcast %153 : vector<1x1xf32> to vector<10x192xf32>
    %155 = arith.mulf %154, %150 : vector<10x192xf32>
    %156 = arith.select %152, %150, %155 : vector<10x192xi1>, vector<10x192xf32>
    %c0_80 = arith.constant 0 : index
    %c0_81 = arith.constant 0 : index
    %157 = vector.load %arg21[%c0_80, %c0_81] : memref<192x192xf32, #tpu.memory_space<vmem>>, vector<192x192xf32>
    %cst_82 = arith.constant dense<0.000000e+00> : vector<10x192xf32>
    %158 = tpu.matmul %156, %157, %cst_82 {dimension_numbers = #tpu.dot_dimension_numbers<[1], [0], [0], [1], [0, 0, 1, 1], [], []>} : vector<10x192xf32>, vector<192x192xf32>, vector<10x192xf32> -> vector<10x192xf32>
    %c0_83 = arith.constant 0 : index
    %c0_84 = arith.constant 0 : index
    %159 = vector.load %arg22[%c0_83, %c0_84] : memref<1x192xf32, #tpu.memory_space<vmem>>, vector<1x192xf32>
    %160 = vector.broadcast %159 : vector<1x192xf32> to vector<10x192xf32>
    %161 = arith.addf %158, %160 : vector<10x192xf32>
    %162 = arith.addf %161, %126 : vector<10x192xf32>
    %cst_85 = arith.constant 5.000000e-01 : f32
    %163 = vector.broadcast %cst_85 : f32 to vector<10x192xf32>
    %164 = arith.mulf %162, %163 : vector<10x192xf32>
    %cst_86 = arith.constant dense<0.000000e+00> : vector<192xf32>
    %165 = vector.multi_reduction <add>, %164, %cst_86 [0] : vector<10x192xf32> to vector<192xf32>
    %166 = vector.shape_cast %165 : vector<192xf32> to vector<1x192xf32>
    %cst_87 = arith.constant 1.000000e+01 : f32
    %167 = vector.broadcast %cst_87 : f32 to vector<1x192xf32>
    %168 = arith.divf %166, %167 : vector<1x192xf32>
    %169 = vector.broadcast %168 : vector<1x192xf32> to vector<10x192xf32>
    %170 = arith.subf %164, %169 : vector<10x192xf32>
    %171 = arith.mulf %170, %170 : vector<10x192xf32>
    %cst_88 = arith.constant dense<0.000000e+00> : vector<192xf32>
    %172 = vector.multi_reduction <add>, %171, %cst_88 [0] : vector<10x192xf32> to vector<192xf32>
    %173 = vector.shape_cast %172 : vector<192xf32> to vector<1x192xf32>
    %cst_89 = arith.constant 1.000000e+01 : f32
    %174 = vector.broadcast %cst_89 : f32 to vector<1x192xf32>
    %175 = arith.divf %173, %174 : vector<1x192xf32>
    %176 = vector.broadcast %168 : vector<1x192xf32> to vector<10x192xf32>
    %177 = arith.subf %164, %176 : vector<10x192xf32>
    %cst_90 = arith.constant 9.99999974E-6 : f32
    %178 = vector.broadcast %cst_90 : f32 to vector<1x192xf32>
    %179 = arith.addf %175, %178 : vector<1x192xf32>
    %180 = math.rsqrt %179 : vector<1x192xf32>
    %181 = vector.broadcast %180 : vector<1x192xf32> to vector<10x192xf32>
    %182 = arith.mulf %177, %181 : vector<10x192xf32>
    %c0_91 = arith.constant 0 : index
    %c0_92 = arith.constant 0 : index
    %183 = vector.load %arg23[%c0_91, %c0_92] : memref<1x192xf32, #tpu.memory_space<vmem>>, vector<1x192xf32>
    %184 = vector.broadcast %183 : vector<1x192xf32> to vector<10x192xf32>
    %185 = arith.mulf %182, %184 : vector<10x192xf32>
    %c0_93 = arith.constant 0 : index
    %c0_94 = arith.constant 0 : index
    %186 = vector.load %arg24[%c0_93, %c0_94] : memref<1x192xf32, #tpu.memory_space<vmem>>, vector<1x192xf32>
    %187 = vector.broadcast %186 : vector<1x192xf32> to vector<10x192xf32>
    %188 = arith.addf %185, %187 : vector<10x192xf32>
    %cst_95 = arith.constant 0.000000e+00 : f32
    %189 = vector.broadcast %cst_95 : f32 to vector<10x192xf32>
    %190 = arith.cmpf ogt, %188, %189 : vector<10x192xf32>
    %c0_96 = arith.constant 0 : index
    %c0_97 = arith.constant 0 : index
    %191 = vector.load %arg25[%c0_96, %c0_97] : memref<1x1xf32, #tpu.memory_space<vmem>>, vector<1x1xf32>
    %192 = vector.broadcast %191 : vector<1x1xf32> to vector<10x192xf32>
    %193 = arith.mulf %192, %188 : vector<10x192xf32>
    %194 = arith.select %190, %188, %193 : vector<10x192xi1>, vector<10x192xf32>
    %c0_98 = arith.constant 0 : index
    %c0_99 = arith.constant 0 : index
    %195 = vector.load %arg26[%c0_98, %c0_99] : memref<192x32xf32, #tpu.memory_space<vmem>>, vector<192x32xf32>
    %cst_100 = arith.constant dense<0.000000e+00> : vector<10x32xf32>
    %196 = tpu.matmul %194, %195, %cst_100 {dimension_numbers = #tpu.dot_dimension_numbers<[1], [0], [0], [1], [0, 0, 1, 1], [], []>} : vector<10x192xf32>, vector<192x32xf32>, vector<10x32xf32> -> vector<10x32xf32>
    %c0_101 = arith.constant 0 : index
    %c0_102 = arith.constant 0 : index
    %197 = vector.load %arg27[%c0_101, %c0_102] : memref<1x32xf32, #tpu.memory_space<vmem>>, vector<1x32xf32>
    %198 = vector.broadcast %197 : vector<1x32xf32> to vector<10x32xf32>
    %199 = arith.addf %196, %198 : vector<10x32xf32>
    %c0_103 = arith.constant 0 : index
    %c0_104 = arith.constant 0 : index
    %200 = vector.load %arg28[%c0_103, %c0_104] : memref<10x32xf32, #tpu.memory_space<vmem>>, vector<10x32xf32>
    tpu.vector_store %arg28[%c0_103, %c0_104], %199 {strides = array<i32>} : memref<10x32xf32, #tpu.memory_space<vmem>>, vector<10x32xf32>,
    return
  }
}

</mosaic_0001>

<bundles_post_ra>
// kernel: gsp_dmpnn_forward.3
= control target key start
LH: loop header
LB: loop body
LE: loop exit
PB: predicated region body
PF: predicated region fallthrough
CT: control target
= control target key end

     0   :  { %vm32_vm0 = vcmask 261120   ;;  %vm92_vm1 = vcmask 64512   ;;  %vm137_vm2 = vcmask 1041408   ;;  %vm130_vm3 = vcmask 80896   ;;  %s322_s4 = inlined_call_operand.vmem [shape: f32[32,32], index: 4, kind: input, shape index: {}]   ;;  %s323_s5 = inlined_call_operand.vmem [shape: f32[32,32], index: 5, kind: input, shape index: {}]   ;;  %s324_s2 = inlined_call_operand.vmem [shape: f32[10,32], index: 2, kind: input, shape index: {}]   ;;  %s325_s6 = inlined_call_operand.vmem [shape: f32[8,32], index: 6, kind: input, shape index: {}]   ;;  %s326_s3 = inlined_call_operand.vmem [shape: f32[16,8], index: 3, kind: input, shape index: {}]   ;;  %s327_s1 = inlined_call_operand.vmem [shape: bf16[16,10], index: 1, kind: input, shape index: {}]   ;;  %s328_s0 = inlined_call_operand.vmem [shape: bf16[16,10], index: 0, kind: input, shape index: {}]   ;;  %s329_s7 = inlined_call_operand.vmem [shape: f32[16,32], index: 7, kind: output, shape index: {}]  }
   0x1   :  { %v31_v0 = vld [vmem:[%s322_s4 + $0x18] sm:$0xff]  ;;  %v30_v2 = vld [vmem:[%s322_s4 + $0x10] sm:$0xff]  ;;  %v29_v4 = vld [vmem:[%s322_s4 + $0x8] sm:$0xff] }
   0x2   :  { %v65_v1 = vld [vmem:[%s323_s5 + $0x18] sm:$0xff]  ;;  %51 = vmatpush.msra.mxu0 %v31_v0  ;;  %v64_v3 = vld [vmem:[%s323_s5 + $0x10] sm:$0xff]  ;;  %v63_v5 = vld [vmem:[%s323_s5 + $0x8] sm:$0xff] }
   0x3   :  { %78 = vmatpush.msra.mxu1 %v65_v1  ;;  %v28_v6 = vld [vmem:[%s322_s4] sm:$0xff]  ;;  %v27_v9 = vld [vmem:[%s324_s2 + $0x8] sm:$0x3] }
   0x4   :  { %52 = vmatpush.msra.mxu0 %v30_v2  ;;  %v62_v7 = vld [vmem:[%s323_s5] sm:$0xff]  ;;  %v90_v12 = vld [vmem:[%s326_s3 + $0x8] sm:$0xff] }
   0x5   :  { %79 = vmatpush.msra.mxu1 %v64_v3  ;;  %v26_v8 = vld [vmem:[%s324_s2] sm:$0xff] }
   0x6   :  { %53 = vmatpush.msra.mxu0 %v29_v4  ;;  %v91_v10 = vld [vmem:[%s325_s6] sm:$0xff] }
   0x7   :  { %80 = vmatpush.msra.mxu1 %v63_v5  ;;  %v89_v11 = vld [vmem:[%s326_s3] sm:$0xff]  ;;  %114 = vmatpush.msra.mxu2 %v91_v10 }
   0x8   :  { %54 = vmatpush.msra.mxu0 %v28_v6  ;;  %224 = vmatpush.msra.mxu3 %v91_v10  ;;  %v221_v15 = vld [vmem:[%s327_s1] sm:$0xff]  }
   0x9   :  { %81 = vmatpush.msra.mxu1 %v62_v7  ;;  %204 = vmatmul.msk.f32.vlgmr.msra.gmra.mxu0 %vm32_vm0, %v26_v8  ;;  %v217_v16 = vld [vmem:[%s328_s0] sm:$0xff]   ;;  %v222_v19 = vunpack.c.l.bf16 %v221_v15  ;;  %v223_v21 = vunpack.c.h.bf16 %v221_v15 }
   0xa   :  { %206 = vmatmul.msk.f32.vlgmr.msra.gmra.mxu1 %vm32_vm0, %v26_v8  ;;  %208 = vmatmul.msk.f32.vlgmr.msra.gmra.mxu2 %vm92_vm1, %v89_v11  ;;  %v218_v20 = vunpack.c.l.bf16 %v217_v16  ;;  %v219_v22 = vunpack.c.h.bf16 %v217_v16 }
   0xb   :  { %209 = vmatmul.msk.f32.vlgmr.msra.gmra.mxu3 %vm92_vm1, %v90_v12 }
  0x11   :  { %205 = vmatmul.msk.f32.gmra.mxu0 %vm32_vm0, %v27_v9 }
  0x12   :  { %207 = vmatmul.msk.f32.gmra.mxu1 %vm32_vm0, %v27_v9 }
  0x86   :  { %v56_v13 = vpop.f32.mrf.mxu0 }
  0x87   :  { %v83_v14 = vpop.f32.mrf.mxu1 }
  0x8d   :  { %v116_v23 = vpop.f32.mrf.mxu2 }
  0x8e   :  { %v59_v17 = vpop.f32.mrf.mxu0  ;;  %v119_v24 = vpop.f32.mrf.mxu3 }
  0x8f   :  { %v86_v18 = vpop.f32.mrf.mxu1  ;;  %213 = vmatpush.msk.msrb.mxu2 %vm137_vm2, %v59_v17 }
  0x90   :  { %210 = vmatpush.msk.msrb.mxu3 %vm137_vm2, %v86_v18 }
  0x91   :  { %188 = vmatpush.msrb.mxu2 %v56_v13 }
  0x92   :  { %156 = vmatpush.msrb.mxu3 %v83_v14  ;;  %214 = vmatmul.msk.f32.vlgmr.msrb.gmra.mxu2 %vm130_vm3, %v218_v20 }
  0x93   :  { %211 = vmatmul.msk.f32.vlgmr.msrb.gmra.mxu3 %vm130_vm3, %v222_v19 }
  0x9a   :  { %215 = vmatmul.msk.f32.gmra.mxu2 %vm130_vm3, %v219_v22 }
  0x9b   :  { %212 = vmatmul.msk.f32.gmra.mxu3 %vm130_vm3, %v223_v21 }
 0x115   :  { %v190_v26 = vpop.f32.mrf.mxu2 }
 0x116   :  { %v158_v25 = vpop.f32.mrf.mxu3 }
 0x117   :  { %v191_v27 = vadd.f32 %v190_v26, %v158_v25 }
 0x119   :  { %v196_v28 = vadd.f32 %v191_v27, %v116_v23 }
 0x11b   :  { %198 = vst.msk [vmem:[%s329_s7] sm:$0xff] %vm32_vm0, %v196_v28 }
 0x11d   :  { %v193_v30 = vpop.f32.mrf.mxu2 }
 0x11e   :  { %v161_v29 = vpop.f32.mrf.mxu3 }
 0x11f   :  { %v194_v31 = vadd.f32 %v193_v30, %v161_v29 }
 0x121   :  { %v197_v32 = vadd.f32 %v194_v31, %v119_v24 }
 0x123   :  { %199 = vst.msk [vmem:[%s329_s7 + $0x8] sm:$0xff] %vm32_vm0, %v197_v32 }

// kernel: gsp_dmpnn_forward.4
= control target key start
LH: loop header
LB: loop body
LE: loop exit
PB: predicated region body
PF: predicated region fallthrough
CT: control target
= control target key end

     0   :  { %s1001_s23 = smov 0   ;;  %s1141_s0 = inlined_call_operand.vmem [shape: bf16[16,16], index: 0, kind: input, shape index: {}]   ;;  %s1142_s1 = inlined_call_operand.vmem [shape: f32[16,32], index: 1, kind: input, shape index: {}]   ;;  %s1143_s2 = inlined_call_operand.vmem [shape: bf16[16,16], index: 2, kind: input, shape index: {}]   ;;  %s1144_s3 = inlined_call_operand.vmem [shape: bf16[16,2], index: 3, kind: input, shape index: {}]   ;;  %s1145_s4 = inlined_call_operand.vmem [shape: bf16[2,16], index: 4, kind: input, shape index: {}]   ;;  %s1146_s5 = inlined_call_operand.vmem [shape: f32[32,35], index: 5, kind: input, shape index: {}]   ;;  %s1147_s6 = inlined_call_operand.vmem [shape: f32[1,32], index: 6, kind: input, shape index: {}]   ;;  %s1148_s7 = inlined_call_operand.<no memory space> [shape: f32[1,1], index: 7, kind: input, shape index: {}]   ;;  %s1149_s8 = inlined_call_operand.vmem [shape: f32[1,32], index: 8, kind: input, shape index: {}]   ;;  %s1150_s9 = inlined_call_operand.vmem [shape: f32[32,32], index: 9, kind: input, shape index: {}]   ;;  %s1151_s10 = inlined_call_operand.vmem [shape: f32[1,32], index: 10, kind: input, shape index: {}]   ;;  %s1152_s11 = inlined_call_operand.vmem [shape: f32[3,16,32], index: 11, kind: output, shape index: {0}]   ;;  %s1153_s12 = inlined_call_operand.vmem [shape: f32[3,2,32], index: 12, kind: output, shape index: {1}]  }
   0x1   :  { %v18_v0 = vstv %s1148_s7 }
   0x2   :  { %19 = vst [vmem:[#allocation3] sm:$0x1] %v18_v0 }
   0x3 LB: > { %s846_s24 = sadd.s32 4294967295, %s927_s23   ;;  %p849_p0 = scmp.ge.s32.totalorder %s927_s23, 1  ;;  %s927_s23 = sphi %s1001_s23, %s25_s23  }
   0x4   : > { %p357_p1 = scmp.lt.s32.totalorder %s927_s23, 4 }
   0x6   : > { %p358_p2 = pnand %p849_p0, %p357_p1 }
   0x7   : > { %p398_p3 = scmp.lt.s32.totalorder (!%p358_p2), %s846_s24, 2  ;;  %p853_p4 = scmp.ne.s32.totalorder (!%p358_p2), %s846_s24, 0 }
   0x8   : > { %361 = sbr.rel (%p358_p2) target bundleno = 1250 (0x4e2), region = 64 }
   0xd   : > { %s399_s25 = scalar_select %p398_p3, %s846_s24, 2 }
   0xe   : > { %410 = sbr.rel (%p853_p4) target bundleno = 22 (0x16), region = 68 }
   0xf   : > { %s869_s26 = sshll.u32 %s399_s25, 4  ;;  %s852_s7 = sshll.u32 %s399_s25, 1 }
  0x10   : > { %s1012_s29 = scalar_lea.vmem %s1152_s11, %s869_s26  ;;  %s1017_s14 = scalar_lea.vmem %s1153_s12, %s852_s7 }
  0x13   : > { %v411_v1 = vld [vmem:[%s1142_s1] sm:$0xff]  ;;  %vm413_vm0 = vcmask 261120   ;;  %v412_v2 = vld [vmem:[%s1142_s1 + $0x8] sm:$0xff] }
  0x14   : > { %414 = vst.msk [vmem:[#allocation2] sm:$0xff] %vm413_vm0, %v411_v1 }
  0x15   : > { %415 = vst.msk [vmem:[#allocation2 + $0x8] sm:$0xff] %vm413_vm0, %v412_v2 }
  0x16 PF: > { %v1028_v5 = vld [vmem:[%s1141_s0] sm:$0xff]   ;;  %vm424_vm1 = vcmask 130048   ;;  %v460_v7 = vld [vmem:[%s1146_s5 + $0x18] sm:$0xff]  ;;  %v459_v8 = vld [vmem:[%s1146_s5 + $0x10] sm:$0xff]  ;;  %vm454_vm2 = vcmask 261120   ;;  %v929_v19 = vmov 34   ;;  %v584_v23 = vlaneseq }
  0x17   : > { %v872_v6 = vunpack.c.l.bf16 %v1028_v5  ;;  %479 = vmatpush.msra.mxu1 %v460_v7  ;;  %v873_v9 = vunpack.c.h.bf16 %v1028_v5  ;;  %v458_v10 = vld [vmem:[%s1146_s5 + $0x8] sm:$0xff]  ;;  %v457_v11 = vld [vmem:[%s1146_s5] sm:$0xff]  ;;  %900 = vset.pattern.permute.xlu1 %v929_v19  ;;  %s931_s19 = smov 95   ;;  %v932_v46 = vmov 0   ;;  %v902_v53 = vld [vmem:[#allocation3] ss:$0 sm:$0xff] }
  0x18   : > { %v422_v12 = vld [vmem:[%s1142_s1] sm:$0xff]  ;;  %v423_v15 = vld [vmem:[%s1142_s1 + $0x8] sm:$0xff]  ;;  %899 = vset.pattern.permute.xlu0 %v929_v19  ;;  %v585_v24 = vshrl.u32 %v584_v23, 7  ;;  %v588_v27 = vand.u32 127, %v584_v23  ;;  %vm672_vm13 = vcmask 15360   ;;  %vm770_vm14 = vcmask 254976  }
  0x19   : > { %480 = vmatpush.msra.mxu1 %v459_v8  ;;  %v543_v18 = vld [vmem:[%s1147_s6] sm:$0x1]  ;;  %vm590_vm3 = vcmp.gt.f32.partialorder %v873_v9, 0.0  ;;  %vm589_vm7 = vcmp.gt.f32.partialorder %v872_v6, 0.0 }
  0x1a   : > { %v586_v26 = vadd.s32 8, %v585_v24  ;;  %v875_v31 = vld [vmem:[%s1143_s2] sm:$0xff]   ;;  %vm591_vm8 = vcmp.eq.s32.totalorder %v585_v24, %v588_v27 }
  0x1b   : > { %v420_v4 = vld [vmem:[#allocation2] sm:$0xff]  ;;  %481 = vmatpush.msra.mxu1 %v458_v10  ;;  %v876_v35 = vunpack.c.l.bf16 %v875_v31  ;;  %vm593_vm10 = vmor %vm589_vm7, %vm591_vm8  ;;  %v877_v47 = vunpack.c.h.bf16 %v875_v31 }
  0x1c   : > { %v421_v3 = vld [vmem:[#allocation2 + $0x8] sm:$0xff]  ;;  %vm592_vm4 = vcmp.eq.s32.totalorder %v586_v26, %v588_v27 }
  0x1d   : > { %445 = vmatpush.msra.mxu0 %v421_v3  ;;  %482 = vmatpush.msra.mxu1 %v457_v11  ;;  %vm594_vm6 = vmor %vm590_vm3, %vm592_vm4  ;;  %v879_v11 = vld [vmem:[%s1144_s3] sm:$0xff]  }
  0x1f   : > { %446 = vmatpush.msra.mxu0 %v420_v4 }
  0x20   : > { %854 = vmatmul.msk.f32.vlgmr.msra.gmra.mxu0 %vm424_vm1, %v872_v6 }
  0x28   : > { %855 = vmatmul.msk.f32.gmra.mxu0 %vm424_vm1, %v873_v9 }
  0x9d   : > { %v448_v13 = vpop.f32.mrf.mxu0 }
  0x9e   : > { %v449_v14 = vadd.f32 %v448_v13, %v422_v12  ;;  %v880_v12 = vunpack.c.l.bf16 %v879_v11 }
  0xa0   : > { %455 = vst.msk [vmem:[#allocation2] sm:$0xff] %vm454_vm2, %v449_v14  ;;  %856 = vmatmul.msk.f32.vlgmr.msra.gmra.mxu1 %vm454_vm2, %v449_v14  ;;  %vm1092_vm11 = vcmp.gt.f32.partialorder %v880_v12, 0.0 }
  0xa1   : > { %768 = vst.msk [vmem:[%s1012_s29] sm:$0xff] %vm454_vm2, %v449_v14 }
  0xa5   : > { %v451_v16 = vpop.f32.mrf.mxu0 }
  0xa6   : > { %v452_v17 = vadd.f32 %v451_v16, %v423_v15 }
  0xa8   : > { %456 = vst.msk [vmem:[#allocation2 + $0x8] sm:$0xff] %vm454_vm2, %v452_v17  ;;  %857 = vmatmul.msk.f32.gmra.mxu1 %vm454_vm2, %v452_v17  ;;  %860 = vmatpush.xpose.msk.msra.mxu3 %vm454_vm2, %v452_v17 }
  0xa9   : > { %769 = vst.msk [vmem:[%s1012_s29 + $0x8] sm:$0xff] %vm454_vm2, %v452_v17  ;;  %s930_s29 = smov 96  }
  0xac   : > { %861 = vmatpush.xpose.msk.msra.mxu3 %vm454_vm2, %v449_v14  ;;  %v881_v14 = vunpack.c.h.bf16 %v879_v11 }
  0xae   : > { %vm1096_vm12 = vcmp.gt.f32.partialorder %v881_v14, 0.0 }
  0xaf   : > { %862 = vmatmul.msk.f32.vlgmr.msra.gmra.mxu3 %vm454_vm2, %v543_v18 }
 0x11d   : > { %v484_v20 = vpop.f32.mrf.mxu1 }
 0x125   : > { %v1068_v21 = vpop.f32.mrf.mxu1 }
 0x126   : > { %572 = vperm.xlu1 %900, %v1068_v21   ;;  %645 = vmatpush.msrb.mxu3 %v1068_v21  ;;  %v894_v22 = vpack.i.bf16 %v484_v20, %v1068_v21 }
 0x128   : > { %895 = vrot.lane.b32.xlu0 %v894_v22, %s930_s29  ;;  %646 = vmatpush.msrb.mxu3 %v484_v20 }
 0x130   : > { %568 = vperm.xlu0 %899, %v484_v20  }
 0x132   : > { %v564_v25 = vpop.f32.mrf.mxu3 }
 0x133   : > { %v575_v28 = vperm.slane %v564_v25, 0 }
 0x138   : > { %502 = vrot.lane.b32.xlu0 %v484_v20, %s931_s19 }
 0x139   : > { %901 = vset.pattern.permute.xlu0 %v932_v46 }
 0x198   : > { %v573_v29 = vpop.permute.xlu1 %572 }
 0x199   : > { %v577_v30 = vadd.f32 %v575_v28, %v573_v29 }
 0x19a   : > { %v896_v32 = vpop.permute.xlu0 %895 }
 0x19b   : > { %v581_v33 = vmul.f32 0.2, %v577_v30  ;;  %v897_v34 = vunpack.i.l.bf16 %v896_v32  ;;  %vm579_vm5 = vcmp.gt.f32.partialorder %v577_v30, 0.0  ;;  %v898_v36 = vunpack.i.h.bf16 %v896_v32 }
 0x19d   : > { %528 = vmatpush.msra.mxu2 %v897_v34  ;;  %v583_v37 = vsel %vm579_vm5, %v577_v30, %v581_v33 }
 0x19e   : > { %v596_v38 = vsel %vm594_vm6, %v583_v37, -1e+30 }
 0x19f   : > { %529 = vmatpush.msra.mxu2 %v898_v36  ;;  %v600_v39 = vsel %vm424_vm1, %v596_v38, -inf }
 0x1a0   : > { %601 = vmax.xlane.f32.xlu2 %v600_v39  ;;  %858 = vmatmul.msk.f32.vlgmr.msra.gmra.mxu2 %vm424_vm1, %v876_v35 }
 0x1a2   : > { %v569_v40 = vpop.permute.xlu0 %568 }
 0x1a3   : > { %v576_v41 = vadd.f32 %v575_v28, %v569_v40 }
 0x1a5   : > { %v580_v42 = vmul.f32 0.2, %v576_v41  ;;  %vm578_vm9 = vcmp.gt.f32.partialorder %v576_v41, 0.0 }
 0x1a7   : > { %v582_v43 = vsel %vm578_vm9, %v576_v41, %v580_v42 }
 0x1a8   : > { %v595_v44 = vsel %vm593_vm10, %v582_v43, -1e+30  ;;  %859 = vmatmul.msk.f32.gmra.mxu2 %vm424_vm1, %v877_v47 }
 0x1a9   : > { %v597_v45 = vsel %vm424_vm1, %v595_v44, -inf }
 0x1aa   : > { %598 = vmax.xlane.f32.xlu1 %v597_v45  ;;  %v503_v54 = vpop.permute.xlu0 %502 }
 0x213   : > { %v602_v48 = vpop.xlane.xlu2 %601 }
 0x214   : > { %v604_v51 = vsub.f32 %v596_v38, %v602_v48 }
 0x216   : > { %v607_v56 = vmul.f32 1.442695, %v604_v51 }
 0x21d   : > { %v599_v49 = vpop.xlane.xlu1 %598 }
 0x21e   : > { %v603_v50 = vsub.f32 %v595_v44, %v599_v49 }
 0x220   : > { %v605_v52 = vmul.f32 1.442695, %v603_v50 }
 0x222   : > { %905 = vpow2.f32 %v605_v52  ;;  %v739_v52 = vld [vmem:[%s1150_s9 + $0x18] sm:$0xff] }
 0x223   : > { %v531_v55 = vpop.f32.mrf.mxu2  ;;  %907 = vpow2.f32 %v607_v56  ;;  %759 = vmatpush.msrb.mxu2 %v739_v52 }
 0x224   : > { %v532_v57 = vadd.f32 %v531_v55, %v503_v54  ;;  %v737_v54 = vld [vmem:[%s1150_s9 + $0x8] sm:$0xff]  ;;  %v736_v55 = vld [vmem:[%s1150_s9] sm:$0xff] }
 0x226   : > { %v541_v58 = vadd.f32 %v902_v53, %v532_v57 }
 0x228   : > { %v906_v59 = vpop.eup %905  ;;  %662 = vperm.xlu0 %901, %v541_v58   ;;  %v903_v58 = vld [vmem:[%s1149_s8] ss:$0 sm:$0xff] }
 0x229   : > { %v609_v60 = vsel %vm424_vm1, %v906_v59, 0.0  ;;  %v908_v61 = vpop.eup %907 }
 0x22a   : > { %610 = vadd.xlane.f32.xlu2 %v609_v60  ;;  %v612_v62 = vsel %vm424_vm1, %v908_v61, 0.0  ;;  %v709_v60 = vld [vmem:[%s1145_s4] sm:$0x1] }
 0x22b   : > { %v534_v5 = vpop.f32.mrf.mxu2 }
 0x232   : > { %613 = vadd.xlane.f32.xlu2 %v612_v62 }
 0x24a   : > { %504 = vrot.lane.b32.xlu2 %v1068_v21, %s931_s19 }
 0x29a   : > { %v663_v13 = vpop.permute.xlu0 %662 }
 0x29b   : > { %v670_v17 = vsel %vm1092_vm11, %v663_v13, -1e+30 }
 0x29c   : > { %v673_v20 = vsel %vm672_vm13, %v670_v17, -inf }
 0x29d   : > { %v611_v63 = vpop.xlane.xlu2 %610 }
 0x29e   : > { %v615_v0 = vadd.f32 1e-16, %v611_v63 }
 0x2a0   : > { %909 = vrcp.f32 %v615_v0 }
 0x2a5   : > { %v614_v1 = vpop.xlane.xlu2 %613 }
 0x2a6   : > { %v910_v2 = vpop.eup %909  ;;  %v616_v3 = vadd.f32 1e-16, %v614_v1  ;;  %v710_v1 = vunpack.c.l.bf16 %v709_v60 }
 0x2a7   : > { %v619_v4 = vmul.f32 %v910_v2, %v906_v59 }
 0x2a8   : > { %911 = vrcp.f32 %v616_v3 }
 0x2a9   : > { %863 = vmatmul.msk.f32.vlgmr.msrb.gmra.mxu3 %vm424_vm1, %v619_v4  ;;  %v904_v4 = vld [vmem:[%s1151_s10] ss:$0 sm:$0xff] }
 0x2ad   : > { %v505_v6 = vpop.permute.xlu2 %504 }
 0x2ae   : > { %v912_v7 = vpop.eup %911  ;;  %v535_v8 = vadd.f32 %v534_v5, %v505_v6 }
 0x2af   : > { %v620_v9 = vmul.f32 %v912_v7, %v908_v61 }
 0x2b0   : > { %v542_v10 = vadd.f32 %v902_v53, %v535_v8  ;;  %v738_v53 = vld [vmem:[%s1150_s9 + $0x10] sm:$0xff] }
 0x2b1   : > { %864 = vmatmul.msk.f32.gmra.mxu3 %vm424_vm1, %v620_v9  ;;  %760 = vmatpush.msrb.mxu2 %v738_v53 }
 0x2b2   : > { %667 = vperm.xlu0 %901, %v542_v10  }
 0x2b3   : > { %761 = vmatpush.msrb.mxu2 %v737_v54 }
 0x2b5   : > { %762 = vmatpush.msrb.mxu2 %v736_v55 }
 0x324   : > { %v668_v18 = vpop.permute.xlu0 %667 }
 0x325   : > { %v671_v19 = vsel %vm1096_vm12, %v668_v18, -1e+30 }
 0x326   : > { %v674_v21 = vsel %vm672_vm13, %v671_v19, -inf }
 0x327   : > { %v675_v22 = vmax.f32 %v673_v20, %v674_v21 }
 0x329   : > { %v676_v23 = vrot.slane %v675_v22, 4 }
 0x32b   : > { %v677_v24 = vmax.f32 %v675_v22, %v676_v23 }
 0x32c   : > { %v648_v56 = vpop.f32.mrf.mxu3 }
 0x32d   : > { %v678_v25 = vrot.slane %v677_v24, 2  ;;  %v649_v63 = vadd.f32 %v903_v58, %v648_v56 }
 0x32f   : > { %v679_v26 = vmax.f32 %v677_v24, %v678_v25 }
 0x331   : > { %v680_v27 = vrot.slane %v679_v26, 1 }
 0x333   : > { %v681_v28 = vmax.f32 %v679_v26, %v680_v27 }
 0x334   : > { %v651_v57 = vpop.f32.mrf.mxu3 }
 0x335   : > { %v682_v29 = vsub.f32 %v670_v17, %v681_v28  ;;  %v683_v30 = vsub.f32 %v671_v19, %v681_v28  ;;  %v652_v59 = vadd.f32 %v903_v58, %v651_v57 }
 0x337   : > { %v684_v31 = vmul.f32 1.442695, %v682_v29  ;;  %v686_v32 = vmul.f32 1.442695, %v683_v30 }
 0x339   : > { %913 = vpow2.f32 %v684_v31 }
 0x33a   : > { %915 = vpow2.f32 %v686_v32 }
 0x33f   : > { %v914_v33 = vpop.eup %913 }
 0x340   : > { %v916_v34 = vpop.eup %915  ;;  %v688_v35 = vsel %vm1092_vm11, %v914_v33, 0.0 }
 0x341   : > { %v689_v36 = vsel %vm1096_vm12, %v916_v34, 0.0  ;;  %v690_v37 = vsel %vm672_vm13, %v688_v35, 0.0 }
 0x342   : > { %v691_v38 = vsel %vm672_vm13, %v689_v36, 0.0 }
 0x343   : > { %v692_v39 = vadd.f32 %v691_v38, %v690_v37 }
 0x345   : > { %v693_v40 = vrot.slane %v692_v39, 4 }
 0x347   : > { %v694_v41 = vadd.f32 %v693_v40, %v692_v39 }
 0x349   : > { %v695_v42 = vrot.slane %v694_v41, 2 }
 0x34b   : > { %v696_v43 = vadd.f32 %v695_v42, %v694_v41 }
 0x34d   : > { %v697_v44 = vrot.slane %v696_v43, 1 }
 0x34f   : > { %v698_v45 = vadd.f32 %v697_v44, %v696_v43 }
 0x351   : > { %v699_v46 = vadd.f32 1e-16, %v698_v45 }
 0x353   : > { %917 = vrcp.f32 %v699_v46 }
 0x359   : > { %v918_v47 = vpop.eup %917 }
 0x35a   : > { %v702_v48 = vmul.f32 %v918_v47, %v689_v36  ;;  %v701_v49 = vmul.f32 %v918_v47, %v688_v35 }
 0x35c   : > { %v706_v50 = vsel %vm672_vm13, %v702_v48, 0.0  ;;  %v703_v51 = vsel %vm672_vm13, %v701_v49, 0.0 }
 0x35d   : > { %707 = vadd.xlane.f32.xlu2 %v706_v50  ;;  %704 = vadd.xlane.f32.xlu1 %v703_v51 }
 0x3d0   : > { %v708_v61 = vpop.xlane.xlu2 %707  ;;  %v705_v62 = vpop.xlane.xlu1 %704 }
 0x3d1   : > { %v712_v0 = vmul.f32 %v708_v61, %v652_v59  ;;  %v711_v2 = vmul.f32 %v705_v62, %v649_v63 }
 0x3d3   : > { %730 = vmatpush.msrb.mxu0 %v712_v0 }
 0x3d5   : > { %731 = vmatpush.msrb.mxu0 %v711_v2 }
 0x3d6   : > { %865 = vmatmul.msk.f32.vlgmr.msrb.gmra.mxu0 %vm424_vm1, %v710_v1 }
 0x453   : > { %v733_v3 = vpop.f32.mrf.mxu0 }
 0x454   : > { %866 = vmatmul.msk.f32.vlgmr.msrb.gmra.mxu2 %vm454_vm2, %v733_v3 }
 0x4d7   : > { %v764_v5 = vpop.f32.mrf.mxu2 }
 0x4d8   : > { %v765_v6 = vadd.f32 %v904_v4, %v764_v5 }
 0x4da   : > { %919 = vtanh.f32 %v765_v6 }
 0x4e0   : > { %v920_v7 = vpop.eup %919 }
 0x4e1   : > { %771 = vst.msk [vmem:[%s1017_s14] sm:$0x3] %vm770_vm14, %v920_v7 }
 0x4e2 PF: > { %s25_s23 = sadd.s32 1, %s927_s23  }
 0x4e3   : > { %p22_p5 = scmp.ge.s32.totalorder %s25_s23, 5  }
 0x4e5   :  { %24 = sbr.rel (!%p22_p5) target bundleno = 3 (0x3), region = 107 }

// kernel: gsp_dmpnn_forward.5
= control target key start
LH: loop header
LB: loop body
LE: loop exit
PB: predicated region body
PF: predicated region fallthrough
CT: control target
= control target key end

     0   :  { %s2108_s0 = inlined_call_operand.vmem [shape: bf16[10,16], index: 0, kind: input, shape index: {}]   ;;  %s2109_s1 = inlined_call_operand.vmem [shape: f32[3,16,32], index: 1, kind: input, shape index: {}]   ;;  %s2110_s2 = inlined_call_operand.vmem [shape: f32[3,16,1], index: 2, kind: input, shape index: {}]   ;;  %s2111_s3 = inlined_call_operand.vmem [shape: f32[10,32], index: 3, kind: input, shape index: {}]   ;;  %s2112_s4 = inlined_call_operand.vmem [shape: f32[1,32], index: 4, kind: input, shape index: {}]   ;;  %s2113_s5 = inlined_call_operand.vmem [shape: f32[1,32], index: 5, kind: input, shape index: {}]   ;;  %s2114_s6 = inlined_call_operand.vmem [shape: f32[32,192], index: 6, kind: input, shape index: {}]   ;;  %s2115_s7 = inlined_call_operand.vmem [shape: f32[1,192], index: 7, kind: input, shape index: {}]   ;;  %s2116_s8 = inlined_call_operand.vmem [shape: f32[1,192], index: 8, kind: input, shape index: {}]   ;;  %s2117_s9 = inlined_call_operand.vmem [shape: f32[1,192], index: 9, kind: input, shape index: {}]   ;;  %s2118_s10 = inlined_call_operand.<no memory space> [shape: f32[1,1], index: 10, kind: input, shape index: {}]   ;;  %s2119_s11 = inlined_call_operand.hbm [shape: f32[192,192], index: 11, kind: input, shape index: {}]   ;;  %s2120_s12 = inlined_call_operand.vmem [shape: f32[1,192], index: 12, kind: input, shape index: {}]   ;;  %s2121_s13 = inlined_call_operand.vmem [shape: f32[1,192], index: 13, kind: input, shape index: {}]   ;;  %s2122_s14 = inlined_call_operand.vmem [shape: f32[1,192], index: 14, kind: input, shape index: {}]   ;;  %s2123_s16 = inlined_call_operand.hbm [shape: f32[192,192], index: 16, kind: input, shape index: {}]   ;;  %s2124_s17 = inlined_call_operand.vmem [shape: f32[1,192], index: 17, kind: input, shape index: {}]   ;;  %s2125_s18 = inlined_call_operand.vmem [shape: f32[1,192], index: 18, kind: input, shape index: {}]   ;;  %s2126_s19 = inlined_call_operand.vmem [shape: f32[1,192], index: 19, kind: input, shape index: {}]   ;;  %s2127_s21 = inlined_call_operand.hbm [shape: f32[192,192], index: 21, kind: input, shape index: {}]   ;;  %s2128_s22 = inlined_call_operand.vmem [shape: f32[1,192], index: 22, kind: input, shape index: {}]   ;;  %s2129_s23 = inlined_call_operand.vmem [shape: f32[1,192], index: 23, kind: input, shape index: {}]   ;;  %s2130_s24 = inlined_call_operand.vmem [shape: f32[1,192], index: 24, kind: input, shape index: {}]   ;;  %s2131_s26 = inlined_call_operand.vmem [shape: f32[192,32], index: 26, kind: input, shape index: {}]   ;;  %s2132_s27 = inlined_call_operand.vmem [shape: f32[1,32], index: 27, kind: input, shape index: {}]   ;;  %s2133_s28 = inlined_call_operand.hbm [shape: f32[10,32], index: 28, kind: output, shape index: {}]   ;;  %s2134_s15 = inlined_call_operand.<no memory space> [shape: f32[1,1], index: 15, kind: input, shape index: {}]   ;;  %s2135_s20 = inlined_call_operand.<no memory space> [shape: f32[1,1], index: 20, kind: input, shape index: {}]   ;;  %s2136_s25 = inlined_call_operand.<no memory space> [shape: f32[1,1], index: 25, kind: input, shape index: {}]  }
   0x1   :  { %2142 = sst [smem:[#allocation16_spill]] %s2108_s0  ;;  %v35_v1 = vstv %s2134_s15  ;;  %v37_v2 = vstv %s2135_s20  ;;  %v39_v3 = vstv %s2136_s25 }
   0x2   :  { %2143 = sst [smem:[#allocation17_spill]] %s2109_s1  ;;  %36 = vst [vmem:[#allocation3] sm:$0x1] %v35_v1 }
   0x3   :  { %2144 = sst [smem:[#allocation18_spill]] %s2110_s2  ;;  %38 = vst [vmem:[#allocation4] sm:$0x1] %v37_v2 }
   0x4   :  { %2145 = sst [smem:[#allocation19_spill]] %s2111_s3  ;;  %40 = vst [vmem:[#allocation5] sm:$0x1] %v39_v3 }
   0x5   :  { %2146 = sst [smem:[#allocation20_spill]] %s2112_s4 }
   0x6   :  { %2147 = sst [smem:[#allocation21_spill]] %s2113_s5 }
   0x7   :  { %2148 = sst [smem:[#allocation22_spill]] %s2114_s6 }
   0x8   :  { %2149 = sst [smem:[#allocation23_spill]] %s2115_s7 }
   0x9   :  { %2150 = sst [smem:[#allocation24_spill]] %s2116_s8 }
   0xa   :  { %2151 = sst [smem:[#allocation25_spill]] %s2117_s9 }
   0xb   :  { %2152 = sst [smem:[#allocation26_spill]] %s2118_s10 }
   0xc   :  { %2153 = sst [smem:[#allocation27_spill]] %s2119_s11 }
   0xd   :  { %2154 = sst [smem:[#allocation28_spill]] %s2120_s12 }
   0xe   :  { %s2155_s9 = sld [smem:[#allocation26_spill]] }
  0x14   :  { %v33_v0 = vstv %s2155_s9 }
  0x15   :  { %34 = vst [vmem:[#allocation2] sm:$0x1] %v33_v0 }
  0x16   :  { %41 = vsyncpa [#allocation7], 0 }
  0x17   :  { %42 = vsyncpa [#allocation10], 0 }
  0x18   :  { %43 = vsyncpa [#allocation8], 0  ;;  %s91_s7 = sshll.u32 %s2123_s16, 4  ;;  %s1552_s15 = smov [#allocation9]   ;;  %s92_s7 = int_to_ptr.hbm [resolvable:$true] %s91_s7 }
  0x19   :  { %s93_s12 = sshll.u32 %s1552_s15, 4  ;;  %s2156_s4 = sld [smem:[#allocation27_spill]]  ;;  %s94_s12 = int_to_ptr.vmem [resolvable:$true] %s93_s12 }
  0x1a   :  { %s1553_s5 = smov 256   ;;  %s1554_s25 = smov 16  }
  0x1b   :  { %99 = dma.hbm_to_vmem [thread:$0]  %s92_s7, 6144, %s94_s12, [#allocation10], %s1553_s5, %s1553_s5, %s1554_s25  }
  0x1c   :  { %s1555_s9 = smov [#allocation6]   ;;  %s112_s10 = sshll.u32 %s2127_s21, 4  ;;  %s113_s10 = int_to_ptr.hbm [resolvable:$true] %s112_s10 }
  0x1d   :  { %s72_s30 = sshll.u32 %s1555_s9, 4  ;;  %s1556_s16 = smov [#allocation11]   ;;  %s73_s30 = int_to_ptr.vmem [resolvable:$true] %s72_s30 }
  0x1e   :  { %s114_s0 = sshll.u32 %s1556_s16, 4  ;;  %s115_s0 = int_to_ptr.vmem [resolvable:$true] %s114_s0 }
  0x1f   :  { %s70_s8 = sshll.u32 %s2156_s4, 4  ;;  %s71_s8 = int_to_ptr.hbm [resolvable:$true] %s70_s8 }
  0x20   :  { %78 = dma.hbm_to_vmem [thread:$0]  %s71_s8, 6144, %s73_s30, [#allocation7], %s1553_s5, %s1553_s5, %s1554_s25  }
  0x21   :  { %120 = dma.hbm_to_vmem [thread:$0]  %s113_s10, 6144, %s115_s0, [#allocation10], %s1553_s5, %s1553_s5, %s1554_s25  }
  0x22   :  { %1546 = dma.done.wait [#allocation7], 6144  }
  0x23   :  { %1547 = vsyncadd [#allocation7], 4294961152 }
  0x24   :  { %1548 = dma.done.wait [#allocation10], 12288  }
  0x25   :  { %1549 = vsyncadd [#allocation10], 4294955008  ;;  %v1557_v4 = vmov 0   ;;  %s2157_s2 = sld [smem:[#allocation18_spill]]  ;;  %v1423_v11 = vld [vmem:[#allocation2] ss:$0 sm:$0xff] }
  0x26   :  { %1421 = vset.pattern.permute.xlu1 %v1557_v4  ;;  %1420 = vset.pattern.permute.xlu0 %v1557_v4  ;;  %v1424_v12 = vld [vmem:[#allocation3] ss:$0 sm:$0xff]  ;;  %v1426_v13 = vld [vmem:[#allocation4] ss:$0 sm:$0xff]  ;;  %v1425_v14 = vld [vmem:[#allocation5] ss:$0 sm:$0xff] }
  0x27   :  { %1422 = vset.pattern.permute.xlu2 %v1557_v4  ;;  %s2158_s3 = sld [smem:[#allocation17_spill]]  ;;  %vm207_vm0 = vcmask 130048   ;;  %v1558_v41 = vmov 10.0   ;;  %vm237_vm1 = vcmask 261120   ;;  %vm239_vm2 = vcmask 254976   ;;  %s1368_s11 = sshll.u32 %s2133_s28, 4  ;;  %s1369_s11 = int_to_ptr.hbm [resolvable:$true] %s1368_s11 }
  0x28   :  { %s2159_s1 = sld [smem:[#allocation16_spill]]  ;;  %1430 = vrcp.f32 %v1558_v41  ;;  %vm361_vm7 = vcmask 1041408   ;;  %vm370_vm8 = vcmask 523264   ;;  %vm372_vm9 = vcmask 517120  }
  0x29   :  { %s2160_s9 = sld [smem:[#allocation19_spill]] }
  0x2a   :  { %s2161_s16 = sld [smem:[#allocation22_spill]] }
  0x2b   :  { %v148_v5 = vld [vmem:[%s2157_s2 + $0x8] sm:$0xff]  ;;  %v147_v6 = vld [vmem:[%s2157_s2] sm:$0xff]  ;;  %v1385_v8 = vld [vmem:[%s2157_s2 + $0x18] sm:$0xff]  ;;  %s2164_s29 = sld [smem:[#allocation23_spill]] }
  0x2c   :  { %156 = vperm.xlu0 %1420, %v148_v5   ;;  %151 = vperm.xlu1 %1421, %v147_v6   ;;  %v1389_v7 = vld [vmem:[%s2157_s2 + $0x28] sm:$0xff]  ;;  %v1384_v9 = vld [vmem:[%s2157_s2 + $0x10] sm:$0xff]  ;;  %v1388_v10 = vld [vmem:[%s2157_s2 + $0x20] sm:$0xff]  ;;  %s2165_s7 = sld [smem:[#allocation24_spill]] }
  0x2d   :  { %194 = vperm.xlu2 %1422, %v1389_v7   ;;  %v146_v18 = vld [vmem:[%s2158_s3 + $0x8] sm:$0xff]  ;;  %v145_v19 = vld [vmem:[%s2158_s3] sm:$0xff]  ;;  %v1383_v20 = vld [vmem:[%s2158_s3 + $0x18] sm:$0xff]  ;;  %s2166_s20 = sld [smem:[#allocation25_spill]] }
  0x2e   :  { %v1382_v21 = vld [vmem:[%s2158_s3 + $0x10] sm:$0xff]  ;;  %v1387_v22 = vld [vmem:[%s2158_s3 + $0x28] sm:$0xff]  ;;  %v1386_v29 = vld [vmem:[%s2158_s3 + $0x20] sm:$0xff]  ;;  %v1431_v43 = vpop.eup %1430  ;;  %s2162_s3 = sld [smem:[#allocation20_spill]] }
  0x2f   :  { %v201_v33 = vld [vmem:[%s2159_s1] sm:$0xf]  ;;  %v202_v39 = vld [vmem:[%s2159_s1 + $0x4] sm:$0x1]  ;;  %v206_v45 = vld [vmem:[%s2160_s9 + $0x8] sm:$0x3]  ;;  %vm253_vm3 = vweird.f32 %v1431_v43 }
  0x30   :  { %v203_v37 = vunpack.c.l.bf16 %v201_v33  ;;  %v204_v40 = vunpack.c.l.bf16 %v202_v39  ;;  %v205_v44 = vld [vmem:[%s2160_s9] sm:$0xff]  ;;  %v249_v47 = vmul.f32 10.0, %v1431_v43  ;;  %s2167_s8 = sld [smem:[#allocation28_spill]] }
  0x31   :  { %v303_v39 = vld [vmem:[%s2164_s29] sm:$0x3]  ;;  %s1561_s29 = smov 8  }
  0x32   :  { %v250_v52 = vsub.f32 1.0, %v249_v47 }
  0x34   :  { %174 = vperm.xlu0 %1420, %v1385_v8   ;;  %169 = vperm.xlu1 %1421, %v1384_v9   ;;  %v251_v55 = vmul.f32 %v1431_v43, %v250_v52  ;;  %v301_v8 = vld [vmem:[%s2161_s16 + $0x30] sm:$0xff]  ;;  %v302_v9 = vld [vmem:[%s2161_s16 + $0x38] sm:$0xff] }
  0x35   :  { %189 = vperm.xlu2 %1422, %v1388_v10   ;;  %327 = vmatpush.msra.mxu1 %v301_v8  ;;  %v506_v52 = vld [vmem:[#allocation6 + $0xf8] sm:$0xff] }
  0x36   :  { %v252_v58 = vadd.f32 %v1431_v43, %v251_v55  ;;  %350 = vmatpush.msra.mxu2 %v302_v9  ;;  %v503_v55 = vld [vmem:[#allocation6 + $0xe0] sm:$0xff] }
  0x38   :  { %v1778_v61 = vsel %vm253_vm3, %v1431_v43, %v252_v58  ;;  %v306_v43 = vperm.slane %v303_v39, 1 }
  0x3c   :  { %464 = vperm.xlu0 %1420, %v1423_v11   ;;  %727 = vperm.xlu1 %1421, %v1424_v12   ;;  %v299_v11 = vld [vmem:[%s2161_s16 + $0x20] sm:$0xff]  ;;  %v300_v12 = vld [vmem:[%s2161_s16 + $0x28] sm:$0xff] }
  0x3d   :  { %998 = vperm.xlu2 %1422, %v1426_v13   ;;  %v297_v13 = vld [vmem:[%s2161_s16 + $0x10] sm:$0xff]  ;;  %328 = vmatpush.msra.mxu1 %v299_v11 }
  0x3e   :  { %351 = vmatpush.msra.mxu2 %v300_v12  ;;  %v496_v11 = vld [vmem:[#allocation6 + $0xa8] sm:$0xff] }
  0x3f   :  { %329 = vmatpush.msra.mxu1 %v297_v13 }
  0x44   :  { %1269 = vperm.xlu0 %1420, %v1425_v14   ;;  %v298_v14 = vld [vmem:[%s2161_s16 + $0x18] sm:$0xff] }
  0x45   :  { %352 = vmatpush.msra.mxu2 %v298_v14  ;;  %v493_v14 = vld [vmem:[#allocation6 + $0x90] sm:$0xff] }
  0x87   :  { %v195_v17 = vpop.permute.xlu2 %194 }
  0x88   :  { %v198_v30 = vmul.f32 %v1387_v22, %v195_v17  ;;  %v296_v17 = vld [vmem:[%s2161_s16 + $0x8] sm:$0xff] }
  0x89   :  { %353 = vmatpush.msra.mxu2 %v296_v17 }
  0x8f   :  { %v190_v34 = vpop.permute.xlu2 %189 }
  0x90   :  { %v197_v35 = vmul.f32 %v1386_v29, %v190_v34  ;;  %v1427_v29 = vld [vmem:[%s2162_s3] ss:$0 sm:$0xff] }
  0x9e   :  { %v157_v15 = vpop.permute.xlu0 %156  ;;  %v152_v16 = vpop.permute.xlu1 %151 }
  0x9f   :  { %v160_v25 = vmul.f32 %v157_v15, %v146_v18  ;;  %v159_v26 = vmul.f32 %v152_v16, %v145_v19  ;;  %v295_v16 = vld [vmem:[%s2161_s16] sm:$0xff]  ;;  %s2163_s16 = sld [smem:[#allocation21_spill]] }
  0xa0   :  { %330 = vmatpush.msra.mxu1 %v295_v16 }
  0xa2   :  { %581 = vmatpush.msrb.mxu1 %v506_v52 }
  0xa6   :  { %v175_v23 = vpop.permute.xlu0 %174  ;;  %v170_v24 = vpop.permute.xlu1 %169 }
  0xa7   :  { %v178_v27 = vmul.f32 %v1383_v20, %v175_v23  ;;  %v177_v28 = vmul.f32 %v1382_v21, %v170_v24 }
  0xa9   :  { %v179_v31 = vadd.f32 %v177_v28, %v159_v26  ;;  %v180_v32 = vadd.f32 %v178_v27, %v160_v25 }
  0xab   :  { %v200_v36 = vadd.f32 %v198_v30, %v180_v32  ;;  %v199_v38 = vadd.f32 %v197_v35, %v179_v31  ;;  %v1428_v32 = vld [vmem:[%s2163_s16] ss:$0 sm:$0xff] }
  0xad   :  { %228 = vmatpush.msra.mxu3 %v200_v36 }
  0xaf   :  { %229 = vmatpush.msra.mxu3 %v199_v38 }
  0xb0   :  { %1390 = vmatmul.msk.f32.vlgmr.msra.gmra.mxu3 %vm207_vm0, %v203_v37 }
  0xb8   :  { %1391 = vmatmul.msk.f32.gmra.mxu3 %vm207_vm0, %v204_v40  ;;  %v305_v40 = vperm.slane %v303_v39, 0  ;;  %v483_v39 = vld [vmem:[#allocation6 + $0x40] sm:$0xff] }
 0x133   :  { %v231_v42 = vpop.f32.mrf.mxu3 }
 0x134   :  { %v232_v46 = vadd.f32 %v231_v42, %v205_v44 }
 0x136   :  { %v238_v50 = vsel %vm237_vm1, %v232_v46, 0.0 }
 0x13b   :  { %v234_v48 = vpop.f32.mrf.mxu3 }
 0x13c   :  { %v235_v49 = vadd.f32 %v234_v48, %v206_v45 }
 0x13e   :  { %v240_v51 = vsel %vm239_vm2, %v235_v49, 0.0 }
 0x13f   :  { %v241_v53 = vadd.f32 %v240_v51, %v238_v50  ;;  %v505_v51 = vld [vmem:[#allocation6 + $0xf0] sm:$0xff] }
 0x140   :  { %535 = vmatpush.msrb.mxu3 %v505_v51 }
 0x141   :  { %v242_v54 = vrot.slane %v241_v53, 4 }
 0x142   :  { %536 = vmatpush.msrb.mxu3 %v503_v55  ;;  %v518_v55 = vld [vmem:[#allocation6 + $0x158] sm:$0xff] }
 0x143   :  { %v243_v56 = vadd.f32 %v242_v54, %v241_v53 }
 0x145   :  { %v244_v57 = vrot.slane %v243_v56, 2 }
 0x147   :  { %v245_v59 = vadd.f32 %v244_v57, %v243_v56  ;;  %v504_v56 = vld [vmem:[#allocation6 + $0xe8] sm:$0xff] }
 0x148   :  { %582 = vmatpush.msrb.mxu1 %v504_v56  ;;  %v479_v56 = vld [vmem:[#allocation6 + $0x20] sm:$0xff] }
 0x149   :  { %v246_v60 = vrot.slane %v245_v59, 1 }
 0x14b   :  { %v247_v62 = vadd.f32 %v246_v60, %v245_v59 }
 0x14d   :  { %v255_v63 = vmul.f32 %v1778_v61, %v247_v62  ;;  %v501_v62 = vld [vmem:[#allocation6 + $0xd0] sm:$0xff] }
 0x14e   :  { %537 = vmatpush.msrb.mxu3 %v501_v62  ;;  %v516_v62 = vld [vmem:[#allocation6 + $0x148] sm:$0xff] }
 0x14f   :  { %v256_v0 = vsub.f32 %v232_v46, %v255_v63  ;;  %v257_v1 = vsub.f32 %v235_v49, %v255_v63  ;;  %v502_v63 = vld [vmem:[#allocation6 + $0xd8] sm:$0xff] }
 0x150   :  { %583 = vmatpush.msrb.mxu1 %v502_v63  ;;  %v477_v63 = vld [vmem:[#allocation6 + $0x10] sm:$0xff] }
 0x151   :  { %v258_v2 = vmul.f32 %v256_v0, %v256_v0  ;;  %v259_v3 = vmul.f32 %v257_v1, %v257_v1 }
 0x153   :  { %v260_v4 = vsel %vm237_vm1, %v258_v2, 0.0  ;;  %v261_v5 = vsel %vm239_vm2, %v259_v3, 0.0  ;;  %v499_v2 = vld [vmem:[#allocation6 + $0xc0] sm:$0xff]  ;;  %v500_v3 = vld [vmem:[#allocation6 + $0xc8] sm:$0xff] }
 0x154   :  { %v262_v6 = vadd.f32 %v261_v5, %v260_v4  ;;  %538 = vmatpush.msrb.mxu3 %v499_v2  ;;  %584 = vmatpush.msrb.mxu1 %v500_v3  ;;  %v478_v3 = vld [vmem:[#allocation6 + $0x18] sm:$0xff] }
 0x156   :  { %v263_v7 = vrot.slane %v262_v6, 4 }
 0x158   :  { %v264_v10 = vadd.f32 %v263_v7, %v262_v6  ;;  %v497_v6 = vld [vmem:[#allocation6 + $0xb0] sm:$0xff]  ;;  %v498_v7 = vld [vmem:[#allocation6 + $0xb8] sm:$0xff] }
 0x159   :  { %539 = vmatpush.msrb.mxu3 %v497_v6  ;;  %585 = vmatpush.msrb.mxu1 %v498_v7  ;;  %v513_v6 = vld [vmem:[#allocation6 + $0x130] sm:$0xff]  ;;  %v476_v7 = vld [vmem:[#allocation6 + $0x8] sm:$0xff] }
 0x15a   :  { %v265_v15 = vrot.slane %v264_v10, 2 }
 0x15b   :  { %586 = vmatpush.msrb.mxu1 %v496_v11  ;;  %v511_v11 = vld [vmem:[#allocation6 + $0x120] sm:$0xff] }
 0x15c   :  { %v266_v18 = vadd.f32 %v265_v15, %v264_v10  ;;  %v495_v10 = vld [vmem:[#allocation6 + $0xa0] sm:$0xff]  ;;  %v494_v15 = vld [vmem:[#allocation6 + $0x98] sm:$0xff] }
 0x15d   :  { %540 = vmatpush.msrb.mxu3 %v495_v10  ;;  %587 = vmatpush.msrb.mxu1 %v494_v15  ;;  %v512_v10 = vld [vmem:[#allocation6 + $0x128] sm:$0xff]  ;;  %v509_v15 = vld [vmem:[#allocation6 + $0x110] sm:$0xff] }
 0x15e   :  { %v267_v19 = vrot.slane %v266_v18, 1 }
 0x15f   :  { %541 = vmatpush.msrb.mxu3 %v493_v14 }
 0x160   :  { %v268_v20 = vadd.f32 %v267_v19, %v266_v18  ;;  %v491_v19 = vld [vmem:[#allocation6 + $0x80] sm:$0xff] }
 0x161   :  { %542 = vmatpush.msrb.mxu3 %v491_v19 }
 0x162   :  { %v269_v21 = vmul.f32 %v268_v20, %v1778_v61  ;;  %v492_v20 = vld [vmem:[#allocation6 + $0x88] sm:$0xff] }
 0x163   :  { %588 = vmatpush.msrb.mxu1 %v492_v20 }
 0x164   :  { %v270_v22 = vadd.f32 1e-05, %v269_v21 }
 0x166   :  { %1432 = vrsqrt.f32 %v270_v22  ;;  %vm277_vm5 = vweird.f32 %v270_v22 }
 0x16c   :  { %v1433_v23 = vpop.eup %1432 }
 0x16d   :  { %v272_v24 = vmul.f32 %v1433_v23, %v270_v22  ;;  %vm278_vm4 = vweird.f32 %v1433_v23 }
 0x16e   :  { %vm279_vm6 = vmor %vm277_vm5, %vm278_vm4 }
 0x16f   :  { %v273_v25 = vmul.f32 %v1433_v23, %v272_v24  ;;  %v489_v24 = vld [vmem:[#allocation6 + $0x70] sm:$0xff] }
 0x170   :  { %543 = vmatpush.msrb.mxu3 %v489_v24 }
 0x171   :  { %v274_v26 = vmul.f32 0.5, %v273_v25  ;;  %v490_v25 = vld [vmem:[#allocation6 + $0x78] sm:$0xff] }
 0x172   :  { %589 = vmatpush.msrb.mxu1 %v490_v25 }
 0x173   :  { %v275_v27 = vsub.f32 1.5, %v274_v26 }
 0x175   :  { %v276_v28 = vmul.f32 %v1433_v23, %v275_v27 }
 0x177   :  { %v280_v30 = vsel %vm279_vm6, %v1433_v23, %v276_v28  ;;  %v487_v28 = vld [vmem:[#allocation6 + $0x60] sm:$0xff] }
 0x178   :  { %v281_v31 = vmul.f32 %v280_v30, %v256_v0  ;;  %v282_v34 = vmul.f32 %v280_v30, %v257_v1  ;;  %544 = vmatpush.msrb.mxu3 %v487_v28 }
 0x17a   :  { %v287_v33 = vmul.f32 %v1427_v29, %v281_v31  ;;  %v288_v36 = vmul.f32 %v1427_v29, %v282_v34  ;;  %v488_v29 = vld [vmem:[#allocation6 + $0x68] sm:$0xff]  ;;  %v486_v34 = vld [vmem:[#allocation6 + $0x58] sm:$0xff] }
 0x17b   :  { %590 = vmatpush.msrb.mxu1 %v488_v29 }
 0x17c   :  { %v293_v35 = vadd.f32 %v1428_v32, %v287_v33  ;;  %v294_v37 = vadd.f32 %v1428_v32, %v288_v36  ;;  %v485_v33 = vld [vmem:[#allocation6 + $0x50] sm:$0xff] }
 0x17d   :  { %545 = vmatpush.msrb.mxu3 %v485_v33  ;;  %591 = vmatpush.msrb.mxu1 %v486_v34  ;;  %v436_v34 = vld [vmem:[%s2165_s7] sm:$0x3] }
 0x17e   :  { %1392 = vmatmul.msk.f32.vlgmr.msra.gmra.mxu1 %vm237_vm1, %v293_v35  ;;  %1394 = vmatmul.msk.f32.vlgmr.msra.gmra.mxu2 %vm237_vm1, %v293_v35 }
 0x17f   :  { %546 = vmatpush.msrb.mxu3 %v483_v39 }
 0x186   :  { %1393 = vmatmul.msk.f32.gmra.mxu1 %vm237_vm1, %v294_v37  ;;  %1395 = vmatmul.msk.f32.gmra.mxu2 %vm237_vm1, %v294_v37 }
 0x1fb   :  { %v332_v38 = vpop.f32.mrf.mxu1 }
 0x1fc   :  { %v1823_v45 = vadd.f32 %v332_v38, %v305_v40  ;;  %v522_v38 = vld [vmem:[#allocation6 + $0x178] sm:$0xff] }
 0x1fd   :  { %612 = vmatpush.msrb.mxu2 %v522_v38  ;;  %v438_v38 = vperm.slane %v436_v34, 0 }
 0x201   :  { %v355_v41 = vpop.f32.mrf.mxu2 }
 0x202   :  { %v1828_v48 = vadd.f32 %v355_v41, %v306_v43 }
 0x203   :  { %v335_v42 = vpop.f32.mrf.mxu1 }
 0x204   :  { %v1821_v44 = vadd.f32 %v335_v42, %v305_v40  ;;  %v371_v57 = vsel %vm370_vm8, %v1828_v48, 0.0  ;;  %v521_v40 = vld [vmem:[#allocation6 + $0x170] sm:$0xff]  ;;  %v484_v42 = vld [vmem:[#allocation6 + $0x48] sm:$0xff] }
 0x205   :  { %566 = vmatpush.msra.mxu0 %v521_v40  ;;  %592 = vmatpush.msrb.mxu1 %v484_v42 }
 0x206   :  { %v362_v46 = vsel %vm361_vm7, %v1821_v44, 0.0 }
 0x207   :  { %v363_v47 = vadd.f32 %v362_v46, %v1823_v45 }
 0x209   :  { %v364_v49 = vrot.slane %v363_v47, 4  ;;  %v358_v50 = vpop.f32.mrf.mxu2 }
 0x20a   :  { %v1830_v53 = vadd.f32 %v358_v50, %v306_v43  ;;  %v519_v50 = vld [vmem:[#allocation6 + $0x160] sm:$0xff] }
 0x20b   :  { %v365_v54 = vadd.f32 %v364_v49, %v363_v47  ;;  %v520_v47 = vld [vmem:[#allocation6 + $0x168] sm:$0xff]  ;;  %v481_v49 = vld [vmem:[#allocation6 + $0x30] sm:$0xff]  ;;  %567 = vmatpush.msra.mxu0 %v519_v50 }
 0x20c   :  { %v373_v58 = vsel %vm372_vm9, %v1830_v53, 0.0  ;;  %613 = vmatpush.msrb.mxu2 %v520_v47  ;;  %547 = vmatpush.msrb.mxu3 %v481_v49 }
 0x20d   :  { %v366_v59 = vrot.slane %v365_v54, 2  ;;  %v374_v60 = vadd.f32 %v373_v58, %v371_v57  ;;  %v517_v57 = vld [vmem:[#allocation6 + $0x150] sm:$0xff] }
 0x20e   :  { %614 = vmatpush.msrb.mxu2 %v518_v55  ;;  %548 = vmatpush.msrb.mxu3 %v479_v56 }
 0x20f   :  { %v367_v0 = vadd.f32 %v366_v59, %v365_v54  ;;  %v375_v1 = vrot.slane %v374_v60, 4  ;;  %v482_v54 = vld [vmem:[#allocation6 + $0x38] sm:$0xff]  ;;  %568 = vmatpush.msra.mxu0 %v517_v57 }
 0x210   :  { %593 = vmatpush.msrb.mxu1 %v482_v54  ;;  %615 = vmatpush.msrb.mxu2 %v516_v62  ;;  %v465_v54 = vpop.permute.xlu0 %464 }
 0x211   :  { %v368_v4 = vrot.slane %v367_v0, 1  ;;  %v376_v5 = vadd.f32 %v375_v1, %v374_v60  ;;  %v480_v60 = vld [vmem:[#allocation6 + $0x28] sm:$0xff]  ;;  %549 = vmatpush.msrb.mxu3 %v477_v63 }
 0x212   :  { %594 = vmatpush.msrb.mxu1 %v480_v60 }
 0x213   :  { %v369_v8 = vadd.f32 %v368_v4, %v367_v0  ;;  %v377_v9 = vrot.slane %v376_v5, 2  ;;  %v515_v0 = vld [vmem:[#allocation6 + $0x140] sm:$0xff]  ;;  %v514_v4 = vld [vmem:[#allocation6 + $0x138] sm:$0xff] }
 0x214   :  { %569 = vmatpush.msra.mxu0 %v515_v0  ;;  %595 = vmatpush.msrb.mxu1 %v478_v3 }
 0x215   :  { %v381_v12 = vmul.f32 %v369_v8, %v1778_v61  ;;  %v378_v13 = vadd.f32 %v377_v9, %v376_v5  ;;  %v475_v5 = vld [vmem:[#allocation6] sm:$0xff]  ;;  %616 = vmatpush.msrb.mxu2 %v514_v4 }
 0x216   :  { %550 = vmatpush.msrb.mxu3 %v475_v5  ;;  %570 = vmatpush.msra.mxu0 %v513_v6 }
 0x217   :  { %v1838_v16 = vsub.f32 %v1823_v45, %v381_v12  ;;  %v1841_v17 = vsub.f32 %v1821_v44, %v381_v12  ;;  %v379_v18 = vrot.slane %v378_v13, 1  ;;  %596 = vmatpush.msrb.mxu1 %v476_v7  ;;  %v510_v12 = vld [vmem:[#allocation6 + $0x118] sm:$0xff]  ;;  %617 = vmatpush.msrb.mxu2 %v512_v10 }
 0x218   :  { %571 = vmatpush.msra.mxu0 %v511_v11 }
 0x219   :  { %v387_v21 = vmul.f32 %v1838_v16, %v1838_v16  ;;  %v389_v22 = vmul.f32 %v1841_v17, %v1841_v17  ;;  %v380_v23 = vadd.f32 %v379_v18, %v378_v13  ;;  %v508_v18 = vld [vmem:[#allocation6 + $0x108] sm:$0xff]  ;;  %618 = vmatpush.msrb.mxu2 %v510_v12 }
 0x21a   :  { %572 = vmatpush.msra.mxu0 %v509_v15 }
 0x21b   :  { %v391_v26 = vsel %vm361_vm7, %v389_v22, 0.0  ;;  %v382_v27 = vmul.f32 %v380_v23, %v1778_v61  ;;  %619 = vmatpush.msrb.mxu2 %v508_v18 }
 0x21c   :  { %v392_v30 = vadd.f32 %v391_v26, %v387_v21  ;;  %v507_v21 = vld [vmem:[#allocation6 + $0x100] sm:$0xff] }
 0x21d   :  { %v1850_v31 = vsub.f32 %v1828_v48, %v382_v27  ;;  %v1853_v32 = vsub.f32 %v1830_v53, %v382_v27  ;;  %573 = vmatpush.msra.mxu0 %v507_v21 }
 0x21e   :  { %v393_v35 = vrot.slane %v392_v30, 4 }
 0x21f   :  { %v388_v36 = vmul.f32 %v1850_v31, %v1850_v31  ;;  %v390_v37 = vmul.f32 %v1853_v32, %v1853_v32 }
 0x220   :  { %v394_v41 = vadd.f32 %v393_v35, %v392_v30 }
 0x221   :  { %v399_v43 = vsel %vm370_vm8, %v388_v36, 0.0  ;;  %v400_v46 = vsel %vm372_vm9, %v390_v37, 0.0  ;;  %v446_v37 = vld [vmem:[%s2166_s20] sm:$0x3] }
 0x222   :  { %v395_v51 = vrot.slane %v394_v41, 2  ;;  %v401_v52 = vadd.f32 %v400_v46, %v399_v43  ;;  %v448_v43 = vperm.slane %v446_v37, 0  ;;  %v449_v56 = vperm.slane %v446_v37, 1  ;;  %v766_v37 = vld [vmem:[#allocation9 + $0xe0] sm:$0xff] }
 0x224   :  { %v396_v58 = vadd.f32 %v395_v51, %v394_v41  ;;  %v402_v59 = vrot.slane %v401_v52, 4  ;;  %v439_v51 = vperm.slane %v436_v34, 1  ;;  %v769_v34 = vld [vmem:[#allocation9 + $0xf8] sm:$0xff] }
 0x225   :  { %844 = vmatpush.msra.mxu3 %v769_v34  ;;  %v744_v34 = vld [vmem:[#allocation9 + $0x30] sm:$0xff] }
 0x226   :  { %v397_v1 = vrot.slane %v396_v58, 1  ;;  %v403_v2 = vadd.f32 %v402_v59, %v401_v52 }
 0x228   :  { %v398_v8 = vadd.f32 %v397_v1, %v396_v58  ;;  %v404_v9 = vrot.slane %v403_v2, 2 }
 0x22a   :  { %v408_v13 = vmul.f32 %v398_v8, %v1778_v61  ;;  %v405_v14 = vadd.f32 %v404_v9, %v403_v2  ;;  %v523_v8 = vld [vmem:[%s2167_s8] sm:$0x3] }
 0x22b   :  { %v525_v9 = vperm.slane %v523_v8, 0  ;;  %v526_v11 = vperm.slane %v523_v8, 1 }
 0x22c   :  { %v410_v19 = vadd.f32 1e-05, %v408_v13  ;;  %v406_v20 = vrot.slane %v405_v14, 1 }
 0x22e   :  { %1434 = vrsqrt.f32 %v410_v19  ;;  %v407_v22 = vadd.f32 %v406_v20, %v405_v14  ;;  %vm418_vm11 = vweird.f32 %v410_v19 }
 0x230   :  { %v409_v23 = vmul.f32 %v407_v22, %v1778_v61 }
 0x232   :  { %v411_v24 = vadd.f32 1e-05, %v409_v23 }
 0x234   :  { %v1435_v25 = vpop.eup %1434  ;;  %1436 = vrsqrt.f32 %v411_v24  ;;  %vm428_vm14 = vweird.f32 %v411_v24 }
 0x235   :  { %v413_v26 = vmul.f32 %v1435_v25, %v410_v19  ;;  %vm419_vm10 = vweird.f32 %v1435_v25 }
 0x236   :  { %vm420_vm12 = vmor %vm418_vm11, %vm419_vm10 }
 0x237   :  { %v414_v27 = vmul.f32 %v1435_v25, %v413_v26 }
 0x239   :  { %v415_v28 = vmul.f32 0.5, %v414_v27 }
 0x23a   :  { %v1437_v29 = vpop.eup %1436 }
 0x23b   :  { %v416_v30 = vsub.f32 1.5, %v415_v28  ;;  %v423_v33 = vmul.f32 %v1437_v29, %v411_v24  ;;  %vm429_vm13 = vweird.f32 %v1437_v29 }
 0x23c   :  { %vm430_vm15 = vmor %vm428_vm14, %vm429_vm13 }
 0x23d   :  { %v417_v35 = vmul.f32 %v1435_v25, %v416_v30  ;;  %v424_v36 = vmul.f32 %v1437_v29, %v423_v33  ;;  %v768_v33 = vld [vmem:[#allocation9 + $0xf0] sm:$0xff] }
 0x23e   :  { %798 = vmatpush.msrb.mxu0 %v768_v33  ;;  %v780_v33 = vld [vmem:[#allocation9 + $0x150] sm:$0xff] }
 0x23f   :  { %v421_v39 = vsel %vm420_vm12, %v1435_v25, %v417_v35  ;;  %v425_v40 = vmul.f32 0.5, %v424_v36 }
 0x240   :  { %v432_v41 = vmul.f32 %v421_v39, %v1838_v16  ;;  %v434_v42 = vmul.f32 %v421_v39, %v1841_v17  ;;  %799 = vmatpush.msrb.mxu0 %v766_v37 }
 0x241   :  { %v426_v46 = vsub.f32 1.5, %v425_v40 }
 0x242   :  { %v442_v47 = vmul.f32 %v438_v38, %v432_v41  ;;  %v444_v52 = vmul.f32 %v438_v38, %v434_v42  ;;  %v767_v38 = vld [vmem:[#allocation9 + $0xe8] sm:$0xff]  ;;  %v764_v41 = vld [vmem:[#allocation9 + $0xd0] sm:$0xff]  ;;  %v765_v42 = vld [vmem:[#allocation9 + $0xd8] sm:$0xff] }
 0x243   :  { %v427_v49 = vmul.f32 %v1437_v29, %v426_v46  ;;  %845 = vmatpush.msra.mxu3 %v767_v38  ;;  %800 = vmatpush.msrb.mxu0 %v764_v41  ;;  %v743_v41 = vld [vmem:[#allocation9 + $0x28] sm:$0xff] }
 0x244   :  { %v452_v50 = vadd.f32 %v448_v43, %v442_v47  ;;  %v454_v60 = vadd.f32 %v448_v43, %v444_v52  ;;  %v762_v47 = vld [vmem:[#allocation9 + $0xc0] sm:$0xff]  ;;  %v760_v52 = vld [vmem:[#allocation9 + $0xb0] sm:$0xff] }
 0x245   :  { %v431_v55 = vsel %vm430_vm15, %v1437_v29, %v427_v49  ;;  %846 = vmatpush.msra.mxu3 %v765_v42  ;;  %v763_v49 = vld [vmem:[#allocation9 + $0xc8] sm:$0xff]  ;;  %801 = vmatpush.msrb.mxu0 %v762_v47  ;;  %v776_v47 = vld [vmem:[#allocation9 + $0x130] sm:$0xff] }
 0x246   :  { %v433_v57 = vmul.f32 %v431_v55, %v1850_v31  ;;  %v435_v58 = vmul.f32 %v431_v55, %v1853_v32  ;;  %vm456_vm0 = vcmp.gt.f32.partialorder %v452_v50, 0.0  ;;  %v467_v16 = vmul.f32 %v465_v54, %v452_v50  ;;  %v779_v42 = vld [vmem:[#allocation9 + $0x148] sm:$0xff] }
 0x247   :  { %v469_v1 = vmul.f32 %v465_v54, %v454_v60  ;;  %vm458_vm4 = vcmp.gt.f32.partialorder %v454_v60, 0.0  ;;  %847 = vmatpush.msra.mxu3 %v763_v49  ;;  %802 = vmatpush.msrb.mxu0 %v760_v52  ;;  %v740_v49 = vld [vmem:[#allocation9 + $0x10] sm:$0xff]  ;;  %v774_v52 = vld [vmem:[#allocation9 + $0x120] sm:$0xff] }
 0x248   :  { %v471_v17 = vsel %vm456_vm0, %v452_v50, %v467_v16  ;;  %v443_v59 = vmul.f32 %v439_v51, %v433_v57  ;;  %v445_v63 = vmul.f32 %v439_v51, %v435_v58  ;;  %v758_v57 = vld [vmem:[#allocation9 + $0xa0] sm:$0xff]  ;;  %v759_v58 = vld [vmem:[#allocation9 + $0xa8] sm:$0xff] }
 0x249   :  { %551 = vmatmul.f32.vlgmr.msrb.gmra.mxu3 %v471_v17  ;;  %597 = vmatmul.f32.vlgmr.msrb.gmra.mxu1 %v471_v17  ;;  %v473_v31 = vsel %vm458_vm4, %v454_v60, %v469_v1  ;;  %v757_v60 = vld [vmem:[#allocation9 + $0x98] sm:$0xff]  ;;  %v754_v1 = vld [vmem:[#allocation9 + $0x80] sm:$0xff] }
 0x24a   :  { %v453_v62 = vadd.f32 %v449_v56, %v443_v59  ;;  %v455_v3 = vadd.f32 %v449_v56, %v445_v63  ;;  %803 = vmatpush.msrb.mxu0 %v758_v57  ;;  %v756_v59 = vld [vmem:[#allocation9 + $0x90] sm:$0xff]  ;;  %v739_v57 = vld [vmem:[#allocation9 + $0x8] sm:$0xff] }
 0x24c   :  { %vm457_vm3 = vcmp.gt.f32.partialorder %v453_v62, 0.0  ;;  %v468_v0 = vmul.f32 %v465_v54, %v453_v62  ;;  %v470_v32 = vmul.f32 %v465_v54, %v455_v3  ;;  %vm459_vm5 = vcmp.gt.f32.partialorder %v455_v3, 0.0  ;;  %v761_v54 = vld [vmem:[#allocation9 + $0xb8] sm:$0xff]  ;;  %804 = vmatpush.msrb.mxu0 %v756_v59 }
 0x24d   :  { %848 = vmatpush.msra.mxu3 %v761_v54  ;;  %v738_v54 = vld [vmem:[#allocation9] sm:$0xff] }
 0x24e   :  { %v472_v2 = vsel %vm457_vm3, %v453_v62, %v468_v0  ;;  %v474_v4 = vsel %vm459_vm5, %v455_v3, %v470_v32  ;;  %805 = vmatpush.msrb.mxu0 %v754_v1  ;;  %v771_v1 = vld [vmem:[#allocation9 + $0x108] sm:$0xff] }
 0x24f   :  { %1396 = vmatmul.msk.f32.vlgmr.msra.gmra.mxu0 %vm370_vm8, %v472_v2  ;;  %1398 = vmatmul.msk.f32.vlgmr.msrb.gmra.mxu2 %vm370_vm8, %v472_v2  ;;  %v755_v2 = vld [vmem:[#allocation9 + $0x88] sm:$0xff] }
 0x250   :  { %849 = vmatpush.msra.mxu3 %v759_v58  ;;  %v775_v58 = vld [vmem:[#allocation9 + $0x128] sm:$0xff] }
 0x251   :  { %554 = vmatmul.f32.gmra.mxu3 %v473_v31  ;;  %600 = vmatmul.f32.gmra.mxu1 %v473_v31 }
 0x252   :  { %850 = vmatpush.msra.mxu3 %v757_v60 }
 0x254   :  { %851 = vmatpush.msra.mxu3 %v755_v2 }
 0x257   :  { %1397 = vmatmul.msk.f32.gmra.mxu0 %vm370_vm8, %v474_v4  ;;  %1399 = vmatmul.msk.f32.gmra.mxu2 %vm370_vm8, %v474_v4  ;;  %v752_v4 = vld [vmem:[#allocation9 + $0x70] sm:$0xff] }
 0x258   :  { %806 = vmatpush.msrb.mxu0 %v752_v4 }
 0x2c6   :  { %v598_v5 = vpop.f32.mrf.mxu1 }
 0x2c7   :  { %v599_v19 = vadd.f32 %v598_v5, %v526_v11  ;;  %v753_v5 = vld [vmem:[#allocation9 + $0x78] sm:$0xff] }
 0x2c8   :  { %852 = vmatpush.msra.mxu3 %v753_v5 }
 0x2cc   :  { %v552_v6 = vpop.f32.mrf.mxu3  ;;  %v575_v7 = vpop.f32.mrf.mxu0 }
 0x2cd   :  { %v553_v12 = vadd.f32 %v552_v6, %v525_v9 }
 0x2ce   :  { %v601_v15 = vpop.f32.mrf.mxu1 }
 0x2cf   :  { %v576_v21 = vadd.f32 %v575_v7, %v553_v12  ;;  %v602_v22 = vadd.f32 %v601_v15, %v526_v11  ;;  %v751_v11 = vld [vmem:[#allocation9 + $0x68] sm:$0xff]  ;;  %v784_v15 = vld [vmem:[#allocation9 + $0x170] sm:$0xff] }
 0x2d0   :  { %853 = vmatpush.msra.mxu3 %v751_v11  ;;  %829 = vmatpush.msra.mxu2 %v784_v15 }
 0x2d2   :  { %v621_v10 = vpop.f32.mrf.mxu2 }
 0x2d3   :  { %v622_v23 = vadd.f32 %v621_v10, %v599_v19  ;;  %v750_v10 = vld [vmem:[#allocation9 + $0x60] sm:$0xff]  ;;  %v749_v19 = vld [vmem:[#allocation9 + $0x58] sm:$0xff] }
 0x2d4   :  { %v555_v13 = vpop.f32.mrf.mxu3  ;;  %v578_v18 = vpop.f32.mrf.mxu0  ;;  %807 = vmatpush.msrb.mxu0 %v750_v10  ;;  %854 = vmatpush.msra.mxu3 %v749_v19  ;;  %v709_v19 = vld [vmem:[%s2122_s14] sm:$0x3] }
 0x2d5   :  { %v556_v14 = vadd.f32 %v555_v13, %v525_v9  ;;  %v635_v29 = vsel %vm370_vm8, %v622_v23, 0.0 }
 0x2d7   :  { %v579_v20 = vadd.f32 %v578_v18, %v556_v14  ;;  %v748_v18 = vld [vmem:[#allocation9 + $0x50] sm:$0xff] }
 0x2d8   :  { %808 = vmatpush.msrb.mxu0 %v748_v18 }
 0x2d9   :  { %v627_v24 = vsel %vm361_vm7, %v579_v20, 0.0 }
 0x2da   :  { %v628_v25 = vadd.f32 %v627_v24, %v576_v21  ;;  %v624_v26 = vpop.f32.mrf.mxu2 }
 0x2db   :  { %v625_v27 = vadd.f32 %v624_v26, %v602_v22  ;;  %v785_v22 = vld [vmem:[#allocation9 + $0x178] sm:$0xff]  ;;  %v746_v26 = vld [vmem:[#allocation9 + $0x40] sm:$0xff] }
 0x2dc   :  { %v629_v28 = vrot.slane %v628_v25, 4  ;;  %875 = vmatpush.msra.mxu1 %v785_v22  ;;  %809 = vmatpush.msrb.mxu0 %v746_v26 }
 0x2dd   :  { %v636_v30 = vsel %vm372_vm9, %v625_v27, 0.0 }
 0x2de   :  { %v630_v35 = vadd.f32 %v629_v28, %v628_v25  ;;  %v637_v36 = vadd.f32 %v636_v30, %v635_v29  ;;  %v782_v25 = vld [vmem:[#allocation9 + $0x160] sm:$0xff]  ;;  %v783_v28 = vld [vmem:[#allocation9 + $0x168] sm:$0xff]  ;;  %810 = vmatpush.msrb.mxu0 %v744_v34 }
 0x2df   :  { %830 = vmatpush.msra.mxu2 %v782_v25  ;;  %876 = vmatpush.msra.mxu1 %v783_v28  ;;  %v711_v25 = vperm.slane %v709_v19, 0 }
 0x2e0   :  { %v631_v39 = vrot.slane %v630_v35, 2  ;;  %v638_v40 = vrot.slane %v637_v36, 4 }
 0x2e1   :  { %831 = vmatpush.msra.mxu2 %v780_v33 }
 0x2e2   :  { %v632_v43 = vadd.f32 %v631_v39, %v630_v35  ;;  %v639_v46 = vadd.f32 %v638_v40, %v637_v36  ;;  %v745_v35 = vld [vmem:[#allocation9 + $0x38] sm:$0xff]  ;;  %v778_v39 = vld [vmem:[#allocation9 + $0x140] sm:$0xff] }
 0x2e3   :  { %v781_v36 = vld [vmem:[#allocation9 + $0x158] sm:$0xff]  ;;  %v742_v40 = vld [vmem:[#allocation9 + $0x20] sm:$0xff]  ;;  %832 = vmatpush.msra.mxu2 %v778_v39 }
 0x2e4   :  { %v633_v50 = vrot.slane %v632_v43, 1  ;;  %v640_v51 = vrot.slane %v639_v46, 2  ;;  %877 = vmatpush.msra.mxu1 %v781_v36  ;;  %811 = vmatpush.msrb.mxu0 %v742_v40 }
 0x2e5   :  { %833 = vmatpush.msra.mxu2 %v776_v47 }
 0x2e6   :  { %v634_v55 = vadd.f32 %v633_v50, %v632_v43  ;;  %v641_v56 = vadd.f32 %v640_v51, %v639_v46  ;;  %878 = vmatpush.msra.mxu1 %v779_v42  ;;  %v741_v50 = vld [vmem:[#allocation9 + $0x18] sm:$0xff]  ;;  %812 = vmatpush.msrb.mxu0 %v740_v49 }
 0x2e7   :  { %v777_v51 = vld [vmem:[#allocation9 + $0x138] sm:$0xff]  ;;  %834 = vmatpush.msra.mxu2 %v774_v52 }
 0x2e8   :  { %v644_v16 = vmul.f32 %v634_v55, %v1778_v61  ;;  %v642_v17 = vrot.slane %v641_v56, 1  ;;  %879 = vmatpush.msra.mxu1 %v777_v51  ;;  %813 = vmatpush.msrb.mxu0 %v738_v54 }
 0x2ea   :  { %v1884_v62 = vsub.f32 %v576_v21, %v644_v16  ;;  %v1886_v63 = vsub.f32 %v579_v20, %v644_v16  ;;  %v643_v0 = vadd.f32 %v642_v17, %v641_v56  ;;  %v772_v16 = vld [vmem:[#allocation9 + $0x110] sm:$0xff]  ;;  %v773_v17 = vld [vmem:[#allocation9 + $0x118] sm:$0xff]  ;;  %880 = vmatpush.msra.mxu1 %v775_v58 }
 0x2eb   :  { %835 = vmatpush.msra.mxu2 %v772_v16 }
 0x2ec   :  { %v650_v3 = vmul.f32 %v1884_v62, %v1884_v62  ;;  %v652_v31 = vmul.f32 %v1886_v63, %v1886_v63  ;;  %v645_v32 = vmul.f32 %v643_v0, %v1778_v61  ;;  %v770_v0 = vld [vmem:[#allocation9 + $0x100] sm:$0xff]  ;;  %881 = vmatpush.msra.mxu1 %v773_v17 }
 0x2ed   :  { %836 = vmatpush.msra.mxu2 %v770_v0 }
 0x2ee   :  { %v654_v6 = vsel %vm361_vm7, %v652_v31, 0.0  ;;  %v1894_v7 = vsub.f32 %v622_v23, %v645_v32  ;;  %v1896_v8 = vsub.f32 %v625_v27, %v645_v32  ;;  %v747_v27 = vld [vmem:[#allocation9 + $0x48] sm:$0xff]  ;;  %882 = vmatpush.msra.mxu1 %v771_v1 }
 0x2ef   :  { %v655_v9 = vadd.f32 %v654_v6, %v650_v3  ;;  %855 = vmatpush.msra.mxu3 %v747_v27 }
 0x2f0   :  { %v651_v12 = vmul.f32 %v1894_v7, %v1894_v7  ;;  %v653_v13 = vmul.f32 %v1896_v8, %v1896_v8 }
 0x2f1   :  { %v656_v14 = vrot.slane %v655_v9, 4  ;;  %856 = vmatpush.msra.mxu3 %v745_v35 }
 0x2f2   :  { %v662_v20 = vsel %vm370_vm8, %v651_v12, 0.0  ;;  %v663_v21 = vsel %vm372_vm9, %v653_v13, 0.0  ;;  %v699_v13 = vld [vmem:[%s2121_s13] sm:$0x3] }
 0x2f3   :  { %v657_v23 = vadd.f32 %v656_v14, %v655_v9  ;;  %v664_v24 = vadd.f32 %v663_v21, %v662_v20  ;;  %857 = vmatpush.msra.mxu3 %v743_v41  ;;  %v701_v20 = vperm.slane %v699_v13, 0  ;;  %v702_v27 = vperm.slane %v699_v13, 1 }
 0x2f5   :  { %v658_v29 = vrot.slane %v657_v23, 2  ;;  %v665_v30 = vrot.slane %v664_v24, 4  ;;  %858 = vmatpush.msra.mxu3 %v741_v50  ;;  %v786_v50 = vld [vmem:[%s2124_s17] sm:$0x3] }
 0x2f6   :  { %v789_v51 = vperm.slane %v786_v50, 1 }
 0x2f7   :  { %v659_v37 = vadd.f32 %v658_v29, %v657_v23  ;;  %v666_v38 = vadd.f32 %v665_v30, %v664_v24  ;;  %859 = vmatpush.msra.mxu3 %v739_v57  ;;  %v712_v30 = vperm.slane %v709_v19, 1  ;;  %v788_v57 = vperm.slane %v786_v50, 0  ;;  %v1050_v50 = vld [vmem:[#allocation11 + $0x148] sm:$0xff] }
 0x2f9   :  { %v660_v43 = vrot.slane %v659_v37, 1  ;;  %v667_v46 = vrot.slane %v666_v38, 2 }
 0x2fb   :  { %v661_v55 = vadd.f32 %v660_v43, %v659_v37  ;;  %v668_v56 = vadd.f32 %v667_v46, %v666_v38  ;;  %v728_v37 = vpop.permute.xlu1 %727 }
 0x2fd   :  { %v671_v59 = vmul.f32 %v661_v55, %v1778_v61  ;;  %v669_v60 = vrot.slane %v668_v56, 1 }
 0x2ff   :  { %v673_v2 = vadd.f32 1e-05, %v671_v59  ;;  %v670_v3 = vadd.f32 %v669_v60, %v668_v56 }
 0x301   :  { %1438 = vrsqrt.f32 %v673_v2  ;;  %v672_v31 = vmul.f32 %v670_v3, %v1778_v61  ;;  %vm681_vm10 = vweird.f32 %v673_v2 }
 0x303   :  { %v674_v32 = vadd.f32 1e-05, %v672_v31 }
 0x305   :  { %1440 = vrsqrt.f32 %v674_v32  ;;  %vm691_vm13 = vweird.f32 %v674_v32 }
 0x307   :  { %v1439_v4 = vpop.eup %1438 }
 0x308   :  { %v676_v5 = vmul.f32 %v1439_v4, %v673_v2  ;;  %vm682_vm6 = vweird.f32 %v1439_v4 }
 0x309   :  { %vm683_vm11 = vmor %vm681_vm10, %vm682_vm6 }
 0x30a   :  { %v677_v6 = vmul.f32 %v1439_v4, %v676_v5 }
 0x30b   :  { %v1441_v9 = vpop.eup %1440 }
 0x30c   :  { %v678_v10 = vmul.f32 0.5, %v677_v6  ;;  %v686_v11 = vmul.f32 %v1441_v9, %v674_v32  ;;  %vm692_vm12 = vweird.f32 %v1441_v9 }
 0x30d   :  { %vm693_vm14 = vmor %vm691_vm13, %vm692_vm12 }
 0x30e   :  { %v679_v12 = vsub.f32 1.5, %v678_v10  ;;  %v687_v14 = vmul.f32 %v1441_v9, %v686_v11 }
 0x310   :  { %v680_v15 = vmul.f32 %v1439_v4, %v679_v12  ;;  %v688_v18 = vmul.f32 0.5, %v687_v14 }
 0x312   :  { %v684_v21 = vsel %vm683_vm11, %v1439_v4, %v680_v15  ;;  %v689_v22 = vsub.f32 1.5, %v688_v18 }
 0x313   :  { %v695_v23 = vmul.f32 %v684_v21, %v1884_v62  ;;  %v697_v24 = vmul.f32 %v684_v21, %v1886_v63 }
 0x314   :  { %v690_v26 = vmul.f32 %v1441_v9, %v689_v22  ;;  %v1040_v22 = vld [vmem:[#allocation11 + $0xf8] sm:$0xff] }
 0x315   :  { %v705_v28 = vmul.f32 %v701_v20, %v695_v23  ;;  %v707_v33 = vmul.f32 %v701_v20, %v697_v24  ;;  %v1037_v23 = vld [vmem:[#allocation11 + $0xe0] sm:$0xff]  ;;  %1115 = vmatpush.msrb.mxu1 %v1040_v22  ;;  %v1019_v22 = vld [vmem:[#allocation11 + $0x50] sm:$0xff] }
 0x316   :  { %v694_v29 = vsel %vm693_vm14, %v1441_v9, %v690_v26  ;;  %v1038_v26 = vld [vmem:[#allocation11 + $0xe8] sm:$0xff] }
 0x317   :  { %v696_v34 = vmul.f32 %v694_v29, %v1894_v7  ;;  %v698_v35 = vmul.f32 %v694_v29, %v1896_v8  ;;  %v715_v36 = vadd.f32 %v711_v25, %v705_v28  ;;  %v717_v41 = vadd.f32 %v711_v25, %v707_v33  ;;  %v1036_v28 = vld [vmem:[#allocation11 + $0xd8] sm:$0xff]  ;;  %1116 = vmatpush.msrb.mxu1 %v1038_v26  ;;  %v1033_v33 = vld [vmem:[#allocation11 + $0xc0] sm:$0xff] }
 0x319   :  { %v706_v38 = vmul.f32 %v702_v27, %v696_v34  ;;  %vm719_vm15 = vcmp.gt.f32.partialorder %v715_v36, 0.0  ;;  %v730_v62 = vmul.f32 %v728_v37, %v715_v36  ;;  %v708_v39 = vmul.f32 %v702_v27, %v698_v35  ;;  %v1035_v27 = vld [vmem:[#allocation11 + $0xd0] sm:$0xff]  ;;  %v1034_v34 = vld [vmem:[#allocation11 + $0xc8] sm:$0xff]  ;;  %v1056_v35 = vld [vmem:[#allocation11 + $0x178] sm:$0xff]  ;;  %1117 = vmatpush.msrb.mxu1 %v1036_v28 }
 0x31a   :  { %v732_v46 = vmul.f32 %v728_v37, %v717_v41  ;;  %vm721_vm3 = vcmp.gt.f32.partialorder %v717_v41, 0.0  ;;  %1146 = vmatpush.msrb.mxu3 %v1056_v35  ;;  %v1018_v28 = vld [vmem:[#allocation11 + $0x48] sm:$0xff] }
 0x31b   :  { %v734_v63 = vsel %vm719_vm15, %v715_v36, %v730_v62  ;;  %v716_v40 = vadd.f32 %v712_v30, %v706_v38  ;;  %v718_v47 = vadd.f32 %v712_v30, %v708_v39  ;;  %v1031_v38 = vld [vmem:[#allocation11 + $0xb0] sm:$0xff]  ;;  %v1032_v39 = vld [vmem:[#allocation11 + $0xb8] sm:$0xff]  ;;  %1118 = vmatpush.msrb.mxu1 %v1034_v34 }
 0x31c   :  { %814 = vmatmul.f32.vlgmr.msrb.gmra.mxu0 %v734_v63  ;;  %860 = vmatmul.f32.vlgmr.msra.gmra.mxu3 %v734_v63  ;;  %v736_v7 = vsel %vm721_vm3, %v717_v41, %v732_v46  ;;  %v1055_v62 = vld [vmem:[#allocation11 + $0x170] sm:$0xff]  ;;  %v1054_v63 = vld [vmem:[#allocation11 + $0x168] sm:$0xff]  ;;  %v1029_v46 = vld [vmem:[#allocation11 + $0xa0] sm:$0xff] }
 0x31d   :  { %vm720_vm0 = vcmp.gt.f32.partialorder %v716_v40, 0.0  ;;  %v731_v42 = vmul.f32 %v728_v37, %v716_v40  ;;  %v733_v8 = vmul.f32 %v728_v37, %v718_v47  ;;  %vm722_vm4 = vcmp.gt.f32.partialorder %v718_v47, 0.0  ;;  %1100 = vmatpush.msra.mxu0 %v1055_v62  ;;  %1147 = vmatpush.msrb.mxu3 %v1054_v63  ;;  %v1016_v34 = vld [vmem:[#allocation11 + $0x38] sm:$0xff]  ;;  %v1011_v63 = vld [vmem:[#allocation11 + $0x10] sm:$0xff] }
 0x31e   :  { %1119 = vmatpush.msrb.mxu1 %v1032_v39 }
 0x31f   :  { %v735_v43 = vsel %vm720_vm0, %v716_v40, %v731_v42  ;;  %v737_v49 = vsel %vm722_vm4, %v718_v47, %v733_v8  ;;  %v1053_v40 = vld [vmem:[#allocation11 + $0x160] sm:$0xff]  ;;  %v1030_v47 = vld [vmem:[#allocation11 + $0xa8] sm:$0xff] }
 0x320   :  { %1400 = vmatmul.msk.f32.vlgmr.msra.gmra.mxu2 %vm370_vm8, %v735_v43  ;;  %1402 = vmatmul.msk.f32.vlgmr.msra.gmra.mxu1 %vm370_vm8, %v735_v43  ;;  %v1052_v43 = vld [vmem:[#allocation11 + $0x158] sm:$0xff] }
 0x321   :  { %1101 = vmatpush.msra.mxu0 %v1053_v40  ;;  %1148 = vmatpush.msrb.mxu3 %v1052_v43  ;;  %v1012_v40 = vld [vmem:[#allocation11 + $0x18] sm:$0xff]  ;;  %v1009_v43 = vld [vmem:[#allocation11] sm:$0xff] }
 0x322   :  { %1120 = vmatpush.msrb.mxu1 %v1030_v47 }
 0x323   :  { %1149 = vmatpush.msrb.mxu3 %v1050_v50 }
 0x324   :  { %817 = vmatmul.f32.gmra.mxu0 %v736_v7  ;;  %863 = vmatmul.f32.gmra.mxu3 %v736_v7  ;;  %v1051_v7 = vld [vmem:[#allocation11 + $0x150] sm:$0xff] }
 0x325   :  { %1102 = vmatpush.msra.mxu0 %v1051_v7 }
 0x328   :  { %1401 = vmatmul.msk.f32.gmra.mxu2 %vm370_vm8, %v737_v49  ;;  %1403 = vmatmul.msk.f32.gmra.mxu1 %vm370_vm8, %v737_v49 }
 0x399   :  { %v815_v52 = vpop.f32.mrf.mxu0 }
 0x39a   :  { %v816_v17 = vadd.f32 %v815_v52, %v788_v57  ;;  %v1027_v52 = vld [vmem:[#allocation11 + $0x90] sm:$0xff] }
 0x39d   :  { %v884_v54 = vpop.f32.mrf.mxu1 }
 0x39f   :  { %v861_v55 = vpop.f32.mrf.mxu3 }
 0x3a0   :  { %v862_v56 = vadd.f32 %v861_v55, %v789_v51 }
 0x3a1   :  { %v818_v59 = vpop.f32.mrf.mxu0 }
 0x3a2   :  { %v885_v16 = vadd.f32 %v884_v54, %v862_v56  ;;  %v819_v31 = vadd.f32 %v818_v59, %v788_v57  ;;  %v1028_v57 = vld [vmem:[#allocation11 + $0x98] sm:$0xff] }
 0x3a3   :  { %v838_v58 = vpop.f32.mrf.mxu2  ;;  %1121 = vmatpush.msrb.mxu1 %v1028_v57 }
 0x3a4   :  { %v891_v0 = vadd.f32 %v885_v16, %v1828_v48  ;;  %v839_v2 = vadd.f32 %v838_v58, %v816_v17  ;;  %v1048_v58 = vld [vmem:[#allocation11 + $0x138] sm:$0xff]  ;;  %v1025_v16 = vld [vmem:[#allocation11 + $0x80] sm:$0xff]  ;;  %v1047_v17 = vld [vmem:[#allocation11 + $0x130] sm:$0xff] }
 0x3a5   :  { %v887_v3 = vpop.f32.mrf.mxu1  ;;  %1150 = vmatpush.msrb.mxu3 %v1048_v58 }
 0x3a6   :  { %v1924_v5 = vmul.f32 0.5, %v891_v0  ;;  %v890_v10 = vadd.f32 %v839_v2, %v1823_v45  ;;  %v1026_v2 = vld [vmem:[#allocation11 + $0x88] sm:$0xff] }
 0x3a7   :  { %v864_v60 = vpop.f32.mrf.mxu3  ;;  %1122 = vmatpush.msrb.mxu1 %v1026_v2 }
 0x3a8   :  { %v865_v1 = vadd.f32 %v864_v60, %v789_v51  ;;  %v906_v48 = vsel %vm370_vm8, %v1924_v5, 0.0  ;;  %v1937_v15 = vmul.f32 0.5, %v890_v10  ;;  %v1049_v51 = vld [vmem:[#allocation11 + $0x140] sm:$0xff] }
 0x3a9   :  { %1103 = vmatpush.msra.mxu0 %v1049_v51 }
 0x3aa   :  { %v888_v32 = vadd.f32 %v887_v3, %v865_v1  ;;  %v1046_v3 = vld [vmem:[#allocation11 + $0x128] sm:$0xff] }
 0x3ab   :  { %v841_v4 = vpop.f32.mrf.mxu2  ;;  %1104 = vmatpush.msra.mxu0 %v1047_v17  ;;  %1151 = vmatpush.msrb.mxu3 %v1046_v3 }
 0x3ac   :  { %v893_v6 = vadd.f32 %v888_v32, %v1830_v53  ;;  %v842_v9 = vadd.f32 %v841_v4, %v819_v31  ;;  %v1023_v31 = vld [vmem:[#allocation11 + $0x70] sm:$0xff]  ;;  %v1045_v32 = vld [vmem:[#allocation11 + $0x120] sm:$0xff] }
 0x3ad   :  { %1105 = vmatpush.msra.mxu0 %v1045_v32 }
 0x3ae   :  { %v1928_v11 = vmul.f32 0.5, %v893_v6  ;;  %v892_v12 = vadd.f32 %v842_v9, %v1821_v44  ;;  %v1039_v44 = vld [vmem:[#allocation11 + $0xf0] sm:$0xff] }
 0x3af   :  { %1069 = vmatpush.msrb.mxu2 %v1039_v44 }
 0x3b0   :  { %v907_v13 = vsel %vm372_vm9, %v1928_v11, 0.0  ;;  %v1935_v14 = vmul.f32 0.5, %v892_v12  ;;  %v1024_v12 = vld [vmem:[#allocation11 + $0x78] sm:$0xff] }
 0x3b1   :  { %v908_v18 = vadd.f32 %v907_v13, %v906_v48  ;;  %1070 = vmatpush.msrb.mxu2 %v1037_v23  ;;  %v1044_v48 = vld [vmem:[#allocation11 + $0x118] sm:$0xff]  ;;  %1123 = vmatpush.msrb.mxu1 %v1024_v12  ;;  %v1041_v23 = vld [vmem:[#allocation11 + $0x100] sm:$0xff] }
 0x3b2   :  { %v898_v53 = vsel %vm361_vm7, %v1935_v14, 0.0  ;;  %1152 = vmatpush.msrb.mxu3 %v1044_v48 }
 0x3b3   :  { %v909_v19 = vrot.slane %v908_v18, 4  ;;  %v899_v45 = vadd.f32 %v898_v53, %v1937_v15  ;;  %1071 = vmatpush.msrb.mxu2 %v1035_v27  ;;  %v1043_v53 = vld [vmem:[#allocation11 + $0x110] sm:$0xff]  ;;  %v1017_v27 = vld [vmem:[#allocation11 + $0x40] sm:$0xff] }
 0x3b4   :  { %1106 = vmatpush.msra.mxu0 %v1043_v53 }
 0x3b5   :  { %v910_v20 = vadd.f32 %v909_v19, %v908_v18  ;;  %v900_v21 = vrot.slane %v899_v45, 4  ;;  %1072 = vmatpush.msrb.mxu2 %v1033_v33  ;;  %v1021_v18 = vld [vmem:[#allocation11 + $0x60] sm:$0xff]  ;;  %v1015_v33 = vld [vmem:[#allocation11 + $0x30] sm:$0xff] }
 0x3b6   :  { %1107 = vmatpush.msra.mxu0 %v1041_v23  ;;  %v999_v23 = vpop.permute.xlu2 %998 }
 0x3b7   :  { %v911_v24 = vrot.slane %v910_v20, 2  ;;  %v901_v25 = vadd.f32 %v900_v21, %v899_v45  ;;  %1073 = vmatpush.msrb.mxu2 %v1031_v38  ;;  %v1022_v45 = vld [vmem:[#allocation11 + $0x68] sm:$0xff] }
 0x3b8   :  { %1124 = vmatpush.msrb.mxu1 %v1022_v45  ;;  %v1014_v38 = vld [vmem:[#allocation11 + $0x28] sm:$0xff] }
 0x3b9   :  { %v912_v29 = vadd.f32 %v911_v24, %v910_v20  ;;  %v902_v30 = vrot.slane %v901_v25, 2  ;;  %1074 = vmatpush.msrb.mxu2 %v1029_v46  ;;  %v1042_v20 = vld [vmem:[#allocation11 + $0x108] sm:$0xff]  ;;  %v1020_v24 = vld [vmem:[#allocation11 + $0x58] sm:$0xff] }
 0x3ba   :  { %1153 = vmatpush.msrb.mxu3 %v1042_v20  ;;  %1125 = vmatpush.msrb.mxu1 %v1020_v24  ;;  %v1010_v46 = vld [vmem:[#allocation11 + $0x8] sm:$0xff] }
 0x3bb   :  { %v913_v36 = vrot.slane %v912_v29, 1  ;;  %v903_v37 = vadd.f32 %v902_v30, %v901_v25  ;;  %1075 = vmatpush.msrb.mxu2 %v1027_v52 }
 0x3bc   :  { %1126 = vmatpush.msrb.mxu1 %v1018_v28 }
 0x3bd   :  { %v914_v41 = vadd.f32 %v913_v36, %v912_v29  ;;  %v904_v42 = vrot.slane %v903_v37, 1  ;;  %1076 = vmatpush.msrb.mxu2 %v1025_v16 }
 0x3be   :  { %1127 = vmatpush.msrb.mxu1 %v1016_v34  ;;  %v1057_v34 = vld [vmem:[%s2128_s22] sm:$0x3] }
 0x3bf   :  { %v916_v8 = vmul.f32 %v914_v41, %v1778_v61  ;;  %v905_v49 = vadd.f32 %v904_v42, %v903_v37  ;;  %1077 = vmatpush.msrb.mxu2 %v1023_v31  ;;  %v1013_v37 = vld [vmem:[#allocation11 + $0x20] sm:$0xff]  ;;  %v980_v31 = vld [vmem:[%s2126_s19] sm:$0x3]  ;;  %s1559_s19 = smov [#allocation12]  }
 0x3c0   :  { %1128 = vmatpush.msrb.mxu1 %v1014_v38  ;;  %v983_v12 = vperm.slane %v980_v31, 1  ;;  %v982_v45 = vperm.slane %v980_v31, 0  ;;  %s1366_s22 = sshll.u32 %s1559_s19, 4  ;;  %s1367_s22 = int_to_ptr.vmem [resolvable:$true] %s1366_s22 }
 0x3c1   :  { %v1944_v54 = vsub.f32 %v1924_v5, %v916_v8  ;;  %v1947_v55 = vsub.f32 %v1928_v11, %v916_v8  ;;  %v915_v56 = vmul.f32 %v905_v49, %v1778_v61  ;;  %1078 = vmatpush.msrb.mxu2 %v1021_v18 }
 0x3c2   :  { %1129 = vmatpush.msrb.mxu1 %v1012_v40 }
 0x3c3   :  { %v922_v59 = vmul.f32 %v1944_v54, %v1944_v54  ;;  %v924_v60 = vmul.f32 %v1947_v55, %v1947_v55  ;;  %v1955_v0 = vsub.f32 %v1937_v15, %v915_v56  ;;  %v1958_v1 = vsub.f32 %v1935_v14, %v915_v56  ;;  %1079 = vmatpush.msrb.mxu2 %v1019_v22 }
 0x3c4   :  { %1130 = vmatpush.msrb.mxu1 %v1010_v46 }
 0x3c5   :  { %v933_v4 = vsel %vm370_vm8, %v922_v59, 0.0  ;;  %v934_v6 = vsel %vm372_vm9, %v924_v60, 0.0  ;;  %v921_v9 = vmul.f32 %v1955_v0, %v1955_v0  ;;  %v923_v10 = vmul.f32 %v1958_v1, %v1958_v1  ;;  %1080 = vmatpush.msrb.mxu2 %v1017_v27  ;;  %v970_v60 = vld [vmem:[%s2125_s18] sm:$0x3] }
 0x3c6   :  { %v935_v13 = vadd.f32 %v934_v6, %v933_v4  ;;  %v973_v4 = vperm.slane %v970_v60, 1  ;;  %v972_v48 = vperm.slane %v970_v60, 0 }
 0x3c7   :  { %v925_v19 = vsel %vm361_vm7, %v923_v10, 0.0  ;;  %1081 = vmatpush.msrb.mxu2 %v1015_v33 }
 0x3c8   :  { %v936_v21 = vrot.slane %v935_v13, 4  ;;  %v926_v44 = vadd.f32 %v925_v19, %v921_v9 }
 0x3c9   :  { %1082 = vmatpush.msrb.mxu2 %v1013_v37 }
 0x3ca   :  { %v937_v25 = vadd.f32 %v936_v21, %v935_v13  ;;  %v927_v26 = vrot.slane %v926_v44, 4 }
 0x3cb   :  { %1083 = vmatpush.msrb.mxu2 %v1011_v63 }
 0x3cc   :  { %v938_v29 = vrot.slane %v937_v25, 2  ;;  %v928_v30 = vadd.f32 %v927_v26, %v926_v44 }
 0x3cd   :  { %1084 = vmatpush.msrb.mxu2 %v1009_v43 }
 0x3ce   :  { %v939_v35 = vadd.f32 %v938_v29, %v937_v25  ;;  %v929_v36 = vrot.slane %v928_v30, 2 }
 0x3d0   :  { %v940_v62 = vrot.slane %v939_v35, 1  ;;  %v930_v39 = vadd.f32 %v929_v36, %v928_v30  ;;  %v1060_v36 = vperm.slane %v1057_v34, 1 }
 0x3d2   :  { %v941_v41 = vadd.f32 %v940_v62, %v939_v35  ;;  %v931_v42 = vrot.slane %v930_v39, 1 }
 0x3d4   :  { %v943_v47 = vmul.f32 %v941_v41, %v1778_v61  ;;  %v932_v7 = vadd.f32 %v931_v42, %v930_v39  ;;  %v1059_v39 = vperm.slane %v1057_v34, 0  ;;  %v1302_v34 = vld [vmem:[%s2131_s26 + $0xb0] sm:$0xff] }
 0x3d6   :  { %v942_v8 = vmul.f32 %v932_v7, %v1778_v61  ;;  %v945_v49 = vadd.f32 1e-05, %v943_v47 }
 0x3d8   :  { %1442 = vrsqrt.f32 %v945_v49  ;;  %v944_v50 = vadd.f32 1e-05, %v942_v8  ;;  %vm962_vm6 = vweird.f32 %v945_v49 }
 0x3da   :  { %1444 = vrsqrt.f32 %v944_v50  ;;  %vm952_vm12 = vweird.f32 %v944_v50 }
 0x3de   :  { %v1443_v51 = vpop.eup %1442 }
 0x3df   :  { %v957_v52 = vmul.f32 %v1443_v51, %v945_v49  ;;  %vm963_vm5 = vweird.f32 %v1443_v51 }
 0x3e0   :  { %v1445_v56 = vpop.eup %1444  ;;  %vm964_vm11 = vmor %vm962_vm6, %vm963_vm5 }
 0x3e1   :  { %v958_v57 = vmul.f32 %v1443_v51, %v957_v52  ;;  %v947_v58 = vmul.f32 %v1445_v56, %v944_v50  ;;  %vm953_vm10 = vweird.f32 %v1445_v56 }
 0x3e2   :  { %vm954_vm13 = vmor %vm952_vm12, %vm953_vm10 }
 0x3e3   :  { %v959_v16 = vmul.f32 0.5, %v958_v57  ;;  %v948_v17 = vmul.f32 %v1445_v56, %v947_v58 }
 0x3e5   :  { %v960_v59 = vsub.f32 1.5, %v959_v16  ;;  %v949_v2 = vmul.f32 0.5, %v948_v17 }
 0x3e7   :  { %v961_v3 = vmul.f32 %v1443_v51, %v960_v59  ;;  %v950_v32 = vsub.f32 1.5, %v949_v2 }
 0x3e9   :  { %v965_v6 = vsel %vm964_vm11, %v1443_v51, %v961_v3  ;;  %v951_v9 = vmul.f32 %v1445_v56, %v950_v32 }
 0x3ea   :  { %v967_v10 = vmul.f32 %v965_v6, %v1944_v54  ;;  %v969_v13 = vmul.f32 %v965_v6, %v1947_v55 }
 0x3eb   :  { %v955_v18 = vsel %vm954_vm13, %v1445_v56, %v951_v9 }
 0x3ec   :  { %v977_v53 = vmul.f32 %v973_v4, %v967_v10  ;;  %v966_v19 = vmul.f32 %v955_v18, %v1955_v0  ;;  %v968_v20 = vmul.f32 %v955_v18, %v1958_v1  ;;  %v979_v22 = vmul.f32 %v973_v4, %v969_v13  ;;  %v1293_v18 = vld [vmem:[%s2131_s26 + $0x68] sm:$0xff] }
 0x3ee   :  { %v987_v21 = vadd.f32 %v983_v12, %v977_v53  ;;  %v976_v44 = vmul.f32 %v972_v48, %v966_v19  ;;  %v978_v54 = vmul.f32 %v972_v48, %v968_v20  ;;  %v989_v28 = vadd.f32 %v983_v12, %v979_v22 }
 0x3f0   :  { %vm991_vm14 = vcmp.gt.f32.partialorder %v987_v21, 0.0  ;;  %v1002_v24 = vmul.f32 %v999_v23, %v987_v21  ;;  %v986_v25 = vadd.f32 %v982_v45, %v976_v44  ;;  %v988_v0 = vadd.f32 %v982_v45, %v978_v54  ;;  %v1292_v45 = vld [vmem:[%s2131_s26 + $0x60] sm:$0xff]  ;;  %v1291_v44 = vld [vmem:[%s2131_s26 + $0x58] sm:$0xff] }
 0x3f1   :  { %v1004_v1 = vmul.f32 %v999_v23, %v989_v28  ;;  %vm993_vm0 = vcmp.gt.f32.partialorder %v989_v28, 0.0 }
 0x3f2   :  { %v1006_v26 = vsel %vm991_vm14, %v987_v21, %v1002_v24  ;;  %vm990_vm15 = vcmp.gt.f32.partialorder %v986_v25, 0.0  ;;  %v1001_v27 = vmul.f32 %v999_v23, %v986_v25  ;;  %v1003_v29 = vmul.f32 %v999_v23, %v988_v0 }
 0x3f3   :  { %1404 = vmatmul.msk.f32.vlgmr.msra.gmra.mxu0 %vm370_vm8, %v1006_v26  ;;  %1406 = vmatmul.msk.f32.vlgmr.msrb.gmra.mxu3 %vm370_vm8, %v1006_v26  ;;  %vm992_vm3 = vcmp.gt.f32.partialorder %v988_v0, 0.0  ;;  %v1008_v30 = vsel %vm993_vm0, %v989_v28, %v1004_v1  ;;  %v1303_v28 = vld [vmem:[%s2131_s26 + $0xb8] sm:$0xff] }
 0x3f4   :  { %v1005_v55 = vsel %vm990_vm15, %v986_v25, %v1001_v27  ;;  %v1007_v33 = vsel %vm992_vm3, %v988_v0, %v1003_v29  ;;  %v1290_v25 = vld [vmem:[%s2131_s26 + $0x50] sm:$0xff]  ;;  %1345 = vmatpush.msra.mxu2 %v1303_v28 }
 0x3f5   :  { %1085 = vmatmul.f32.vlgmr.msrb.gmra.mxu2 %v1005_v55  ;;  %1131 = vmatmul.f32.vlgmr.msrb.gmra.mxu1 %v1005_v55  ;;  %v1289_v55 = vld [vmem:[%s2131_s26 + $0x48] sm:$0xff] }
 0x3f6   :  { %1346 = vmatpush.msra.mxu2 %v1302_v34 }
 0x3fb   :  { %1405 = vmatmul.msk.f32.gmra.mxu0 %vm370_vm8, %v1008_v30  ;;  %1407 = vmatmul.msk.f32.gmra.mxu3 %vm370_vm8, %v1008_v30 }
 0x3fd   :  { %1088 = vmatmul.f32.gmra.mxu2 %v1007_v33  ;;  %1134 = vmatmul.f32.gmra.mxu1 %v1007_v33 }
 0x470   :  { %v1109_v62 = vpop.f32.mrf.mxu0 }
 0x472   :  { %v1132_v35 = vpop.f32.mrf.mxu1 }
 0x473   :  { %v1133_v38 = vadd.f32 %v1132_v35, %v1060_v36  ;;  %v1288_v35 = vld [vmem:[%s2131_s26 + $0x40] sm:$0xff] }
 0x476   :  { %v1155_v37 = vpop.f32.mrf.mxu3 }
 0x477   :  { %v1156_v40 = vadd.f32 %v1155_v37, %v1133_v38 }
 0x478   :  { %v1086_v63 = vpop.f32.mrf.mxu2  ;;  %v1112_v56 = vpop.f32.mrf.mxu0 }
 0x479   :  { %v1087_v42 = vadd.f32 %v1086_v63, %v1059_v39  ;;  %v1162_v43 = vadd.f32 %v1156_v40, %v1924_v5 }
 0x47a   :  { %v1135_v41 = vpop.f32.mrf.mxu1 }
 0x47b   :  { %v1136_v46 = vadd.f32 %v1135_v41, %v1060_v36  ;;  %v1110_v8 = vadd.f32 %v1109_v62, %v1087_v42  ;;  %v1166_v50 = vmul.f32 0.5, %v1162_v43  ;;  %v1301_v62 = vld [vmem:[%s2131_s26 + $0xa8] sm:$0xff]  ;;  %v1300_v42 = vld [vmem:[%s2131_s26 + $0xa0] sm:$0xff]  ;;  %v1286_v43 = vld [vmem:[%s2131_s26 + $0x30] sm:$0xff] }
 0x47c   :  { %1347 = vmatpush.msra.mxu2 %v1301_v62 }
 0x47d   :  { %v1161_v16 = vadd.f32 %v1110_v8, %v1937_v15  ;;  %v1177_v17 = vsel %vm370_vm8, %v1166_v50, 0.0  ;;  %v1295_v15 = vld [vmem:[%s2131_s26 + $0x78] sm:$0xff]  ;;  %v1285_v8 = vld [vmem:[%s2131_s26 + $0x28] sm:$0xff] }
 0x47e   :  { %v1158_v47 = vpop.f32.mrf.mxu3  ;;  %1314 = vmatpush.msrb.mxu0 %v1295_v15  ;;  %1348 = vmatpush.msra.mxu2 %v1300_v42 }
 0x47f   :  { %v1159_v7 = vadd.f32 %v1158_v47, %v1136_v46  ;;  %v1165_v3 = vmul.f32 0.5, %v1161_v16 }
 0x480   :  { %v1089_v49 = vpop.f32.mrf.mxu2 }
 0x481   :  { %v1164_v51 = vadd.f32 %v1159_v7, %v1928_v11  ;;  %v1090_v52 = vadd.f32 %v1089_v49, %v1059_v39  ;;  %v1287_v39 = vld [vmem:[%s2131_s26 + $0x38] sm:$0xff]  ;;  %v1298_v49 = vld [vmem:[%s2131_s26 + $0x90] sm:$0xff] }
 0x482   :  { %v1299_v7 = vld [vmem:[%s2131_s26 + $0x98] sm:$0xff] }
 0x483   :  { %v1168_v57 = vmul.f32 0.5, %v1164_v51  ;;  %v1113_v58 = vadd.f32 %v1112_v56, %v1090_v52  ;;  %1349 = vmatpush.msra.mxu2 %v1299_v7  ;;  %v1297_v56 = vld [vmem:[%s2131_s26 + $0x88] sm:$0xff] }
 0x485   :  { %v1178_v59 = vsel %vm372_vm9, %v1168_v57, 0.0  ;;  %v1163_v5 = vadd.f32 %v1113_v58, %v1935_v14  ;;  %v1294_v14 = vld [vmem:[%s2131_s26 + $0x70] sm:$0xff]  ;;  %1350 = vmatpush.msra.mxu2 %v1298_v49 }
 0x486   :  { %v1179_v60 = vadd.f32 %v1178_v59, %v1177_v17  ;;  %1315 = vmatpush.msrb.mxu0 %v1294_v14  ;;  %v1296_v17 = vld [vmem:[%s2131_s26 + $0x80] sm:$0xff]  ;;  %v1282_v59 = vld [vmem:[%s2131_s26 + $0x10] sm:$0xff] }
 0x487   :  { %v1167_v2 = vmul.f32 0.5, %v1163_v5  ;;  %1351 = vmatpush.msra.mxu2 %v1297_v56 }
 0x488   :  { %v1180_v31 = vrot.slane %v1179_v60, 4  ;;  %1316 = vmatpush.msrb.mxu0 %v1293_v18 }
 0x489   :  { %v1169_v32 = vsel %vm361_vm7, %v1167_v2, 0.0  ;;  %1352 = vmatpush.msra.mxu2 %v1296_v17 }
 0x48a   :  { %v1181_v4 = vadd.f32 %v1180_v31, %v1179_v60  ;;  %v1170_v11 = vadd.f32 %v1169_v32, %v1165_v3  ;;  %1317 = vmatpush.msrb.mxu0 %v1292_v45  ;;  %v1280_v32 = vld [vmem:[%s2131_s26] sm:$0xff] }
 0x48c   :  { %v1182_v6 = vrot.slane %v1181_v4, 2  ;;  %v1171_v9 = vrot.slane %v1170_v11, 4  ;;  %1318 = vmatpush.msrb.mxu0 %v1291_v44 }
 0x48e   :  { %v1183_v10 = vadd.f32 %v1182_v6, %v1181_v4  ;;  %v1172_v12 = vadd.f32 %v1171_v9, %v1170_v11  ;;  %1319 = vmatpush.msrb.mxu0 %v1290_v25 }
 0x490   :  { %v1184_v48 = vrot.slane %v1183_v10, 1  ;;  %v1173_v13 = vrot.slane %v1172_v12, 2  ;;  %1320 = vmatpush.msrb.mxu0 %v1289_v55 }
 0x492   :  { %v1185_v53 = vadd.f32 %v1184_v48, %v1183_v10  ;;  %v1174_v19 = vadd.f32 %v1173_v13, %v1172_v12  ;;  %1321 = vmatpush.msrb.mxu0 %v1288_v35 }
 0x494   :  { %v1187_v20 = vmul.f32 %v1185_v53, %v1778_v61  ;;  %v1175_v21 = vrot.slane %v1174_v19, 1  ;;  %1322 = vmatpush.msrb.mxu0 %v1287_v39  ;;  %v1241_v53 = vld [vmem:[%s2129_s23] sm:$0x3] }
 0x495   :  { %v1243_v55 = vperm.slane %v1241_v53, 0 }
 0x496   :  { %v2009_v22 = vsub.f32 %v1166_v50, %v1187_v20  ;;  %v2011_v23 = vsub.f32 %v1168_v57, %v1187_v20  ;;  %v1176_v24 = vadd.f32 %v1175_v21, %v1174_v19  ;;  %1323 = vmatpush.msrb.mxu0 %v1286_v43  ;;  %v1284_v50 = vld [vmem:[%s2131_s26 + $0x20] sm:$0xff]  ;;  %v1283_v57 = vld [vmem:[%s2131_s26 + $0x18] sm:$0xff]  ;;  %v1244_v21 = vperm.slane %v1241_v53, 1 }
 0x498   :  { %v1193_v54 = vmul.f32 %v2009_v22, %v2009_v22  ;;  %v1195_v26 = vmul.f32 %v2011_v23, %v2011_v23  ;;  %v1186_v27 = vmul.f32 %v1176_v24, %v1778_v61  ;;  %1324 = vmatpush.msrb.mxu0 %v1285_v8 }
 0x49a   :  { %v1204_v0 = vsel %vm370_vm8, %v1193_v54, 0.0  ;;  %v1205_v1 = vsel %vm372_vm9, %v1195_v26, 0.0  ;;  %v2029_v29 = vsub.f32 %v1165_v3, %v1186_v27  ;;  %v2031_v30 = vsub.f32 %v1167_v2, %v1186_v27  ;;  %1325 = vmatpush.msrb.mxu0 %v1284_v50  ;;  %v1281_v2 = vld [vmem:[%s2131_s26 + $0x8] sm:$0xff] }
 0x49b   :  { %v1206_v33 = vadd.f32 %v1205_v1, %v1204_v0 }
 0x49c   :  { %v1192_v36 = vmul.f32 %v2029_v29, %v2029_v29  ;;  %v1194_v37 = vmul.f32 %v2031_v30, %v2031_v30  ;;  %1326 = vmatpush.msrb.mxu0 %v1283_v57 }
 0x49d   :  { %v1207_v38 = vrot.slane %v1206_v33, 4 }
 0x49e   :  { %v1196_v63 = vsel %vm361_vm7, %v1194_v37, 0.0  ;;  %1327 = vmatpush.msrb.mxu0 %v1282_v59  ;;  %v1270_v37 = vpop.permute.xlu0 %1269 }
 0x49f   :  { %v1208_v40 = vadd.f32 %v1207_v38, %v1206_v33  ;;  %v1197_v41 = vadd.f32 %v1196_v63, %v1192_v36 }
 0x4a0   :  { %1328 = vmatpush.msrb.mxu0 %v1281_v2 }
 0x4a1   :  { %v1209_v46 = vrot.slane %v1208_v40, 2  ;;  %v1198_v47 = vrot.slane %v1197_v41, 4 }
 0x4a2   :  { %1329 = vmatpush.msrb.mxu0 %v1280_v32 }
 0x4a3   :  { %v1210_v51 = vadd.f32 %v1209_v46, %v1208_v40  ;;  %v1199_v52 = vadd.f32 %v1198_v47, %v1197_v41  ;;  %v1429_v47 = vld [vmem:[%s2132_s27] ss:$0 sm:$0xff]  ;;  %s1560_s27 = smov 128  }
 0x4a5   :  { %v1211_v58 = vrot.slane %v1210_v51, 1  ;;  %v1200_v16 = vrot.slane %v1199_v52, 2 }
 0x4a7   :  { %v1212_v5 = vadd.f32 %v1211_v58, %v1210_v51  ;;  %v1201_v60 = vadd.f32 %v1200_v16, %v1199_v52 }
 0x4a9   :  { %v1214_v3 = vmul.f32 %v1212_v5, %v1778_v61  ;;  %v1202_v31 = vrot.slane %v1201_v60, 1 }
 0x4ab   :  { %v1216_v4 = vadd.f32 1e-05, %v1214_v3  ;;  %v1203_v11 = vadd.f32 %v1202_v31, %v1201_v60 }
 0x4ad   :  { %1446 = vrsqrt.f32 %v1216_v4  ;;  %v1213_v6 = vmul.f32 %v1203_v11, %v1778_v61  ;;  %vm1233_vm9 = vweird.f32 %v1216_v4  ;;  %v1251_v61 = vld [vmem:[%s2130_s24] sm:$0x3] }
 0x4ae   :  { %v1254_v26 = vperm.slane %v1251_v61, 1  ;;  %v1253_v1 = vperm.slane %v1251_v61, 0 }
 0x4af   :  { %v1215_v9 = vadd.f32 1e-05, %v1213_v6 }
 0x4b1   :  { %1448 = vrsqrt.f32 %v1215_v9  ;;  %vm1223_vm6 = vweird.f32 %v1215_v9 }
 0x4b3   :  { %v1447_v15 = vpop.eup %1446 }
 0x4b4   :  { %v1228_v10 = vmul.f32 %v1447_v15, %v1216_v4  ;;  %vm1234_vm7 = vweird.f32 %v1447_v15 }
 0x4b5   :  { %vm1235_vm4 = vmor %vm1233_vm9, %vm1234_vm7 }
 0x4b6   :  { %v1229_v12 = vmul.f32 %v1447_v15, %v1228_v10 }
 0x4b7   :  { %v1449_v14 = vpop.eup %1448 }
 0x4b8   :  { %v1230_v48 = vmul.f32 0.5, %v1229_v12  ;;  %v1218_v13 = vmul.f32 %v1449_v14, %v1215_v9  ;;  %vm1224_vm5 = vweird.f32 %v1449_v14 }
 0x4b9   :  { %vm1225_vm10 = vmor %vm1223_vm6, %vm1224_vm5 }
 0x4ba   :  { %v1231_v18 = vsub.f32 1.5, %v1230_v48  ;;  %v1219_v19 = vmul.f32 %v1449_v14, %v1218_v13 }
 0x4bc   :  { %v1232_v45 = vmul.f32 %v1447_v15, %v1231_v18  ;;  %v1220_v20 = vmul.f32 0.5, %v1219_v19 }
 0x4be   :  { %v1236_v44 = vsel %vm1235_vm4, %v1447_v15, %v1232_v45  ;;  %v1221_v24 = vsub.f32 1.5, %v1220_v20 }
 0x4bf   :  { %v1238_v25 = vmul.f32 %v1236_v44, %v2009_v22  ;;  %v1240_v54 = vmul.f32 %v1236_v44, %v2011_v23 }
 0x4c0   :  { %v1222_v27 = vmul.f32 %v1449_v14, %v1221_v24 }
 0x4c1   :  { %v1248_v28 = vmul.f32 %v1244_v21, %v1238_v25  ;;  %v1250_v35 = vmul.f32 %v1244_v21, %v1240_v54 }
 0x4c2   :  { %v1226_v0 = vsel %vm1225_vm10, %v1449_v14, %v1222_v27 }
 0x4c3   :  { %v1258_v33 = vadd.f32 %v1254_v26, %v1248_v28  ;;  %v1237_v34 = vmul.f32 %v1226_v0, %v2029_v29  ;;  %v1239_v36 = vmul.f32 %v1226_v0, %v2031_v30  ;;  %v1260_v39 = vadd.f32 %v1254_v26, %v1250_v35 }
 0x4c5   :  { %vm1262_vm11 = vcmp.gt.f32.partialorder %v1258_v33, 0.0  ;;  %v1273_v38 = vmul.f32 %v1270_v37, %v1258_v33  ;;  %v1247_v22 = vmul.f32 %v1243_v55, %v1237_v34  ;;  %v1249_v63 = vmul.f32 %v1243_v55, %v1239_v36 }
 0x4c6   :  { %v1275_v42 = vmul.f32 %v1270_v37, %v1260_v39  ;;  %vm1264_vm13 = vcmp.gt.f32.partialorder %v1260_v39, 0.0 }
 0x4c7   :  { %v1277_v62 = vsel %vm1262_vm11, %v1258_v33, %v1273_v38  ;;  %v1257_v23 = vadd.f32 %v1253_v1, %v1247_v22  ;;  %v1259_v43 = vadd.f32 %v1253_v1, %v1249_v63 }
 0x4c8   :  { %1408 = vmatmul.msk.f32.vlgmr.msra.gmra.mxu2 %vm370_vm8, %v1277_v62  ;;  %v1279_v29 = vsel %vm1264_vm13, %v1260_v39, %v1275_v42 }
 0x4c9   :  { %vm1261_vm12 = vcmp.gt.f32.partialorder %v1257_v23, 0.0  ;;  %v1272_v40 = vmul.f32 %v1270_v37, %v1257_v23  ;;  %v1274_v46 = vmul.f32 %v1270_v37, %v1259_v43  ;;  %vm1263_vm14 = vcmp.gt.f32.partialorder %v1259_v43, 0.0 }
 0x4cb   :  { %v1276_v41 = vsel %vm1261_vm12, %v1257_v23, %v1272_v40  ;;  %v1278_v30 = vsel %vm1263_vm14, %v1259_v43, %v1274_v46 }
 0x4cc   :  { %1330 = vmatmul.f32.vlgmr.msrb.gmra.mxu0 %v1276_v41 }
 0x4d0   :  { %1409 = vmatmul.msk.f32.gmra.mxu2 %vm370_vm8, %v1279_v29 }
 0x4d4   :  { %1333 = vmatmul.f32.gmra.mxu0 %v1278_v30 }
 0x549   :  { %v1331_v7 = vpop.f32.mrf.mxu0 }
 0x54a   :  { %v1332_v8 = vadd.f32 %v1429_v47, %v1331_v7 }
 0x54b   :  { %v1354_v49 = vpop.f32.mrf.mxu2 }
 0x54c   :  { %v1355_v50 = vadd.f32 %v1354_v49, %v1332_v8 }
 0x54e   :  { %1360 = vst.msk [vmem:[#allocation12] sm:$0xff] %vm237_vm1, %v1355_v50 }
 0x551   :  { %v1334_v51 = vpop.f32.mrf.mxu0 }
 0x552   :  { %v1335_v52 = vadd.f32 %v1429_v47, %v1334_v51 }
 0x553   :  { %v1357_v56 = vpop.f32.mrf.mxu2 }
 0x554   :  { %v1358_v57 = vadd.f32 %v1357_v56, %v1335_v52 }
 0x556   :  { %1361 = vst.msk [vmem:[#allocation12 + $0x8] sm:$0x3] %vm239_vm2, %v1358_v57 }
 0x557   :  { %1374 = dma.vmem_to_hbm [thread:$0]  %s1367_s22, 256, %s1369_s11, [#allocation8], %s1560_s27, %s1560_s27, %s1561_s29  }
 0x558   :  { %1550 = dma.done.wait [#allocation8], 256  }
 0x559   :  { %1551 = vsyncadd [#allocation8], 4294967040 }
 0x55a   :  { %1379 = vsyncpa [#allocation7], 1 }
 0x55b   :  { %1380 = vsyncpa [#allocation10], 1 }
 0x55c   :  { %1381 = vsyncpa [#allocation8], 1 }

</bundles_post_ra>
